<compile_context>
chip_gen: v5e
topology: v5e:2x2
jax: 0.10.0
libtpu: 0.0.40
codegen_flags: <defaults>
</compile_context>

<pallas_src>
import functools

import jax
import jax.numpy as jnp
from jax.experimental import pallas as pl
from jax.experimental.pallas import tpu as pltpu

EXPANSION = 4
BN_EPS = 1e-5


# ---------------------------------------------------------------------------
# Fused BottleNeck kernel (one grid step == B_tile images of the batch)
# ---------------------------------------------------------------------------
def bottleneck_kernel(x_ref, w1_ref, b1_ref, w2_ref, b2_ref, w3_ref, b3_ref,
                      o_ref, ypad_ref, *, stride, has_proj, row_chunk):
    B, H, W, Cin = x_ref.shape
    Cmid = w1_ref.shape[1]
    Cout = w3_ref.shape[1]
    Ho = (H - 1) // stride + 1          # 3x3, pad=1, stride s
    Wo = (W - 1) // stride + 1

    # ---- conv1: 1x1 (BN scale folded into weights) + shift + ReLU ----------
    x2 = x_ref[...].reshape(B * H * W, Cin)                     # bf16
    y1 = jnp.dot(x2, w1_ref[...], preferred_element_type=jnp.float32)
    y1 = jnp.maximum(y1 + b1_ref[...], 0.0).astype(jnp.bfloat16)

    # ---- stage conv2 input with a 1-px zero halo in VMEM (no HBM im2col) ---
    # Only the halo border is zeroed; the interior is fully overwritten below.
    # NOTE: not gated on program_id==0 -- under "parallel" semantics the second
    # core never executes step 0, so the border must be written every step.
    zr = jnp.zeros((B, 1, W + 2, Cmid), jnp.bfloat16)
    zc = jnp.zeros((B, H + 2, 1, Cmid), jnp.bfloat16)
    ypad_ref[:, pl.ds(0, 1), :, :] = zr
    ypad_ref[:, pl.ds(H + 1, 1), :, :] = zr
    ypad_ref[:, :, pl.ds(0, 1), :] = zc
    ypad_ref[:, :, pl.ds(W + 1, 1), :] = zc
    ypad_ref[:, pl.ds(1, H), pl.ds(1, W), :] = y1.reshape(B, H, W, Cmid)

    # ---- conv2 (3x3, stride s) + conv3 (+ fused shortcut) per row chunk ----
    # Row chunking keeps each f32 accumulator tile register-resident
    # (<= ~256 KiB) instead of spilling to VMEM at large spatial sizes.
    for r0 in range(0, Ho, row_chunk):
        rows = min(row_chunk, Ho - r0)
        M = B * rows * Wo

        acc = jnp.zeros((M, Cmid), jnp.float32)
        for kh in range(3):
            for kw in range(3):
                if stride == 1:
                    tap = ypad_ref[:, pl.ds(kh + r0, rows), pl.ds(kw, Wo), :]
                else:
                    # Only the strided output positions are read / computed.
                    # TODO(synk): stride-2 strided-slice reads are not exercised
                    # below; audit lowering (masked/relayout) before relying on
                    # them for the downsampling blocks.
                    tap = ypad_ref[:, pl.ds(kh + r0 * stride, rows, stride),
                                   pl.ds(kw, Wo, stride), :]
                acc += jnp.dot(tap.reshape(M, Cmid), w2_ref[kh, kw],
                               preferred_element_type=jnp.float32)
        y2 = jnp.maximum(acc + b2_ref[...], 0.0).astype(jnp.bfloat16)

        # conv3 (1x1 -> Cout, BN folded). With a projection shortcut, [w3; ws]
        # were pre-concatenated along K so conv3 + shortcut is a single deeper
        # MXU dot (K = Cmid + Cin) plus one shift.
        if has_proj:
            if stride == 1:
                xs = x_ref[:, pl.ds(r0, rows), :, :].reshape(M, Cin)
            else:
                xs = x_ref[:, pl.ds(r0 * stride, rows, stride),
                           pl.ds(0, Wo, stride), :].reshape(M, Cin)
            k_in = jnp.concatenate([y2, xs], axis=-1)           # (M, Cmid+Cin)
            out = jnp.dot(k_in, w3_ref[...],
                          preferred_element_type=jnp.float32) + b3_ref[...]
        else:
            out = jnp.dot(y2, w3_ref[...],
                          preferred_element_type=jnp.float32) + b3_ref[...]
            xs = x_ref[:, pl.ds(r0, rows), :, :].reshape(M, Cin)  # identity
            out = out + xs.astype(jnp.float32)                    # (Cin == Cout)

        out = jnp.maximum(out, 0.0)                                # final ReLU
        o_ref[:, pl.ds(r0, rows), :, :] = (
            out.reshape(B, rows, Wo, Cout).astype(o_ref.dtype))    # bf16 store


# ---------------------------------------------------------------------------
# Wrapper: layout plumbing + generation-aware tiling + pallas_call setup
# ---------------------------------------------------------------------------
def _vmem_limit_bytes():
    cap = 64 * 1024 * 1024
    try:
        info = pltpu.get_tpu_info()
        cap = int(getattr(info, "vmem_capacity_bytes", cap))
    except Exception:
        pass
    # Half of physical per-core VMEM: ~64 MiB on v5e/v6e (128 MiB), 32 MiB on v7x.
    return max(32 * 1024 * 1024, min(cap // 2, 96 * 1024 * 1024))


def _pick_batch_tile(n, per_image_bytes, budget):
    best = 1
    for bt in range(1, n + 1):
        if n % bt:
            continue
        if bt * per_image_bytes > budget:
            break
        if bt == 1 or n // bt >= 8:     # keep >= 8 grid steps for DMA overlap
            best = bt
    return best


def bottleneck_forward_nhwc(params, x_nhwc, batch_tile=None):
    """Fused BottleNeck on an NHWC input; returns NHWC bf16."""
    stride = params["stride"]
    x = x_nhwc.astype(jnp.bfloat16)
    n, h, w, cin = x.shape
    # W a multiple of 16 keeps the bf16 (B,H,W,C)->(B*H*W,C) reshapes
    # relayout-free (bf16 packs 16 sublanes/tile); multiples of 8 stay correct.
    assert w % 8 == 0, "spatial width must be a multiple of 8"
    cmid = params["w1"].shape[1]
    k3, cout = params["w3s"].shape
    ho = (h - 1) // stride + 1
    wo = (w - 1) // stride + 1
    has_proj = "ws" in params
    if not has_proj:
        assert stride == 1 and cin == cout

    vmem_limit = _vmem_limit_bytes()
    if batch_tile is None:
        per_image = (2 * h * w * cin * 2            # double-buffered input block
                     + 2 * ho * wo * cout * 2       # double-buffered output block
                     + (h + 2) * (w + 2) * cmid * 2  # halo staging buffer
                     + 8 * h * w * max(cin, cmid))   # live-value headroom
        batch_tile = _pick_batch_tile(n, per_image, vmem_limit // 2)
    assert n % batch_tile == 0

    # conv2 f32 accumulator tile kept within ~64 vregs (256 KiB).
    row_chunk = max(1, min(ho, (256 * 1024) // max(batch_tile * wo * cmid * 4, 1)))

    args = [x, params["w1"], params["b1"], params["w2"], params["b2"],
            params["w3s"], params["b3s"]]
    in_specs = [
        pl.BlockSpec((batch_tile, h, w, cin), lambda i: (i, 0, 0, 0)),   # x
        pl.BlockSpec((cin, cmid), lambda i: (0, 0)),                     # w1 (BN-folded)
        pl.BlockSpec((1, cmid), lambda i: (0, 0)),                       # shift1
        pl.BlockSpec((3, 3, cmid, cmid), lambda i: (0, 0, 0, 0)),        # w2
        pl.BlockSpec((1, cmid), lambda i: (0, 0)),                       # shift2
        pl.BlockSpec((k3, cout), lambda i: (0, 0)),                      # [w3; ws]
        pl.BlockSpec((1, cout), lambda i: (0, 0)),                       # shift3 (+s)
    ]

    flops = 2 * n * (h * w * cin * cmid
                     + ho * wo * 9 * cmid * cmid
                     + ho * wo * k3 * cout)
    bytes_accessed = (sum(int(a.size) * a.dtype.itemsize for a in args)
                      + n * ho * wo * cout * 2)                  # bf16 output

    kernel = functools.partial(bottleneck_kernel, stride=stride,
                               has_proj=has_proj, row_chunk=row_chunk)

    return pl.pallas_call(
        kernel,
        out_shape=jax.ShapeDtypeStruct((n, ho, wo, cout), jnp.bfloat16),
        grid_spec=pltpu.PrefetchScalarGridSpec(
            num_scalar_prefetch=0,
            grid=(n // batch_tile,),
            in_specs=in_specs,
            out_specs=pl.BlockSpec((batch_tile, ho, wo, cout),
                                   lambda i: (i, 0, 0, 0)),
            scratch_shapes=[pltpu.VMEM((batch_tile, h + 2, w + 2, cmid),
                                       jnp.bfloat16)],
        ),
        compiler_params=pltpu.CompilerParams(
            dimension_semantics=("parallel",),     # megacore split over grid
            vmem_limit_bytes=vmem_limit,
        ),
        cost_estimate=pl.CostEstimate(flops=flops, transcendentals=0,
                                      bytes_accessed=bytes_accessed),
    )(*args)


def bottleneck_forward(params, x_nchw, batch_tile=None):
    # NCHW interface matching the PyTorch module. Prefer bottleneck_forward_nhwc
    # inside an NHWC model to avoid these two HBM transposes entirely; the
    # post-kernel transpose here moves bf16 (half the bytes of the old f32 path).
    x = jnp.transpose(x_nchw, (0, 2, 3, 1))
    out = bottleneck_forward_nhwc(params, x, batch_tile=batch_tile)
    return jnp.transpose(out, (0, 3, 1, 2))        # NCHW, bf16


# ---------------------------------------------------------------------------
# Deterministic parameters (eval-mode BN folded: scale -> weights, shift -> bias)
# ---------------------------------------------------------------------------
def _fold_bn(key, conv_w, conv_b):
    cout = conv_w.shape[-1]
    k1, k2, k3, k4 = jax.random.split(key, 4)
    gamma = 1.0 + 0.1 * jax.random.normal(k1, (cout,), jnp.float32)
    beta = 0.1 * jax.random.normal(k2, (cout,), jnp.float32)
    mean = 0.1 * jax.random.normal(k3, (cout,), jnp.float32)
    var = 1.0 + 0.1 * jax.random.uniform(k4, (cout,), jnp.float32)
    scale = gamma / jnp.sqrt(var + BN_EPS)
    w_folded = (conv_w * scale).astype(jnp.bfloat16)              # fold BN scale
    shift = (beta + scale * (conv_b - mean)).reshape(1, cout)     # f32 epilogue shift
    return w_folded, shift


def init_bottleneck_params(key, in_channels, out_channels, stride=1):
    cmid = out_channels
    cout = out_channels * EXPANSION
    ks = jax.random.split(key, 12)

    def _conv(kw_, kb_, kbn_, shape, fan_in):
        w = jax.random.normal(kw_, shape, jnp.float32) / jnp.sqrt(float(fan_in))
        b = 0.05 * jax.random.normal(kb_, (shape[-1],), jnp.float32)   # conv bias=True
        return _fold_bn(kbn_, w, b)

    p = {"stride": stride}
    p["w1"], p["b1"] = _conv(ks[0], ks[1], ks[2], (in_channels, cmid), in_channels)
    p["w2"], p["b2"] = _conv(ks[3], ks[4], ks[5], (3, 3, cmid, cmid), 9 * cmid)
    p["w3"], p["b3"] = _conv(ks[6], ks[7], ks[8], (cmid, cout), cmid)
    if stride != 1 or in_channels != cout:                     # projection shortcut
        p["ws"], p["bs"] = _conv(ks[9], ks[10], ks[11], (in_channels, cout), in_channels)
        # Fuse conv3 + projection shortcut: one deeper dot (K = cmid + cin).
        p["w3s"] = jnp.concatenate([p["w3"], p["ws"]], axis=0)
        p["b3s"] = p["b3"] + p["bs"]
    else:
        p["w3s"] = p["w3"]
        p["b3s"] = p["b3"]
    return p


# ---------------------------------------------------------------------------
# Pure-JAX reference (same bf16 inputs / f32 accumulation) for a sanity check
# ---------------------------------------------------------------------------
def _ref_conv1x1(x, w, b, stride=1):
    if stride > 1:
        x = x[:, ::stride, ::stride, :]
    y = jnp.einsum("nhwc,cd->nhwd", x.astype(jnp.bfloat16), w,
                   preferred_element_type=jnp.float32)
    return y + b.reshape(1, 1, 1, -1)


def _ref_conv3x3(x, w, b, stride=1):
    n, h, wd, c = x.shape
    ho = (h - 1) // stride + 1
    wo = (wd - 1) // stride + 1
    xp = jnp.pad(x, ((0, 0), (1, 1), (1, 1), (0, 0)))
    acc = jnp.zeros((n, ho, wo, w.shape[-1]), jnp.float32)
    for kh in range(3):
        for kw in range(3):
            tap = xp[:, kh:kh + stride * (ho - 1) + 1:stride,
                     kw:kw + stride * (wo - 1) + 1:stride, :]
            acc += jnp.einsum("nhwc,cd->nhwd", tap.astype(jnp.bfloat16), w[kh, kw],
                              preferred_element_type=jnp.float32)
    return acc + b.reshape(1, 1, 1, -1)


def reference_forward(params, x_nchw):
    stride = params["stride"]
    x = jnp.transpose(x_nchw, (0, 2, 3, 1)).astype(jnp.bfloat16)
    y1 = jnp.maximum(_ref_conv1x1(x, params["w1"], params["b1"]), 0.0).astype(jnp.bfloat16)
    y2 = jnp.maximum(_ref_conv3x3(y1, params["w2"], params["b2"], stride), 0.0).astype(jnp.bfloat16)
    y3 = _ref_conv1x1(y2, params["w3"], params["b3"])
    if "ws" in params:
        sc = _ref_conv1x1(x, params["ws"], params["bs"], stride)
    else:
        sc = x.astype(jnp.float32)
    out = jnp.maximum(y3 + sc, 0.0)
    return jnp.transpose(out, (0, 3, 1, 2))


if __name__ == "__main__":
    key = jax.random.PRNGKey(0)
    k1, k2, k3, k4 = jax.random.split(key, 4)

    def _run_case(name, kp, kx, in_channels, out_channels, stride, n=2, hw=16):
        params = init_bottleneck_params(kp, in_channels, out_channels, stride=stride)
        x = jax.random.normal(kx, (n, in_channels, hw, hw), jnp.float32)  # NCHW
        out = jax.block_until_ready(bottleneck_forward(params, x))
        ho = (hw - 1) // stride + 1
        assert out.shape == (n, out_channels * EXPANSION, ho, ho), (name, out.shape)
        out_f32 = out.astype(jnp.float32)
        assert bool(jnp.all(jnp.isfinite(out_f32))), name
        ref = reference_forward(params, x)
        max_err = float(jnp.max(jnp.abs(out_f32 - ref)))
        assert max_err < 8e-2, f"{name}: mismatch vs reference: {max_err}"

    # ResNet-50 layer1-style bottleneck: 64 -> 64 -> 256, stride 1, projection shortcut.
    _run_case("proj", k1, k2, in_channels=64, out_channels=64, stride=1)
    # Identity-shortcut path: 256 -> 64 -> 256, stride 1 (in_channels == expansion*out).
    _run_case("identity", k3, k4, in_channels=256, out_channels=64, stride=1)

    print("KERNEL_OK")
</pallas_src>

<mosaic_0001>
module attributes {stable_mosaic.version = 11 : i64} {
  func.func @bottleneck_kernel(%arg0: i32, %arg1: memref<1x16x16x64xbf16, #tpu.memory_space<vmem>>, %arg2: memref<64x64xbf16, #tpu.memory_space<vmem>>, %arg3: memref<1x64xf32, #tpu.memory_space<vmem>>, %arg4: memref<3x3x64x64xbf16, #tpu.memory_space<vmem>>, %arg5: memref<1x64xf32, #tpu.memory_space<vmem>>, %arg6: memref<128x256xbf16, #tpu.memory_space<vmem>>, %arg7: memref<1x256xf32, #tpu.memory_space<vmem>>, %arg8: memref<1x16x16x256xbf16, #tpu.memory_space<vmem>>, %arg9: memref<1x18x18x64xbf16, #tpu.memory_space<vmem>>) attributes {dimension_semantics = [#tpu.dimension_semantics<parallel>], iteration_bounds = array<i64: 2>, scalar_prefetch = 0 : i64, scratch_operands = 1 : i64, tpu.core_type = #tpu.core_type<tc>, window_params = [{transform_indices = @transform_0, window_bounds = array<i64: 1, 16, 16, 64>}, {pipeline_mode = #tpu.pipeline_mode<synchronous>, transform_indices = @transform_1, window_bounds = array<i64: 64, 64>}, {pipeline_mode = #tpu.pipeline_mode<synchronous>, transform_indices = @transform_2, window_bounds = array<i64: 1, 64>}, {pipeline_mode = #tpu.pipeline_mode<synchronous>, transform_indices = @transform_3, window_bounds = array<i64: 3, 3, 64, 64>}, {pipeline_mode = #tpu.pipeline_mode<synchronous>, transform_indices = @transform_4, window_bounds = array<i64: 1, 64>}, {pipeline_mode = #tpu.pipeline_mode<synchronous>, transform_indices = @transform_5, window_bounds = array<i64: 128, 256>}, {pipeline_mode = #tpu.pipeline_mode<synchronous>, transform_indices = @transform_6, window_bounds = array<i64: 1, 256>}, {transform_indices = @transform_7, window_bounds = array<i64: 1, 16, 16, 256>}]} {
    %c0 = arith.constant 0 : index
    %c0_0 = arith.constant 0 : index
    %c0_1 = arith.constant 0 : index
    %c0_2 = arith.constant 0 : index
    %0 = vector.load %arg1[%c0, %c0_0, %c0_1, %c0_2] : memref<1x16x16x64xbf16, #tpu.memory_space<vmem>>, vector<1x16x16x64xbf16>
    %1 = vector.shape_cast %0 : vector<1x16x16x64xbf16> to vector<256x64xbf16>
    %c0_3 = arith.constant 0 : index
    %c0_4 = arith.constant 0 : index
    %2 = vector.load %arg2[%c0_3, %c0_4] : memref<64x64xbf16, #tpu.memory_space<vmem>>, vector<64x64xbf16>
    %cst = arith.constant dense<0.000000e+00> : vector<256x64xf32>
    %3 = tpu.matmul %1, %2, %cst {dimension_numbers = #tpu.dot_dimension_numbers<[1], [0], [0], [1], [0, 0, 1, 1], [], []>} : vector<256x64xbf16>, vector<64x64xbf16>, vector<256x64xf32> -> vector<256x64xf32>
    %c0_5 = arith.constant 0 : index
    %c0_6 = arith.constant 0 : index
    %4 = vector.load %arg3[%c0_5, %c0_6] : memref<1x64xf32, #tpu.memory_space<vmem>>, vector<1x64xf32>
    %5 = vector.broadcast %4 : vector<1x64xf32> to vector<256x64xf32>
    %6 = arith.addf %3, %5 : vector<256x64xf32>
    %cst_7 = arith.constant 0.000000e+00 : f32
    %7 = vector.broadcast %cst_7 : f32 to vector<256x64xf32>
    %8 = arith.maximumf %6, %7 : vector<256x64xf32>
    %9 = arith.truncf %8 : vector<256x64xf32> to vector<256x64xbf16>
    %cst_8 = arith.constant 0.000000e+00 : bf16
    %10 = vector.broadcast %cst_8 : bf16 to vector<1x1x18x64xbf16>
    %cst_9 = arith.constant 0.000000e+00 : bf16
    %11 = vector.broadcast %cst_9 : bf16 to vector<1x18x1x64xbf16>
    %c0_10 = arith.constant 0 : index
    %c0_11 = arith.constant 0 : index
    %c0_12 = arith.constant 0 : index
    %c0_13 = arith.constant 0 : index
    %12 = vector.load %arg9[%c0_10, %c0_11, %c0_12, %c0_13] : memref<1x18x18x64xbf16, #tpu.memory_space<vmem>>, vector<1x1x18x64xbf16>
    tpu.vector_store %arg9[%c0_10, %c0_11, %c0_12, %c0_13], %10 {strides = array<i32>} : memref<1x18x18x64xbf16, #tpu.memory_space<vmem>>, vector<1x1x18x64xbf16>,
    %c0_14 = arith.constant 0 : index
    %c17 = arith.constant 17 : index
    %c0_15 = arith.constant 0 : index
    %c0_16 = arith.constant 0 : index
    %13 = vector.load %arg9[%c0_14, %c17, %c0_15, %c0_16] : memref<1x18x18x64xbf16, #tpu.memory_space<vmem>>, vector<1x1x18x64xbf16>
    tpu.vector_store %arg9[%c0_14, %c17, %c0_15, %c0_16], %10 {strides = array<i32>} : memref<1x18x18x64xbf16, #tpu.memory_space<vmem>>, vector<1x1x18x64xbf16>,
    %c0_17 = arith.constant 0 : index
    %c0_18 = arith.constant 0 : index
    %c0_19 = arith.constant 0 : index
    %c0_20 = arith.constant 0 : index
    %14 = vector.load %arg9[%c0_17, %c0_18, %c0_19, %c0_20] : memref<1x18x18x64xbf16, #tpu.memory_space<vmem>>, vector<1x18x1x64xbf16>
    tpu.vector_store %arg9[%c0_17, %c0_18, %c0_19, %c0_20], %11 {strides = array<i32>} : memref<1x18x18x64xbf16, #tpu.memory_space<vmem>>, vector<1x18x1x64xbf16>,
    %c0_21 = arith.constant 0 : index
    %c0_22 = arith.constant 0 : index
    %c17_23 = arith.constant 17 : index
    %c0_24 = arith.constant 0 : index
    %15 = vector.load %arg9[%c0_21, %c0_22, %c17_23, %c0_24] : memref<1x18x18x64xbf16, #tpu.memory_space<vmem>>, vector<1x18x1x64xbf16>
    tpu.vector_store %arg9[%c0_21, %c0_22, %c17_23, %c0_24], %11 {strides = array<i32>} : memref<1x18x18x64xbf16, #tpu.memory_space<vmem>>, vector<1x18x1x64xbf16>,
    %16 = vector.shape_cast %9 : vector<256x64xbf16> to vector<1x16x16x64xbf16>
    %c0_25 = arith.constant 0 : index
    %c1 = arith.constant 1 : index
    %c1_26 = arith.constant 1 : index
    %c0_27 = arith.constant 0 : index
    %17 = vector.load %arg9[%c0_25, %c1, %c1_26, %c0_27] : memref<1x18x18x64xbf16, #tpu.memory_space<vmem>>, vector<1x16x16x64xbf16>
    tpu.vector_store %arg9[%c0_25, %c1, %c1_26, %c0_27], %16 {strides = array<i32>} : memref<1x18x18x64xbf16, #tpu.memory_space<vmem>>, vector<1x16x16x64xbf16>,
    %cst_28 = arith.constant 0.000000e+00 : f32
    %18 = vector.broadcast %cst_28 : f32 to vector<256x64xf32>
    %c0_29 = arith.constant 0 : index
    %c0_30 = arith.constant 0 : index
    %c0_31 = arith.constant 0 : index
    %c0_32 = arith.constant 0 : index
    %19 = vector.load %arg9[%c0_29, %c0_30, %c0_31, %c0_32] : memref<1x18x18x64xbf16, #tpu.memory_space<vmem>>, vector<1x16x16x64xbf16>
    %20 = vector.shape_cast %19 : vector<1x16x16x64xbf16> to vector<256x64xbf16>
    %c0_33 = arith.constant 0 : index
    %c0_34 = arith.constant 0 : index
    %c0_35 = arith.constant 0 : index
    %c0_36 = arith.constant 0 : index
    %21 = vector.load %arg4[%c0_33, %c0_34, %c0_35, %c0_36] : memref<3x3x64x64xbf16, #tpu.memory_space<vmem>>, vector<1x1x64x64xbf16>
    %22 = vector.shape_cast %21 : vector<1x1x64x64xbf16> to vector<64x64xbf16>
    %cst_37 = arith.constant dense<0.000000e+00> : vector<256x64xf32>
    %23 = tpu.matmul %20, %22, %cst_37 {dimension_numbers = #tpu.dot_dimension_numbers<[1], [0], [0], [1], [0, 0, 1, 1], [], []>} : vector<256x64xbf16>, vector<64x64xbf16>, vector<256x64xf32> -> vector<256x64xf32>
    %24 = arith.addf %18, %23 : vector<256x64xf32>
    %c0_38 = arith.constant 0 : index
    %c0_39 = arith.constant 0 : index
    %c1_40 = arith.constant 1 : index
    %c0_41 = arith.constant 0 : index
    %25 = vector.load %arg9[%c0_38, %c0_39, %c1_40, %c0_41] : memref<1x18x18x64xbf16, #tpu.memory_space<vmem>>, vector<1x16x16x64xbf16>
    %26 = vector.shape_cast %25 : vector<1x16x16x64xbf16> to vector<256x64xbf16>
    %c0_42 = arith.constant 0 : index
    %c1_43 = arith.constant 1 : index
    %c0_44 = arith.constant 0 : index
    %c0_45 = arith.constant 0 : index
    %27 = vector.load %arg4[%c0_42, %c1_43, %c0_44, %c0_45] : memref<3x3x64x64xbf16, #tpu.memory_space<vmem>>, vector<1x1x64x64xbf16>
    %28 = vector.shape_cast %27 : vector<1x1x64x64xbf16> to vector<64x64xbf16>
    %cst_46 = arith.constant dense<0.000000e+00> : vector<256x64xf32>
    %29 = tpu.matmul %26, %28, %cst_46 {dimension_numbers = #tpu.dot_dimension_numbers<[1], [0], [0], [1], [0, 0, 1, 1], [], []>} : vector<256x64xbf16>, vector<64x64xbf16>, vector<256x64xf32> -> vector<256x64xf32>
    %30 = arith.addf %24, %29 : vector<256x64xf32>
    %c0_47 = arith.constant 0 : index
    %c0_48 = arith.constant 0 : index
    %c2 = arith.constant 2 : index
    %c0_49 = arith.constant 0 : index
    %31 = vector.load %arg9[%c0_47, %c0_48, %c2, %c0_49] : memref<1x18x18x64xbf16, #tpu.memory_space<vmem>>, vector<1x16x16x64xbf16>
    %32 = vector.shape_cast %31 : vector<1x16x16x64xbf16> to vector<256x64xbf16>
    %c0_50 = arith.constant 0 : index
    %c2_51 = arith.constant 2 : index
    %c0_52 = arith.constant 0 : index
    %c0_53 = arith.constant 0 : index
    %33 = vector.load %arg4[%c0_50, %c2_51, %c0_52, %c0_53] : memref<3x3x64x64xbf16, #tpu.memory_space<vmem>>, vector<1x1x64x64xbf16>
    %34 = vector.shape_cast %33 : vector<1x1x64x64xbf16> to vector<64x64xbf16>
    %cst_54 = arith.constant dense<0.000000e+00> : vector<256x64xf32>
    %35 = tpu.matmul %32, %34, %cst_54 {dimension_numbers = #tpu.dot_dimension_numbers<[1], [0], [0], [1], [0, 0, 1, 1], [], []>} : vector<256x64xbf16>, vector<64x64xbf16>, vector<256x64xf32> -> vector<256x64xf32>
    %36 = arith.addf %30, %35 : vector<256x64xf32>
    %c0_55 = arith.constant 0 : index
    %c1_56 = arith.constant 1 : index
    %c0_57 = arith.constant 0 : index
    %c0_58 = arith.constant 0 : index
    %37 = vector.load %arg9[%c0_55, %c1_56, %c0_57, %c0_58] : memref<1x18x18x64xbf16, #tpu.memory_space<vmem>>, vector<1x16x16x64xbf16>
    %38 = vector.shape_cast %37 : vector<1x16x16x64xbf16> to vector<256x64xbf16>
    %c1_59 = arith.constant 1 : index
    %c0_60 = arith.constant 0 : index
    %c0_61 = arith.constant 0 : index
    %c0_62 = arith.constant 0 : index
    %39 = vector.load %arg4[%c1_59, %c0_60, %c0_61, %c0_62] : memref<3x3x64x64xbf16, #tpu.memory_space<vmem>>, vector<1x1x64x64xbf16>
    %40 = vector.shape_cast %39 : vector<1x1x64x64xbf16> to vector<64x64xbf16>
    %cst_63 = arith.constant dense<0.000000e+00> : vector<256x64xf32>
    %41 = tpu.matmul %38, %40, %cst_63 {dimension_numbers = #tpu.dot_dimension_numbers<[1], [0], [0], [1], [0, 0, 1, 1], [], []>} : vector<256x64xbf16>, vector<64x64xbf16>, vector<256x64xf32> -> vector<256x64xf32>
    %42 = arith.addf %36, %41 : vector<256x64xf32>
    %c0_64 = arith.constant 0 : index
    %c1_65 = arith.constant 1 : index
    %c1_66 = arith.constant 1 : index
    %c0_67 = arith.constant 0 : index
    %43 = vector.load %arg9[%c0_64, %c1_65, %c1_66, %c0_67] : memref<1x18x18x64xbf16, #tpu.memory_space<vmem>>, vector<1x16x16x64xbf16>
    %44 = vector.shape_cast %43 : vector<1x16x16x64xbf16> to vector<256x64xbf16>
    %c1_68 = arith.constant 1 : index
    %c1_69 = arith.constant 1 : index
    %c0_70 = arith.constant 0 : index
    %c0_71 = arith.constant 0 : index
    %45 = vector.load %arg4[%c1_68, %c1_69, %c0_70, %c0_71] : memref<3x3x64x64xbf16, #tpu.memory_space<vmem>>, vector<1x1x64x64xbf16>
    %46 = vector.shape_cast %45 : vector<1x1x64x64xbf16> to vector<64x64xbf16>
    %cst_72 = arith.constant dense<0.000000e+00> : vector<256x64xf32>
    %47 = tpu.matmul %44, %46, %cst_72 {dimension_numbers = #tpu.dot_dimension_numbers<[1], [0], [0], [1], [0, 0, 1, 1], [], []>} : vector<256x64xbf16>, vector<64x64xbf16>, vector<256x64xf32> -> vector<256x64xf32>
    %48 = arith.addf %42, %47 : vector<256x64xf32>
    %c0_73 = arith.constant 0 : index
    %c1_74 = arith.constant 1 : index
    %c2_75 = arith.constant 2 : index
    %c0_76 = arith.constant 0 : index
    %49 = vector.load %arg9[%c0_73, %c1_74, %c2_75, %c0_76] : memref<1x18x18x64xbf16, #tpu.memory_space<vmem>>, vector<1x16x16x64xbf16>
    %50 = vector.shape_cast %49 : vector<1x16x16x64xbf16> to vector<256x64xbf16>
    %c1_77 = arith.constant 1 : index
    %c2_78 = arith.constant 2 : index
    %c0_79 = arith.constant 0 : index
    %c0_80 = arith.constant 0 : index
    %51 = vector.load %arg4[%c1_77, %c2_78, %c0_79, %c0_80] : memref<3x3x64x64xbf16, #tpu.memory_space<vmem>>, vector<1x1x64x64xbf16>
    %52 = vector.shape_cast %51 : vector<1x1x64x64xbf16> to vector<64x64xbf16>
    %cst_81 = arith.constant dense<0.000000e+00> : vector<256x64xf32>
    %53 = tpu.matmul %50, %52, %cst_81 {dimension_numbers = #tpu.dot_dimension_numbers<[1], [0], [0], [1], [0, 0, 1, 1], [], []>} : vector<256x64xbf16>, vector<64x64xbf16>, vector<256x64xf32> -> vector<256x64xf32>
    %54 = arith.addf %48, %53 : vector<256x64xf32>
    %c0_82 = arith.constant 0 : index
    %c2_83 = arith.constant 2 : index
    %c0_84 = arith.constant 0 : index
    %c0_85 = arith.constant 0 : index
    %55 = vector.load %arg9[%c0_82, %c2_83, %c0_84, %c0_85] : memref<1x18x18x64xbf16, #tpu.memory_space<vmem>>, vector<1x16x16x64xbf16>
    %56 = vector.shape_cast %55 : vector<1x16x16x64xbf16> to vector<256x64xbf16>
    %c2_86 = arith.constant 2 : index
    %c0_87 = arith.constant 0 : index
    %c0_88 = arith.constant 0 : index
    %c0_89 = arith.constant 0 : index
    %57 = vector.load %arg4[%c2_86, %c0_87, %c0_88, %c0_89] : memref<3x3x64x64xbf16, #tpu.memory_space<vmem>>, vector<1x1x64x64xbf16>
    %58 = vector.shape_cast %57 : vector<1x1x64x64xbf16> to vector<64x64xbf16>
    %cst_90 = arith.constant dense<0.000000e+00> : vector<256x64xf32>
    %59 = tpu.matmul %56, %58, %cst_90 {dimension_numbers = #tpu.dot_dimension_numbers<[1], [0], [0], [1], [0, 0, 1, 1], [], []>} : vector<256x64xbf16>, vector<64x64xbf16>, vector<256x64xf32> -> vector<256x64xf32>
    %60 = arith.addf %54, %59 : vector<256x64xf32>
    %c0_91 = arith.constant 0 : index
    %c2_92 = arith.constant 2 : index
    %c1_93 = arith.constant 1 : index
    %c0_94 = arith.constant 0 : index
    %61 = vector.load %arg9[%c0_91, %c2_92, %c1_93, %c0_94] : memref<1x18x18x64xbf16, #tpu.memory_space<vmem>>, vector<1x16x16x64xbf16>
    %62 = vector.shape_cast %61 : vector<1x16x16x64xbf16> to vector<256x64xbf16>
    %c2_95 = arith.constant 2 : index
    %c1_96 = arith.constant 1 : index
    %c0_97 = arith.constant 0 : index
    %c0_98 = arith.constant 0 : index
    %63 = vector.load %arg4[%c2_95, %c1_96, %c0_97, %c0_98] : memref<3x3x64x64xbf16, #tpu.memory_space<vmem>>, vector<1x1x64x64xbf16>
    %64 = vector.shape_cast %63 : vector<1x1x64x64xbf16> to vector<64x64xbf16>
    %cst_99 = arith.constant dense<0.000000e+00> : vector<256x64xf32>
    %65 = tpu.matmul %62, %64, %cst_99 {dimension_numbers = #tpu.dot_dimension_numbers<[1], [0], [0], [1], [0, 0, 1, 1], [], []>} : vector<256x64xbf16>, vector<64x64xbf16>, vector<256x64xf32> -> vector<256x64xf32>
    %66 = arith.addf %60, %65 : vector<256x64xf32>
    %c0_100 = arith.constant 0 : index
    %c2_101 = arith.constant 2 : index
    %c2_102 = arith.constant 2 : index
    %c0_103 = arith.constant 0 : index
    %67 = vector.load %arg9[%c0_100, %c2_101, %c2_102, %c0_103] : memref<1x18x18x64xbf16, #tpu.memory_space<vmem>>, vector<1x16x16x64xbf16>
    %68 = vector.shape_cast %67 : vector<1x16x16x64xbf16> to vector<256x64xbf16>
    %c2_104 = arith.constant 2 : index
    %c2_105 = arith.constant 2 : index
    %c0_106 = arith.constant 0 : index
    %c0_107 = arith.constant 0 : index
    %69 = vector.load %arg4[%c2_104, %c2_105, %c0_106, %c0_107] : memref<3x3x64x64xbf16, #tpu.memory_space<vmem>>, vector<1x1x64x64xbf16>
    %70 = vector.shape_cast %69 : vector<1x1x64x64xbf16> to vector<64x64xbf16>
    %cst_108 = arith.constant dense<0.000000e+00> : vector<256x64xf32>
    %71 = tpu.matmul %68, %70, %cst_108 {dimension_numbers = #tpu.dot_dimension_numbers<[1], [0], [0], [1], [0, 0, 1, 1], [], []>} : vector<256x64xbf16>, vector<64x64xbf16>, vector<256x64xf32> -> vector<256x64xf32>
    %72 = arith.addf %66, %71 : vector<256x64xf32>
    %c0_109 = arith.constant 0 : index
    %c0_110 = arith.constant 0 : index
    %73 = vector.load %arg5[%c0_109, %c0_110] : memref<1x64xf32, #tpu.memory_space<vmem>>, vector<1x64xf32>
    %74 = vector.broadcast %73 : vector<1x64xf32> to vector<256x64xf32>
    %75 = arith.addf %72, %74 : vector<256x64xf32>
    %cst_111 = arith.constant 0.000000e+00 : f32
    %76 = vector.broadcast %cst_111 : f32 to vector<256x64xf32>
    %77 = arith.maximumf %75, %76 : vector<256x64xf32>
    %78 = arith.truncf %77 : vector<256x64xf32> to vector<256x64xbf16>
    %c0_112 = arith.constant 0 : index
    %c0_113 = arith.constant 0 : index
    %c0_114 = arith.constant 0 : index
    %c0_115 = arith.constant 0 : index
    %79 = vector.load %arg1[%c0_112, %c0_113, %c0_114, %c0_115] : memref<1x16x16x64xbf16, #tpu.memory_space<vmem>>, vector<1x16x16x64xbf16>
    %80 = vector.shape_cast %79 : vector<1x16x16x64xbf16> to vector<256x64xbf16>
    %81 = tpu.concatenate %78, %80 in 1 : vector<256x64xbf16>, vector<256x64xbf16> -> vector<256x128xbf16>
    %c0_116 = arith.constant 0 : index
    %c0_117 = arith.constant 0 : index
    %82 = vector.load %arg6[%c0_116, %c0_117] : memref<128x256xbf16, #tpu.memory_space<vmem>>, vector<128x256xbf16>
    %cst_118 = arith.constant dense<0.000000e+00> : vector<256x256xf32>
    %83 = tpu.matmul %81, %82, %cst_118 {dimension_numbers = #tpu.dot_dimension_numbers<[1], [0], [0], [1], [0, 0, 1, 1], [], []>} : vector<256x128xbf16>, vector<128x256xbf16>, vector<256x256xf32> -> vector<256x256xf32>
    %c0_119 = arith.constant 0 : index
    %c0_120 = arith.constant 0 : index
    %84 = vector.load %arg7[%c0_119, %c0_120] : memref<1x256xf32, #tpu.memory_space<vmem>>, vector<1x256xf32>
    %85 = vector.broadcast %84 : vector<1x256xf32> to vector<256x256xf32>
    %86 = arith.addf %83, %85 : vector<256x256xf32>
    %cst_121 = arith.constant 0.000000e+00 : f32
    %87 = vector.broadcast %cst_121 : f32 to vector<256x256xf32>
    %88 = arith.maximumf %86, %87 : vector<256x256xf32>
    %89 = vector.shape_cast %88 : vector<256x256xf32> to vector<1x16x16x256xf32>
    %90 = arith.truncf %89 : vector<1x16x16x256xf32> to vector<1x16x16x256xbf16>
    %c0_122 = arith.constant 0 : index
    %c0_123 = arith.constant 0 : index
    %c0_124 = arith.constant 0 : index
    %c0_125 = arith.constant 0 : index
    %91 = vector.load %arg8[%c0_122, %c0_123, %c0_124, %c0_125] : memref<1x16x16x256xbf16, #tpu.memory_space<vmem>>, vector<1x16x16x256xbf16>
    tpu.vector_store %arg8[%c0_122, %c0_123, %c0_124, %c0_125], %90 {strides = array<i32>} : memref<1x16x16x256xbf16, #tpu.memory_space<vmem>>, vector<1x16x16x256xbf16>,
    return
  }
  func.func @transform_0(%arg0: i32) -> (i32, i32, i32, i32) {
    %c0_i32 = arith.constant 0 : i32
    %c0_i32_0 = arith.constant 0 : i32
    %c0_i32_1 = arith.constant 0 : i32
    %c0_i32_2 = arith.constant 0 : i32
    return %arg0, %c0_i32, %c0_i32_0, %c0_i32_1 : i32, i32, i32, i32
  }
  func.func @transform_1(%arg0: i32) -> (i32, i32) {
    %c0_i32 = arith.constant 0 : i32
    %c0_i32_0 = arith.constant 0 : i32
    %c0_i32_1 = arith.constant 0 : i32
    return %c0_i32, %c0_i32_0 : i32, i32
  }
  func.func @transform_2(%arg0: i32) -> (i32, i32) {
    %c0_i32 = arith.constant 0 : i32
    %c0_i32_0 = arith.constant 0 : i32
    %c0_i32_1 = arith.constant 0 : i32
    return %c0_i32, %c0_i32_0 : i32, i32
  }
  func.func @transform_3(%arg0: i32) -> (i32, i32, i32, i32) {
    %c0_i32 = arith.constant 0 : i32
    %c0_i32_0 = arith.constant 0 : i32
    %c0_i32_1 = arith.constant 0 : i32
    %c0_i32_2 = arith.constant 0 : i32
    %c0_i32_3 = arith.constant 0 : i32
    return %c0_i32, %c0_i32_0, %c0_i32_1, %c0_i32_2 : i32, i32, i32, i32
  }
  func.func @transform_4(%arg0: i32) -> (i32, i32) {
    %c0_i32 = arith.constant 0 : i32
    %c0_i32_0 = arith.constant 0 : i32
    %c0_i32_1 = arith.constant 0 : i32
    return %c0_i32, %c0_i32_0 : i32, i32
  }
  func.func @transform_5(%arg0: i32) -> (i32, i32) {
    %c0_i32 = arith.constant 0 : i32
    %c0_i32_0 = arith.constant 0 : i32
    %c0_i32_1 = arith.constant 0 : i32
    return %c0_i32, %c0_i32_0 : i32, i32
  }
  func.func @transform_6(%arg0: i32) -> (i32, i32) {
    %c0_i32 = arith.constant 0 : i32
    %c0_i32_0 = arith.constant 0 : i32
    %c0_i32_1 = arith.constant 0 : i32
    return %c0_i32, %c0_i32_0 : i32, i32
  }
  func.func @transform_7(%arg0: i32) -> (i32, i32, i32, i32) {
    %c0_i32 = arith.constant 0 : i32
    %c0_i32_0 = arith.constant 0 : i32
    %c0_i32_1 = arith.constant 0 : i32
    %c0_i32_2 = arith.constant 0 : i32
    return %arg0, %c0_i32, %c0_i32_0, %c0_i32_1 : i32, i32, i32, i32
  }
}

</mosaic_0001>

<bundles_post_ra>
// kernel: tpu_custom_call.1
= control target key start
LH: loop header
LB: loop body
LE: loop exit
PB: predicated region body
PF: predicated region fallthrough
CT: control target
= control target key end

     0   :  { %s9762_s0 = inlined_call_operand.hbm [shape: bf16[2,16,16,64], index: 0, kind: input, shape index: {}]   ;;  %s9763_s1 = inlined_call_operand.hbm [shape: bf16[64,64], index: 1, kind: input, shape index: {}]   ;;  %s9764_s2 = inlined_call_operand.vmem [shape: f32[1,64], index: 2, kind: input, shape index: {}]   ;;  %s9765_s3 = inlined_call_operand.hbm [shape: bf16[3,3,64,64], index: 3, kind: input, shape index: {}]   ;;  %s9766_s4 = inlined_call_operand.hbm [shape: f32[1,64], index: 4, kind: input, shape index: {}]   ;;  %s9767_s5 = inlined_call_operand.hbm [shape: bf16[128,256], index: 5, kind: input, shape index: {}]   ;;  %s9768_s6 = inlined_call_operand.vmem [shape: f32[1,256], index: 6, kind: input, shape index: {}]   ;;  %s9769_s7 = inlined_call_operand.hbm [shape: bf16[2,16,16,256], index: 7, kind: output, shape index: {}]  }
   0x1   :  { %9777 = sst [smem:[#allocation49_spill]] %s9763_s1 }
   0x2   :  { %12 = vsyncpa [#allocation4], 0 }
   0x3   :  { %14 = vsyncpa [#allocation4 + $0x1], 0 }
   0x4   :  { %15 = vsyncpa [#allocation7], 0 }
   0x5   :  { %16 = vsyncpa [#allocation10], 0 }
   0x6   :  { %17 = vsyncpa [#allocation5], 0 }
   0x7   :  { %19 = vsyncpa [#allocation5 + $0x1], 0  ;;  %s7652_s24 = smov 0   ;;  %s7654_s25 = smov 0  }
   0x8   :  { %s7656_s26 = smov 0   ;;  %s7658_s27 = smov 0  }
   0x9 LB: > { %s7673_s28 = sadd.s32 4294967295, %s7598_s27   ;;  %s6356_s29 = sadd.s32 4294967294, %s7598_s27   ;;  %s7598_s27 = sphi %s7658_s27, %s9907_s27   ;;  %s7594_s26 = sphi %s7656_s26, %s9906_s26   ;;  %s7590_s25 = sphi %s7654_s25, %s9905_s25   ;;  %s7586_s24 = sphi %s7652_s24, %s9904_s24  }
   0xa   : > { %p45_p0 = scmp.ne.s32.totalorder %s7590_s25, %s7586_s24  ;;  %p46_p1 = scmp.eq.s32.totalorder %s7673_s28, 0 }
   0xb   : > { %p195_p2 = scmp.eq.s32.totalorder %s7673_s28, 1  ;;  %p201_p3 = scmp.eq.s32.totalorder %s6356_s29, 1 }
   0xc   : > { %p7682_p4 = por %p46_p1, %p45_p0  ;;  %p6357_p5 = scmp.ge.s32.totalorder %s7598_s27, 1 }
   0xd   : > { %p7687_p6 = por %p201_p3, %p45_p0  ;;  %p208_p7 = scmp.lt.s32.totalorder %s7598_s27, 3 }
   0xe   : > { %s9780_s1 = sld [smem:[#allocation49_spill]]  ;;  %s7600_s13 = smov [#allocation6]  }
   0xf   : > { %p7695_p8 = pnand %p6357_p5, %p208_p7  ;;  %s221_s14 = sshll.u32 %s7600_s13, 4  ;;  %s222_s14 = int_to_ptr.vmem [resolvable:$true] %s221_s14 }
  0x10   : > { %s251_s18 = sshll.u32 %s9766_s4, 4  ;;  %s9770_s19 = smov 64   ;;  %s252_s18 = int_to_ptr.hbm [resolvable:$true] %s251_s18 }
  0x11   : > { %p7288_p9 = pneg %p7695_p8  ;;  %s9771_s20 = smov 4  }
  0x12   : > { %s7603_s21 = smov [#allocation9]   ;;  %s236_s9 = sshll.u32 %s9765_s3, 4  ;;  %s237_s9 = int_to_ptr.hbm [resolvable:$true] %s236_s9 }
  0x13   : > { %p7703_p10 = pnand %p7288_p9, %p46_p1  ;;  %s253_s22 = sshll.u32 %s7603_s21, 4  ;;  %s254_s22 = int_to_ptr.vmem [resolvable:$true] %s253_s22 }
  0x14   : > { %s219_s11 = sshll.u32 %s9780_s1, 4  ;;  %s262_s16 = sshll.u32 %s9767_s5, 4  ;;  %s220_s11 = int_to_ptr.hbm [resolvable:$true] %s219_s11  ;;  %s263_s16 = int_to_ptr.hbm [resolvable:$true] %s262_s16 }
  0x15   : > { %7291 = dma.hbm_to_vmem [thread:$0]  (!%p7703_p10), %s220_s11, 512, %s222_s14, [#allocation7], %s9770_s19, %s9770_s19, %s9771_s20  }
  0x16   : > { %7297 = dma.hbm_to_vmem [thread:$0]  (!%p7703_p10), %s252_s18, 16, %s254_s22, [#allocation10]  }
  0x17   : > { %s7604_s11 = smov [#allocation8]   ;;  %s7605_s17 = smov [#allocation11]  }
  0x18   : > { %s238_s14 = sshll.u32 %s7604_s11, 4  ;;  %s264_s18 = sshll.u32 %s7605_s17, 4  ;;  %s239_s14 = int_to_ptr.vmem [resolvable:$true] %s238_s14  ;;  %s265_s18 = int_to_ptr.vmem [resolvable:$true] %s264_s18 }
  0x19   : > { %7294 = dma.hbm_to_vmem [thread:$0]  (!%p7703_p10), %s237_s9, 4608, %s239_s14, [#allocation7], %s9770_s19, %s9770_s19, %s9771_s20  }
  0x1a   : > { %s7606_s21 = smov 128   ;;  %s7607_s22 = smov 8  }
  0x1b   : > { %7300 = dma.hbm_to_vmem [thread:$0]  (!%p7703_p10), %s263_s16, 2048, %s265_s18, [#allocation10], %s7606_s21, %s7606_s21, %s7607_s22  }
  0x1c   : > { %s7732_s23 = sadd.s32 1, %s7598_s27   ;;  %s32_s10 = sadd.s32 1, %s7594_s26 }
  0x1d   : > { %s29_s29 = ssub.s32 %s7598_s27, %s7732_s23  ;;  %p39_p13 = scmp.ne.s32.totalorder %s7594_s26, %s7590_s25 }
  0x1e   : > { %p30_p12 = scmp.eq.s32.totalorder %s29_s29, 0  ;;  %p40_p0 = scmp.eq.s32.totalorder %s7598_s27, 0 }
  0x1f   : > { %p7745_p5 = por %p195_p2, %p39_p13  ;;  %p7313_p7 = scmp.lt.s32.totalorder %s7598_s27, 2 }
  0x20   : > { %s7741_s13 = scalar_select %p30_p12, %s7594_s26, %s32_s10  }
  0x21   : > { %p41_p3 = por %p40_p0, %p39_p13  ;;  %s281_s11 = sand.u32 1, %s7594_s26  }
  0x22   : > { %s6363_s15 = sshll.u32 %s281_s11, 7  ;;  %s7130_s16 = sshll.u32 %s7598_s27, 7 }
  0x23   : > { %s290_s18 = scalar_lea.hbm %s9762_s0, %s7130_s16  ;;  %s285_s21 = scalar_lea.vmem [#allocation3], %s6363_s15 }
  0x24   : > { %s293_s22 = sshll.u32 %s285_s21, 4  ;;  %s291_s29 = sshll.u32 %s290_s18, 4  ;;  %s294_s22 = int_to_ptr.vmem [resolvable:$true] %s293_s22  ;;  %s292_s29 = int_to_ptr.hbm [resolvable:$true] %s291_s29 }
  0x25   : > { %p7755_p9 = pnand %p7313_p7, %p41_p3  ;;  %s282_s19 = scalar_lea.sflag [#allocation4], %s281_s11 }
  0x26   : > { %s7494_s20 = sshra.s32 %s292_s29, 4  ;;  %s7501_s14 = scalar_lea.hbm %s9762_s0, 256  ;;  %s7495_s20 = int_to_ptr.hbm [resolvable:$true] %s7494_s20 }
  0x27   : > { %s7496_s1 = scalar_lea.hbm %s7495_s20, 128  ;;  %p7498_p10 = pneg %p7755_p9 }
  0x28   : > { %p7497_p2 = scmp.ne.s32.totalorder %s7495_s20, %s7496_s1  ;;  %p7502_p0 = scmp.lt.s32.totalorder %s7495_s20, %s9762_s0 }
  0x29   : > { %p7503_p3 = scmp.lt.s32.totalorder %s7501_s14, %s7496_s1 }
  0x2a   : > { %p7499_p12 = pnand %p7498_p10, %p7497_p2 }
  0x2b   : > { %p7504_p7 = por %p7503_p3, %p7502_p0 }
  0x2c   : > { %p7500_p13 = pneg %p7499_p12 }
  0x2e   : > { %p7505_p11 = pnand %p7504_p7, %p7500_p13 }
  0x30   : > { %7508 = shalt.err (!%p7505_p11)
}
  0x31   : > { %s9785_s11 = smov 4   ;;  %s9786_s21 = smov 64  }
  0x32   : > { %7304 = dma.hbm_to_vmem [thread:$0]  (!%p7755_p9), %s292_s29, 2048, %s294_s22, %s282_s19, %s9786_s21, %s9786_s21, %s9785_s11  }
  0x33   : > { %305 = sbr.rel (%p7695_p8) target bundleno = 1283 (0x503), region = 48 }
  0x38   : > { %s7775_s16 = sand.u32 1, %s7590_s25  }
  0x39   : > { %s6367_s20 = sshll.u32 %s7775_s16, 7  ;;  %s308_s1 = scalar_lea.sflag [#allocation4], %s7775_s16 }
  0x3a   : > { %s7779_s15 = scalar_lea.vmem [#allocation3], %s6367_s20 }
  0x3b   : > { %7569 = dma.done.wait (%p7682_p4), %s308_s1, 2048  }
  0x3c   : > { %7571 = vsyncadd (%p7682_p4), %s308_s1, 4294965248 }
  0x3d   : > { %7573 = dma.done.wait (%p46_p1), [#allocation7], 5120  }
  0x3e   : > { %7575 = vsyncadd (%p46_p1), [#allocation7], 4294962176 }
  0x3f   : > { %7577 = dma.done.wait (%p46_p1), [#allocation10], 2064  }
  0x40   : > { %7579 = vsyncadd (%p46_p1), [#allocation10], 4294965232  ;;  %v7150_v0 = vld [vmem:[#allocation6 + $0x18] sm:$0xff]  ;;  %v7149_v1 = vld [vmem:[#allocation6 + $0x10] sm:$0xff]  ;;  %vm512_vm0 = vcmask 523264   ;;  %vm714_vm1 = vcmask 519168  }
  0x41   : > { %565 = vmatpush.bf16.msra.mxu0 %v7150_v0  ;;  %v7148_v2 = vld [vmem:[#allocation6 + $0x8] sm:$0xff]  ;;  %v7147_v3 = vld [vmem:[#allocation6] sm:$0xff]  ;;  %v7133_v6 = vld [vmem:[%s7779_s15 + $0x10] sm:$0xff]  ;;  %vm717_vm2 = vcmask 516096   ;;  %v7608_v11 = vmov 0   ;;  %v9787_v12 = vmov 0 }
  0x42   : > { %v7131_v4 = vld [vmem:[%s7779_s15] sm:$0xff]  ;;  %v7132_v5 = vld [vmem:[%s7779_s15 + $0x8] sm:$0xff]  ;;  %v7134_v7 = vld [vmem:[%s7779_s15 + $0x18] sm:$0xff]  ;;  %715 = vst.msk [vmem:[#allocation2] sm:$0xf] %vm714_vm1, %v7608_v11  ;;  %v9790_v14 = vmov 0 }
  0x43   : > { %v7135_v8 = vld [vmem:[%s7779_s15 + $0x20] sm:$0xff]  ;;  %v7136_v9 = vld [vmem:[%s7779_s15 + $0x28] sm:$0xff]  ;;  %v7170_v10 = vld [vmem:[#allocation8 + $0x18] sm:$0xff]  ;;  %716 = vst.msk [vmem:[#allocation2 + $0x4] sm:$0xf] %vm714_vm1, %v7608_v11  ;;  %vm2223_vm7 = vcmask 1042432  }
  0x44   : > { %2090 = vmatpush.bf16.msra.mxu2 %v7170_v10  ;;  %718 = vst.msk [vmem:[#allocation2 + $0x8] sm:$0x1] %vm717_vm2, %v7608_v11  ;;  %vm724_vm3 = vsmask.f32 256  ;;  %vm780_vm5 = vsmask.f32 7938 }
  0x45   : > { %566 = vmatpush.bf16.msra.mxu0 %v7149_v1  ;;  %720 = vst.msk [vmem:[#allocation2 + $0xcc] sm:$0xf] %vm714_vm1, %v7608_v11  ;;  %vm7810_vm4 = vmand %vm717_vm2, %vm724_vm3  ;;  %v7178_v15 = vld [vmem:[#allocation8 + $0x58] sm:$0xff]  ;;  %v7137_v17 = vld [vmem:[%s7779_s15 + $0x30] sm:$0xff]  ;;  %vm2224_vm8 = vcmask 1046532   ;;  %s7609_s14 = smov 64  }
  0x46   : > { %721 = vst.msk [vmem:[#allocation2 + $0xd0] sm:$0xf] %vm714_vm1, %v7608_v11  ;;  %v9788_v12 = vsel %vm7810_vm4, 4294967295, %v9787_v12  ;;  %vm7815_vm6 = vmand %vm717_vm2, %vm780_vm5  ;;  %2471 = vmatpush.bf16.msra.mxu3 %v7178_v15  ;;  %v7169_v19 = vld [vmem:[#allocation8 + $0x10] sm:$0xff]  ;;  %v7174_v21 = vld [vmem:[#allocation8 + $0x38] sm:$0xff]  ;;  %s6372_s11 = sshll.u32 %s7775_s16, 8 }
  0x47   : > { %722 = vst.msk [vmem:[#allocation2 + $0xd4] sm:$0x1] %vm717_vm2, %v7608_v11  ;;  %v9791_v14 = vsel %vm7815_vm6, 4294967295, %v9790_v14  ;;  %v7177_v22 = vld [vmem:[#allocation8 + $0x50] sm:$0xff]  ;;  %1849 = vmatpush.bf16.msra.mxu1 %v7174_v21  ;;  %v7168_v25 = vld [vmem:[#allocation8 + $0x8] sm:$0xff]  ;;  %v7167_v37 = vld [vmem:[#allocation8] sm:$0xff] }
  0x48   : > { %9789 = vst [vmem:[#allocation17_spill] sm:$0xff] %v9788_v12  ;;  %2091 = vmatpush.bf16.msra.mxu2 %v7169_v19  ;;  %v729_v23 = vld [vmem:[#allocation2 + $0xc] sm:$0x1]  ;;  %v7176_v29 = vld [vmem:[#allocation8 + $0x48] sm:$0xff]  ;;  %vm7827_vm9 = vmor %vm2223_vm7, %vm2224_vm8  ;;  %vm1329_vm10 = vsmask.f32 3328 }
  0x49   : > { %567 = vmatpush.bf16.msra.mxu0 %v7148_v2  ;;  %v726_v13 = vld [vmem:[#allocation2] sm:$0x1]  ;;  %9792 = vst [vmem:[#allocation18_spill] sm:$0xff] %v9791_v14  ;;  %v730_v24 = vsel %vm7810_vm4, 0, %v729_v23  ;;  %v7173_v28 = vld [vmem:[#allocation8 + $0x30] sm:$0xff]  ;;  %v7175_v51 = vld [vmem:[#allocation8 + $0x40] sm:$0xff] }
  0x4a   : > { %v727_v16 = vsel %vm7810_vm4, 0, %v726_v13  ;;  %2472 = vmatpush.bf16.msra.mxu3 %v7177_v22  ;;  %731 = vst [vmem:[#allocation2 + $0xc] sm:$0x1] %v730_v24  ;;  %v1274_v26 = vld [vmem:[#allocation2 + $0x4] sm:$0xf]  ;;  %v7138_v61 = vld [vmem:[%s7779_s15 + $0x38] sm:$0xff]  ;;  %vm7867_vm13 = vmand %vm714_vm1, %vm780_vm5 }
  0x4b   : > { %728 = vst [vmem:[#allocation2] sm:$0x1] %v727_v16  ;;  %v782_v18 = vld [vmem:[#allocation2 + $0x8] sm:$0x1]  ;;  %v2228_v30 = vrot.slane %v1274_v26, 5  ;;  %v1342_v33 = vshll.u32 %v1274_v26, 16  ;;  %1850 = vmatpush.bf16.msra.mxu1 %v7173_v28 }
  0x4c   : > { %v783_v20 = vsel %vm7815_vm6, 0, %v782_v18  ;;  %2092 = vmatpush.bf16.msra.mxu2 %v7168_v25  ;;  %v2175_v35 = vld [vmem:[#allocation2] sm:$0xe]  ;;  %v1346_v36 = vshrl.u32 %v1274_v26, 16  ;;  %v785_v45 = vld [vmem:[#allocation2 + $0x14] sm:$0x1] }
  0x4d   : > { %568 = vmatpush.bf16.msra.mxu0 %v7147_v3  ;;  %784 = vst [vmem:[#allocation2 + $0x8] sm:$0x1] %v783_v20  ;;  %v6597_v38 = vrot.slane %v2175_v35, 9  ;;  %v2230_v39 = vrot.slane %v2228_v30, 4  ;;  %v1344_v44 = vrot.slane %v1342_v33, 5  ;;  %v7172_v46 = vld [vmem:[#allocation8 + $0x28] sm:$0xff] }
  0x4e   : > { %2473 = vmatpush.bf16.msra.mxu3 %v7176_v29  ;;  %v1348_v48 = vrot.slane %v1346_v36, 4  ;;  %v786_v50 = vsel %vm7815_vm6, 0, %v785_v45  ;;  %vm1330_vm11 = vsmask.f32 7440  ;;  %v7171_v63 = vld [vmem:[#allocation8 + $0x20] sm:$0xff]  ;;  %v7198_v21 = vld [vmem:[#allocation8 + $0x78] sm:$0xff] }
  0x4f   : > { %v2229_v47 = vsel %vm7827_vm9, %v6597_v38, %v2228_v30  ;;  %787 = vst [vmem:[#allocation2 + $0x14] sm:$0x1] %v786_v50  ;;  %1851 = vmatpush.bf16.msra.mxu1 %v7172_v46  ;;  %vm7838_vm12 = vmor %vm1329_vm10, %vm1330_vm11  ;;  %v7139_v11 = vld [vmem:[%s7779_s15 + $0x40] sm:$0xff]  ;;  %v7202_v22 = vld [vmem:[#allocation8 + $0x98] sm:$0xff]  ;;  %vm836_vm14 = vsmask.f32 4368 }
  0x50   : > { %6453 = vmatmul.msk.bf16.vlgmr.msra.gmra.mxu0 %vm512_vm0, %v7131_v4  ;;  %2093 = vmatpush.bf16.msra.mxu2 %v7167_v37  ;;  %v2347_v54 = vunpack.c.l.b16 %v2229_v47  ;;  %v1349_v57 = vor.u32 %v1348_v48, %v1344_v44  ;;  %v7140_v36 = vld [vmem:[%s7779_s15 + $0x48] sm:$0xff]  ;;  %vm7878_vm15 = vmor %vm724_vm3, %vm836_vm14  ;;  %s9590_s21 = scalar_lea.vmem [#allocation12], %s6372_s11  ;;  %s7267_s20 = sshll.u32 %s7673_s28, 8 }
  0x51   : > { %2785 = vmatpush.bf16.msrb.mxu0 %v7198_v21  ;;  %v1161_v28 = vld [vmem:[#allocation2 + $0xc] sm:$0xf]  ;;  %v794_v21 = vld [vmem:[#allocation2 + $0x38] sm:$0x1]  ;;  %s6241_s30 = scalar_lea.hbm %s9769_s7, %s7267_s20  ;;  %s6242_s12 = sshll.u32 %s9590_s21, 4  ;;  %s6243_s12 = int_to_ptr.vmem [resolvable:$true] %s6242_s12 }
  0x52   : > { %v1273_v27 = vld [vmem:[#allocation2] sm:$0xf]  ;;  %2474 = vmatpush.bf16.msra.mxu3 %v7175_v51  ;;  %v1350_v0 = vrot.slane %v1349_v57, 4  ;;  %s6244_s19 = sshll.u32 %s6241_s30, 4  ;;  %s6230_s28 = scalar_lea.sflag [#allocation5], %s7775_s16  ;;  %s6245_s19 = int_to_ptr.hbm [resolvable:$true] %s6244_s19 }
  0x53   : > { %v1333_v31 = vshrl.u32 %v1273_v27, 16  ;;  %v1336_v32 = vshll.u32 %v1273_v27, 16  ;;  %v7151_v52 = vld [vmem:[#allocation2] sm:$0xff]  ;;  %1852 = vmatpush.bf16.msra.mxu1 %v7171_v63  ;;  %s7538_s22 = sshra.s32 %s6245_s19, 4  ;;  %s7544_s17 = scalar_lea.hbm %s9769_s7, 512  ;;  %s7539_s22 = int_to_ptr.hbm [resolvable:$true] %s7538_s22 }
  0x54   : > { %v1313_v34 = vld [vmem:[#allocation2 + $0x8] sm:$0x1]  ;;  %6581 = vmatmul.msk.bf16.vlgmr.msra.gmra.mxu2 %vm512_vm0, %v7151_v52  ;;  %v738_v52 = vld [vmem:[#allocation2 + $0x30] sm:$0x1]  ;;  %s7540_s29 = scalar_lea.hbm %s7539_s22, 256  ;;  %p7545_p11 = scmp.lt.s32.totalorder %s7539_s22, %s9769_s7 }
  0x55   : > { %v2231_v41 = vrot.slane %v1313_v34, 5  ;;  %v1335_v42 = vrot.slane %v1333_v31, 4  ;;  %v1338_v43 = vrot.slane %v1336_v32, 5  ;;  %v1352_v49 = vshll.u32 %v1313_v34, 16  ;;  %v791_v31 = vld [vmem:[#allocation2 + $0x2c] sm:$0x1]  ;;  %p7541_p1 = scmp.ne.s32.totalorder %s7539_s22, %s7540_s29  ;;  %p7546_p9 = scmp.lt.s32.totalorder %s7544_s17, %s7540_s29 }
  0x56   : > { %v792_v34 = vsel %vm7815_vm6, 0, %v791_v31 }
  0x57   : > { %v2232_v53 = vsel %vm7827_vm9, %v2230_v39, %v2231_v41  ;;  %v1339_v55 = vor.u32 %v1338_v43, %v1335_v42  ;;  %v1354_v60 = vrot.slane %v1352_v49, 5  ;;  %3467 = vmatpush.bf16.msrb.mxu1 %v7202_v22  ;;  %793 = vst [vmem:[#allocation2 + $0x2c] sm:$0x1] %v792_v34  ;;  %v1165_v43 = vld [vmem:[#allocation2 + $0x14] sm:$0x1]  ;;  %p7542_p4 = pnand %p7541_p1, %p7745_p5  ;;  %p7547_p2 = por %p7546_p9, %p7545_p11 }
  0x58   : > { %v2348_v56 = vunpack.c.l.b16 %v2232_v53 }
  0x59   : > { %v1340_v59 = vrot.slane %v1339_v55, 4  ;;  %v1355_v2 = vsel %vm7838_vm12, %v1350_v0, %v1354_v60  ;;  %p7543_p8 = pneg %p7542_p4 }
  0x5a   : > { %v2379_v62 = vpack.c.b16 %v2348_v56, %v2347_v54  ;;  %v1726_v4 = vunpack.c.l.b16 %v1355_v2  ;;  %v739_v56 = vsel %vm7810_vm4, 0, %v738_v52 }
  0x5b   : > { %v1345_v1 = vsel %vm7838_vm12, %v1340_v59, %v1344_v44  ;;  %740 = vst [vmem:[#allocation2 + $0x30] sm:$0x1] %v739_v56  ;;  %p7548_p10 = pnand %p7547_p2, %p7543_p8 }
  0x5c   : > { %6629 = vmatmul.msk.bf16.vlgmr.msra.gmra.mxu3 %vm512_vm0, %v2379_v62  ;;  %v1725_v3 = vunpack.c.l.b16 %v1345_v1 }
  0x60   : > { %6454 = vmatmul.msk.bf16.gmra.mxu0 %vm512_vm0, %v7132_v5  ;;  %v732_v5 = vld [vmem:[#allocation2 + $0x18] sm:$0x1] }
  0x70   : > { %6455 = vmatmul.msk.bf16.gmra.mxu0 %vm512_vm0, %v7133_v6  ;;  %v1757_v6 = vpack.c.b16 %v1726_v4, %v1725_v3 }
  0x72   : > { %6485 = vmatmul.msk.bf16.vlgmr.msra.gmra.mxu1 %vm512_vm0, %v1757_v6 }
  0x80   : > { %6456 = vmatmul.msk.bf16.gmra.mxu0 %vm512_vm0, %v7134_v7  ;;  %v733_v7 = vsel %vm7810_vm4, 0, %v732_v5 }
  0x81   : > { %734 = vst [vmem:[#allocation2 + $0x18] sm:$0x1] %v733_v7 }
  0x88   : > { %v1168_v0 = vld [vmem:[#allocation2 + $0x18] sm:$0xf] }
  0x90   : > { %6457 = vmatmul.msk.bf16.gmra.mxu0 %vm512_vm0, %v7135_v8  ;;  %v788_v8 = vld [vmem:[#allocation2 + $0x20] sm:$0x1] }
  0x91   : > { %v789_v10 = vsel %vm7815_vm6, 0, %v788_v8  ;;  %v7141_v8 = vld [vmem:[%s7779_s15 + $0x50] sm:$0xff] }
  0x92   : > { %790 = vst [vmem:[#allocation2 + $0x20] sm:$0x1] %v789_v10 }
  0xa0   : > { %6458 = vmatmul.msk.bf16.gmra.mxu0 %vm512_vm0, %v7136_v9  ;;  %v7855_v9 = vld [vmem:[%s9764_s2] ss:$0 sm:$0xff] }
  0xb0   : > { %6459 = vmatmul.msk.bf16.gmra.mxu0 %vm512_vm0, %v7137_v17  ;;  %v735_v17 = vld [vmem:[#allocation2 + $0x24] sm:$0x1] }
  0xb1   : > { %v736_v19 = vsel %vm7810_vm4, 0, %v735_v17 }
  0xb2   : > { %737 = vst [vmem:[#allocation2 + $0x24] sm:$0x1] %v736_v19 }
  0xc0   : > { %6460 = vmatmul.msk.bf16.gmra.mxu0 %vm512_vm0, %v7138_v61 }
  0xcd   : > { %v570_v13 = vpop.f32.mrf.mxu0 }
  0xce   : > { %v571_v15 = vadd.f32 %v7855_v9, %v570_v13 }
  0xd0   : > { %v650_v16 = vmax.f32 %v571_v15, 0.0  ;;  %6461 = vmatmul.msk.bf16.gmra.mxu0 %vm512_vm0, %v7139_v11 }
  0xd2   : > { %v682_v18 = vpack.c.bf16 %v650_v16, %v650_v16 }
  0xd4   : > { %v839_v20 = vshrl.u32 %v682_v18, 16  ;;  %v842_v25 = vshll.u32 %v682_v18, 16 }
  0xd5   : > { %v572_v23 = vpop.f32.mrf.mxu0 }
  0xd6   : > { %v841_v24 = vrot.slane %v839_v20, 7  ;;  %v573_v26 = vadd.f32 %v7855_v9, %v572_v23 }
  0xd8   : > { %v844_v29 = vor.u32 %v842_v25, %v841_v24  ;;  %v651_v30 = vmax.f32 %v573_v26, 0.0  ;;  %v845_v44 = vrot.slane %v841_v24, 4 }
  0xda   : > { %v1162_v32 = vsel %vm7867_vm13, %v844_v29, %v1161_v28  ;;  %v683_v33 = vpack.c.bf16 %v651_v30, %v651_v30 }
  0xdb   : > { %1163 = vst [vmem:[#allocation2 + $0xc] sm:$0xf] %v1162_v32  ;;  %v1172_v32 = vld [vmem:[#allocation2 + $0x20] sm:$0x1] }
  0xdc   : > { %v847_v35 = vshrl.u32 %v683_v33, 16  ;;  %v850_v39 = vshll.u32 %v683_v33, 16 }
  0xdd   : > { %v575_v37 = vpop.f32.mrf.mxu0 }
  0xde   : > { %v849_v38 = vrot.slane %v847_v35, 7  ;;  %v576_v41 = vadd.f32 %v7855_v9, %v575_v37 }
  0xe0   : > { %v852_v45 = vor.u32 %v850_v39, %v849_v38  ;;  %v854_v46 = vrot.slane %v849_v38, 4  ;;  %v652_v47 = vmax.f32 %v576_v41, 0.0  ;;  %6462 = vmatmul.msk.bf16.gmra.mxu0 %vm512_vm0, %v7140_v36  ;;  %v795_v36 = vsel %vm7815_vm6, 0, %v794_v21 }
  0xe1   : > { %796 = vst [vmem:[#allocation2 + $0x38] sm:$0x1] %v795_v36  ;;  %v1179_v36 = vld [vmem:[#allocation2 + $0x2c] sm:$0x1] }
  0xe2   : > { %v853_v48 = vsel %vm7878_vm15, %v845_v44, %v852_v45  ;;  %v1166_v49 = vsel %vm7810_vm4, %v854_v46, %v1165_v43  ;;  %v684_v50 = vpack.c.bf16 %v652_v47, %v652_v47  ;;  %v1275_v51 = vld [vmem:[#allocation2 + $0xc] sm:$0xf] }
  0xe3   : > { %1164 = vst.msk [vmem:[#allocation2 + $0x10] sm:$0xf] %vm714_vm1, %v853_v48  ;;  %v1357_v53 = vshrl.u32 %v1275_v51, 16  ;;  %v1360_v55 = vshll.u32 %v1275_v51, 16  ;;  %v2176_v1 = vld [vmem:[#allocation2 + $0xc] sm:$0xe] }
  0xe4   : > { %1167 = vst [vmem:[#allocation2 + $0x14] sm:$0x1] %v1166_v49  ;;  %v856_v54 = vshrl.u32 %v684_v50, 16  ;;  %v859_v61 = vshll.u32 %v684_v50, 16  ;;  %v6598_v11 = vrot.slane %v2176_v1, 9 }
  0xe5   : > { %v577_v57 = vpop.f32.mrf.mxu0  ;;  %v1359_v59 = vrot.slane %v1357_v53, 4  ;;  %v1362_v63 = vrot.slane %v1360_v55, 5  ;;  %v741_v50 = vld [vmem:[#allocation2 + $0x3c] sm:$0x1] }
  0xe6   : > { %v858_v60 = vrot.slane %v856_v54, 7  ;;  %v578_v62 = vadd.f32 %v7855_v9, %v577_v57  ;;  %v742_v56 = vsel %vm7810_vm4, 0, %v741_v50 }
  0xe7   : > { %v1363_v4 = vor.u32 %v1362_v63, %v1359_v59  ;;  %743 = vst [vmem:[#allocation2 + $0x3c] sm:$0x1] %v742_v56 }
  0xe8   : > { %v861_v2 = vor.u32 %v859_v61, %v858_v60  ;;  %v653_v3 = vmax.f32 %v578_v62, 0.0  ;;  %v862_v17 = vrot.slane %v858_v60, 4 }
  0xe9   : > { %v1364_v19 = vrot.slane %v1363_v4, 4 }
  0xea   : > { %v1169_v5 = vsel %vm7867_vm13, %v861_v2, %v1168_v0  ;;  %v685_v6 = vpack.c.bf16 %v653_v3, %v653_v3  ;;  %v7152_v7 = vld [vmem:[#allocation2 + $0xc] sm:$0xff]  ;;  %v1175_v3 = vld [vmem:[#allocation2 + $0x24] sm:$0xf] }
  0xeb   : > { %v1276_v10 = vld [vmem:[#allocation2 + $0x10] sm:$0xf]  ;;  %1170 = vst [vmem:[#allocation2 + $0x18] sm:$0xf] %v1169_v5  ;;  %v1314_v13 = vld [vmem:[#allocation2 + $0x14] sm:$0x1]  ;;  %6582 = vmatmul.msk.bf16.gmra.mxu2 %vm512_vm0, %v7152_v7 }
  0xec   : > { %v2235_v15 = vrot.slane %v1276_v10, 5  ;;  %v1366_v16 = vshll.u32 %v1276_v10, 16  ;;  %v864_v18 = vshrl.u32 %v685_v6, 16  ;;  %v1370_v20 = vshrl.u32 %v1276_v10, 16 }
  0xed   : > { %v580_v22 = vpop.f32.mrf.mxu0  ;;  %v2238_v25 = vrot.slane %v1314_v13, 5  ;;  %v867_v29 = vshll.u32 %v685_v6, 16  ;;  %v1376_v35 = vshll.u32 %v1314_v13, 16 }
  0xee   : > { %v2236_v23 = vsel %vm7827_vm9, %v6598_v11, %v2235_v15  ;;  %v2237_v24 = vrot.slane %v2235_v15, 4  ;;  %v1368_v26 = vrot.slane %v1366_v16, 5  ;;  %v866_v28 = vrot.slane %v864_v18, 7  ;;  %v7142_v15 = vld [vmem:[%s7779_s15 + $0x58] sm:$0xff] }
  0xef   : > { %v581_v30 = vadd.f32 %v7855_v9, %v580_v22  ;;  %v1372_v31 = vrot.slane %v1370_v20, 4  ;;  %v2349_v34 = vunpack.c.l.b16 %v2236_v23  ;;  %v1378_v52 = vrot.slane %v1376_v35, 5 }
  0xf0   : > { %v2239_v33 = vsel %vm7827_vm9, %v2237_v24, %v2238_v25  ;;  %v869_v37 = vor.u32 %v867_v29, %v866_v28  ;;  %v871_v38 = vrot.slane %v866_v28, 4  ;;  %6463 = vmatmul.msk.bf16.gmra.mxu0 %vm512_vm0, %v7141_v8  ;;  %v1369_v43 = vsel %vm7838_vm12, %v1364_v19, %v1368_v26  ;;  %v797_v25 = vld [vmem:[#allocation2 + $0x44] sm:$0x1] }
  0xf1   : > { %v654_v39 = vmax.f32 %v581_v30, 0.0  ;;  %v2350_v41 = vunpack.c.l.b16 %v2239_v33  ;;  %v1373_v44 = vor.u32 %v1372_v31, %v1368_v26  ;;  %v1727_v60 = vunpack.c.l.b16 %v1369_v43 }
  0xf2   : > { %v870_v45 = vsel %vm7878_vm15, %v862_v17, %v869_v37  ;;  %v1173_v46 = vsel %vm7810_vm4, %v871_v38, %v1172_v32  ;;  %v1277_v49 = vld [vmem:[#allocation2 + $0x18] sm:$0xf] }
  0xf3   : > { %v686_v47 = vpack.c.bf16 %v654_v39, %v654_v39  ;;  %v2380_v48 = vpack.c.b16 %v2350_v41, %v2349_v34  ;;  %1171 = vst.msk [vmem:[#allocation2 + $0x1c] sm:$0xf] %vm714_vm1, %v870_v45  ;;  %v1374_v51 = vrot.slane %v1373_v44, 4  ;;  %v1381_v53 = vshrl.u32 %v1277_v49, 16  ;;  %v2177_v4 = vld [vmem:[#allocation2 + $0x18] sm:$0xe] }
  0xf4   : > { %v1384_v54 = vshll.u32 %v1277_v49, 16  ;;  %1174 = vst [vmem:[#allocation2 + $0x20] sm:$0x1] %v1173_v46  ;;  %v6599_v17 = vrot.slane %v2177_v4, 9  ;;  %v798_v41 = vsel %vm7815_vm6, 0, %v797_v25 }
  0xf5   : > { %v873_v55 = vshrl.u32 %v686_v47, 16  ;;  %6630 = vmatmul.msk.bf16.gmra.mxu3 %vm512_vm0, %v2380_v48  ;;  %v582_v57 = vpop.f32.mrf.mxu0  ;;  %v1379_v59 = vsel %vm7838_vm12, %v1374_v51, %v1378_v52  ;;  %v1383_v61 = vrot.slane %v1381_v53, 4  ;;  %v876_v0 = vshll.u32 %v686_v47, 16  ;;  %799 = vst [vmem:[#allocation2 + $0x44] sm:$0x1] %v798_v41 }
  0xf6   : > { %v1386_v62 = vrot.slane %v1384_v54, 5  ;;  %v583_v1 = vadd.f32 %v7855_v9, %v582_v57  ;;  %v1728_v2 = vunpack.c.l.b16 %v1379_v59  ;;  %v744_v54 = vld [vmem:[#allocation2 + $0x48] sm:$0x1]  ;;  %v1186_v41 = vld [vmem:[#allocation2 + $0x38] sm:$0x1] }
  0xf7   : > { %v875_v63 = vrot.slane %v873_v55, 7 }
  0xf8   : > { %v655_v6 = vmax.f32 %v583_v1, 0.0  ;;  %v1758_v7 = vpack.c.b16 %v1728_v2, %v1727_v60  ;;  %v1387_v8 = vor.u32 %v1386_v62, %v1383_v61  ;;  %v745_v61 = vsel %vm7810_vm4, 0, %v744_v54 }
  0xf9   : > { %v878_v5 = vor.u32 %v876_v0, %v875_v63  ;;  %v879_v21 = vrot.slane %v875_v63, 4  ;;  %746 = vst [vmem:[#allocation2 + $0x48] sm:$0x1] %v745_v61 }
  0xfa   : > { %v687_v11 = vpack.c.bf16 %v655_v6, %v655_v6  ;;  %6486 = vmatmul.msk.bf16.gmra.mxu1 %vm512_vm0, %v1758_v7  ;;  %v7153_v13 = vld [vmem:[#allocation2 + $0x18] sm:$0xff]  ;;  %v1388_v23 = vrot.slane %v1387_v8, 4  ;;  %v1182_v7 = vld [vmem:[#allocation2 + $0x30] sm:$0xf] }
  0xfb   : > { %v1176_v10 = vsel %vm7867_vm13, %v878_v5, %v1175_v3  ;;  %v1278_v16 = vld [vmem:[#allocation2 + $0x1c] sm:$0xf]  ;;  %v1315_v18 = vld [vmem:[#allocation2 + $0x20] sm:$0x1]  ;;  %6583 = vmatmul.msk.bf16.gmra.mxu2 %vm512_vm0, %v7153_v13 }
  0xfc   : > { %1177 = vst [vmem:[#allocation2 + $0x24] sm:$0xf] %v1176_v10  ;;  %v2242_v19 = vrot.slane %v1278_v16, 5  ;;  %v1390_v20 = vshll.u32 %v1278_v16, 16  ;;  %v881_v22 = vshrl.u32 %v687_v11, 16  ;;  %v1394_v24 = vshrl.u32 %v1278_v16, 16 }
  0xfd   : > { %v585_v26 = vpop.f32.mrf.mxu0  ;;  %v2245_v30 = vrot.slane %v1315_v18, 5  ;;  %v884_v33 = vshll.u32 %v687_v11, 16  ;;  %v1400_v39 = vshll.u32 %v1315_v18, 16 }
  0xfe   : > { %v2243_v28 = vsel %vm7827_vm9, %v6599_v17, %v2242_v19  ;;  %v2244_v29 = vrot.slane %v2242_v19, 4  ;;  %v1392_v31 = vrot.slane %v1390_v20, 5  ;;  %v883_v32 = vrot.slane %v881_v22, 7  ;;  %v7143_v19 = vld [vmem:[%s7779_s15 + $0x60] sm:$0xff] }
  0xff   : > { %v586_v34 = vadd.f32 %v7855_v9, %v585_v26  ;;  %v1396_v35 = vrot.slane %v1394_v24, 4  ;;  %v2351_v38 = vunpack.c.l.b16 %v2243_v28  ;;  %v1402_v56 = vrot.slane %v1400_v39, 5 }
 0x100   : > { %v2246_v37 = vsel %vm7827_vm9, %v2244_v29, %v2245_v30  ;;  %v886_v43 = vor.u32 %v884_v33, %v883_v32  ;;  %v888_v44 = vrot.slane %v883_v32, 4  ;;  %6464 = vmatmul.msk.bf16.gmra.mxu0 %vm512_vm0, %v7142_v15  ;;  %v1393_v47 = vsel %vm7838_vm12, %v1388_v23, %v1392_v31  ;;  %v800_v30 = vld [vmem:[#allocation2 + $0x50] sm:$0x1] }
 0x101   : > { %v656_v45 = vmax.f32 %v586_v34, 0.0  ;;  %v2352_v46 = vunpack.c.l.b16 %v2246_v37  ;;  %v1397_v48 = vor.u32 %v1396_v35, %v1392_v31  ;;  %v1729_v0 = vunpack.c.l.b16 %v1393_v47 }
 0x102   : > { %v887_v49 = vsel %vm7878_vm15, %v879_v21, %v886_v43  ;;  %v1180_v50 = vsel %vm7810_vm4, %v888_v44, %v1179_v36 }
 0x103   : > { %v688_v51 = vpack.c.bf16 %v656_v45, %v656_v45  ;;  %v2381_v52 = vpack.c.b16 %v2352_v46, %v2351_v38  ;;  %v1279_v53 = vld [vmem:[#allocation2 + $0x24] sm:$0xf]  ;;  %1178 = vst.msk [vmem:[#allocation2 + $0x28] sm:$0xf] %vm714_vm1, %v887_v49  ;;  %v1398_v55 = vrot.slane %v1397_v48, 4  ;;  %v801_v46 = vsel %vm7815_vm6, 0, %v800_v30 }
 0x104   : > { %v1405_v57 = vshrl.u32 %v1279_v53, 16  ;;  %v1408_v59 = vshll.u32 %v1279_v53, 16  ;;  %1181 = vst [vmem:[#allocation2 + $0x2c] sm:$0x1] %v1180_v50  ;;  %v2178_v8 = vld [vmem:[#allocation2 + $0x24] sm:$0xe] }
 0x105   : > { %v890_v60 = vshrl.u32 %v688_v51, 16  ;;  %6631 = vmatmul.msk.bf16.gmra.mxu3 %vm512_vm0, %v2381_v52  ;;  %v587_v62 = vpop.f32.mrf.mxu0  ;;  %v1403_v63 = vsel %vm7838_vm12, %v1398_v55, %v1402_v56  ;;  %v893_v4 = vshll.u32 %v688_v51, 16  ;;  %v6600_v21 = vrot.slane %v2178_v8, 9  ;;  %802 = vst [vmem:[#allocation2 + $0x50] sm:$0x1] %v801_v46 }
 0x106   : > { %v1407_v1 = vrot.slane %v1405_v57, 4  ;;  %v1410_v2 = vrot.slane %v1408_v59, 5  ;;  %v588_v5 = vadd.f32 %v7855_v9, %v587_v62  ;;  %v1730_v6 = vunpack.c.l.b16 %v1403_v63  ;;  %v747_v59 = vld [vmem:[#allocation2 + $0x54] sm:$0x1] }
 0x107   : > { %v892_v3 = vrot.slane %v890_v60, 7  ;;  %v748_v8 = vsel %vm7810_vm4, 0, %v747_v59 }
 0x108   : > { %v657_v11 = vmax.f32 %v588_v5, 0.0  ;;  %v1759_v13 = vpack.c.b16 %v1730_v6, %v1729_v0  ;;  %v1411_v15 = vor.u32 %v1410_v2, %v1407_v1  ;;  %v7197_v2 = vld [vmem:[#allocation8 + $0x70] sm:$0xff]  ;;  %749 = vst [vmem:[#allocation2 + $0x54] sm:$0x1] %v748_v8 }
 0x109   : > { %v895_v10 = vor.u32 %v893_v4, %v892_v3  ;;  %v896_v25 = vrot.slane %v892_v3, 4  ;;  %v7201_v3 = vld [vmem:[#allocation8 + $0x90] sm:$0xff]  ;;  %2786 = vmatpush.bf16.msrb.mxu0 %v7197_v2 }
 0x10a   : > { %v689_v17 = vpack.c.bf16 %v657_v11, %v657_v11  ;;  %6487 = vmatmul.msk.bf16.gmra.mxu1 %vm512_vm0, %v1759_v13  ;;  %v7154_v18 = vld [vmem:[#allocation2 + $0x24] sm:$0xff]  ;;  %v1412_v28 = vrot.slane %v1411_v15, 4 }
 0x10b   : > { %v1183_v16 = vsel %vm7867_vm13, %v895_v10, %v1182_v7  ;;  %v1280_v20 = vld [vmem:[#allocation2 + $0x28] sm:$0xf]  ;;  %v1316_v22 = vld [vmem:[#allocation2 + $0x2c] sm:$0x1]  ;;  %6584 = vmatmul.msk.bf16.gmra.mxu2 %vm512_vm0, %v7154_v18  ;;  %3468 = vmatpush.bf16.msrb.mxu1 %v7201_v3 }
 0x10c   : > { %1184 = vst [vmem:[#allocation2 + $0x30] sm:$0xf] %v1183_v16  ;;  %v2249_v23 = vrot.slane %v1280_v20, 5  ;;  %v1414_v24 = vshll.u32 %v1280_v20, 16  ;;  %v898_v26 = vshrl.u32 %v689_v17, 16  ;;  %v1418_v29 = vshrl.u32 %v1280_v20, 16 }
 0x10d   : > { %v590_v31 = vpop.f32.mrf.mxu0  ;;  %v2252_v34 = vrot.slane %v1316_v22, 5  ;;  %v901_v37 = vshll.u32 %v689_v17, 16  ;;  %v1424_v45 = vshll.u32 %v1316_v22, 16  ;;  %v1189_v16 = vld [vmem:[#allocation2 + $0x3c] sm:$0xf] }
 0x10e   : > { %v2250_v32 = vsel %vm7827_vm9, %v6600_v21, %v2249_v23  ;;  %v2251_v33 = vrot.slane %v2249_v23, 4  ;;  %v1416_v35 = vrot.slane %v1414_v24, 5  ;;  %v900_v36 = vrot.slane %v898_v26, 7 }
 0x10f   : > { %v591_v38 = vadd.f32 %v7855_v9, %v590_v31  ;;  %v1420_v39 = vrot.slane %v1418_v29, 4  ;;  %v2353_v44 = vunpack.c.l.b16 %v2250_v32  ;;  %v1426_v61 = vrot.slane %v1424_v45, 5 }
 0x110   : > { %v2253_v43 = vsel %vm7827_vm9, %v2251_v33, %v2252_v34  ;;  %v903_v47 = vor.u32 %v901_v37, %v900_v36  ;;  %v905_v48 = vrot.slane %v900_v36, 4  ;;  %6465 = vmatmul.msk.bf16.gmra.mxu0 %vm512_vm0, %v7143_v19  ;;  %v1417_v51 = vsel %vm7838_vm12, %v1412_v28, %v1416_v35  ;;  %v803_v36 = vld [vmem:[#allocation2 + $0x5c] sm:$0x1] }
 0x111   : > { %v658_v49 = vmax.f32 %v591_v38, 0.0  ;;  %v2354_v50 = vunpack.c.l.b16 %v2253_v43  ;;  %v1421_v52 = vor.u32 %v1420_v39, %v1416_v35  ;;  %v1731_v1 = vunpack.c.l.b16 %v1417_v51 }
 0x112   : > { %v904_v53 = vsel %vm7878_vm15, %v896_v25, %v903_v47  ;;  %v1187_v54 = vsel %vm7810_vm4, %v905_v48, %v1186_v41  ;;  %v7144_v25 = vld [vmem:[%s7779_s15 + $0x68] sm:$0xff] }
 0x113   : > { %v690_v55 = vpack.c.bf16 %v658_v49, %v658_v49  ;;  %v2382_v56 = vpack.c.b16 %v2354_v50, %v2353_v44  ;;  %v1281_v57 = vld [vmem:[#allocation2 + $0x30] sm:$0xf]  ;;  %1185 = vst.msk [vmem:[#allocation2 + $0x34] sm:$0xf] %vm714_vm1, %v904_v53  ;;  %v1422_v60 = vrot.slane %v1421_v52, 4  ;;  %v804_v52 = vsel %vm7815_vm6, 0, %v803_v36 }
 0x114   : > { %v1429_v62 = vshrl.u32 %v1281_v57, 16  ;;  %v1432_v63 = vshll.u32 %v1281_v57, 16  ;;  %1188 = vst [vmem:[#allocation2 + $0x38] sm:$0x1] %v1187_v54  ;;  %v2179_v17 = vld [vmem:[#allocation2 + $0x30] sm:$0xe] }
 0x115   : > { %v907_v0 = vshrl.u32 %v690_v55, 16  ;;  %6632 = vmatmul.msk.bf16.gmra.mxu3 %vm512_vm0, %v2382_v56  ;;  %v592_v4 = vpop.f32.mrf.mxu0  ;;  %v1427_v5 = vsel %vm7838_vm12, %v1422_v60, %v1426_v61  ;;  %v910_v11 = vshll.u32 %v690_v55, 16  ;;  %v6601_v28 = vrot.slane %v2179_v17, 9  ;;  %v1193_v48 = vld [vmem:[#allocation2 + $0x44] sm:$0x1] }
 0x116   : > { %v1431_v6 = vrot.slane %v1429_v62, 4  ;;  %v1434_v7 = vrot.slane %v1432_v63, 5  ;;  %v593_v13 = vadd.f32 %v7855_v9, %v592_v4  ;;  %v1732_v15 = vunpack.c.l.b16 %v1427_v5  ;;  %805 = vst [vmem:[#allocation2 + $0x5c] sm:$0x1] %v804_v52 }
 0x117   : > { %v909_v10 = vrot.slane %v907_v0, 7 }
 0x118   : > { %v659_v19 = vmax.f32 %v593_v13, 0.0  ;;  %v1760_v20 = vpack.c.b16 %v1732_v15, %v1731_v1  ;;  %v1435_v21 = vor.u32 %v1434_v7, %v1431_v6  ;;  %v750_v1 = vld [vmem:[#allocation2 + $0x60] sm:$0x1] }
 0x119   : > { %v912_v18 = vor.u32 %v910_v11, %v909_v10  ;;  %v913_v32 = vrot.slane %v909_v10, 4  ;;  %v751_v7 = vsel %vm7810_vm4, 0, %v750_v1 }
 0x11a   : > { %v691_v23 = vpack.c.bf16 %v659_v19, %v659_v19  ;;  %6488 = vmatmul.msk.bf16.gmra.mxu1 %vm512_vm0, %v1760_v20  ;;  %v7155_v24 = vld [vmem:[#allocation2 + $0x30] sm:$0xff]  ;;  %v1436_v34 = vrot.slane %v1435_v21, 4  ;;  %752 = vst [vmem:[#allocation2 + $0x60] sm:$0x1] %v751_v7  ;;  %v1196_v20 = vld [vmem:[#allocation2 + $0x48] sm:$0xf] }
 0x11b   : > { %v1190_v22 = vsel %vm7867_vm13, %v912_v18, %v1189_v16  ;;  %v1282_v26 = vld [vmem:[#allocation2 + $0x34] sm:$0xf]  ;;  %v1317_v29 = vld [vmem:[#allocation2 + $0x38] sm:$0x1]  ;;  %6585 = vmatmul.msk.bf16.gmra.mxu2 %vm512_vm0, %v7155_v24  ;;  %v753_v7 = vld [vmem:[#allocation2 + $0x6c] sm:$0x1] }
 0x11c   : > { %1191 = vst [vmem:[#allocation2 + $0x3c] sm:$0xf] %v1190_v22  ;;  %v2256_v30 = vrot.slane %v1282_v26, 5  ;;  %v1438_v31 = vshll.u32 %v1282_v26, 16  ;;  %v915_v33 = vshrl.u32 %v691_v23, 16  ;;  %v1442_v35 = vshrl.u32 %v1282_v26, 16 }
 0x11d   : > { %v595_v37 = vpop.f32.mrf.mxu0  ;;  %v2259_v41 = vrot.slane %v1317_v29, 5  ;;  %v918_v45 = vshll.u32 %v691_v23, 16  ;;  %v1448_v51 = vshll.u32 %v1317_v29, 16  ;;  %v7196_v26 = vld [vmem:[#allocation8 + $0x68] sm:$0xff]  ;;  %v7209_v14 = vld [vmem:[#allocation2 + $0x30] sm:$0xff] }
 0x11e   : > { %v2257_v38 = vsel %vm7827_vm9, %v6601_v28, %v2256_v30  ;;  %v2258_v39 = vrot.slane %v2256_v30, 4  ;;  %v1440_v43 = vrot.slane %v1438_v31, 5  ;;  %v917_v44 = vrot.slane %v915_v33, 7  ;;  %v7145_v31 = vld [vmem:[%s7779_s15 + $0x70] sm:$0xff]  ;;  %2787 = vmatpush.bf16.msrb.mxu0 %v7196_v26  ;;  %v1203_v26 = vld [vmem:[#allocation2 + $0x54] sm:$0xf] }
 0x11f   : > { %v596_v46 = vadd.f32 %v7855_v9, %v595_v37  ;;  %v1444_v47 = vrot.slane %v1442_v35, 4  ;;  %v2355_v50 = vunpack.c.l.b16 %v2257_v38  ;;  %v1450_v3 = vrot.slane %v1448_v51, 5 }
 0x120   : > { %v2260_v49 = vsel %vm7827_vm9, %v2258_v39, %v2259_v41  ;;  %v920_v53 = vor.u32 %v918_v45, %v917_v44  ;;  %v922_v54 = vrot.slane %v917_v44, 4  ;;  %6466 = vmatmul.msk.bf16.gmra.mxu0 %vm512_vm0, %v7144_v25  ;;  %v1441_v57 = vsel %vm7838_vm12, %v1436_v34, %v1440_v43 }
 0x121   : > { %v660_v55 = vmax.f32 %v596_v46, 0.0  ;;  %v2356_v56 = vunpack.c.l.b16 %v2260_v49  ;;  %v1445_v59 = vor.u32 %v1444_v47, %v1440_v43  ;;  %v1733_v11 = vunpack.c.l.b16 %v1441_v57  ;;  %v806_v43 = vld [vmem:[#allocation2 + $0x68] sm:$0x1]  ;;  %v7195_v49 = vld [vmem:[#allocation8 + $0x60] sm:$0xff] }
 0x122   : > { %v921_v60 = vsel %vm7878_vm15, %v913_v32, %v920_v53  ;;  %v1194_v61 = vsel %vm7810_vm4, %v922_v54, %v1193_v48  ;;  %v1200_v54 = vld [vmem:[#allocation2 + $0x50] sm:$0x1]  ;;  %2788 = vmatpush.bf16.msrb.mxu0 %v7195_v49 }
 0x123   : > { %v692_v62 = vpack.c.bf16 %v660_v55, %v660_v55  ;;  %v2383_v63 = vpack.c.b16 %v2356_v56, %v2355_v50  ;;  %v1283_v0 = vld [vmem:[#allocation2 + $0x3c] sm:$0xf]  ;;  %1192 = vst.msk [vmem:[#allocation2 + $0x40] sm:$0xf] %vm714_vm1, %v921_v60  ;;  %v1446_v2 = vrot.slane %v1445_v59, 4  ;;  %v807_v59 = vsel %vm7815_vm6, 0, %v806_v43 }
 0x124   : > { %v1453_v4 = vshrl.u32 %v1283_v0, 16  ;;  %v1456_v5 = vshll.u32 %v1283_v0, 16  ;;  %1195 = vst [vmem:[#allocation2 + $0x44] sm:$0x1] %v1194_v61  ;;  %v2180_v21 = vld [vmem:[#allocation2 + $0x3c] sm:$0xe] }
 0x125   : > { %v924_v6 = vshrl.u32 %v692_v62, 16  ;;  %6633 = vmatmul.msk.bf16.gmra.mxu3 %vm512_vm0, %v2383_v63  ;;  %v597_v8 = vpop.f32.mrf.mxu0  ;;  %v1451_v10 = vsel %vm7838_vm12, %v1446_v2, %v1450_v3  ;;  %v927_v17 = vshll.u32 %v692_v62, 16  ;;  %v6602_v33 = vrot.slane %v2180_v21, 9  ;;  %808 = vst [vmem:[#allocation2 + $0x68] sm:$0x1] %v807_v59 }
 0x126   : > { %v1455_v13 = vrot.slane %v1453_v4, 4  ;;  %v1458_v15 = vrot.slane %v1456_v5, 5  ;;  %v598_v18 = vadd.f32 %v7855_v9, %v597_v8  ;;  %v1734_v19 = vunpack.c.l.b16 %v1451_v10  ;;  %v1207_v59 = vld [vmem:[#allocation2 + $0x5c] sm:$0x1] }
 0x127   : > { %v926_v16 = vrot.slane %v924_v6, 7 }
 0x128   : > { %v661_v23 = vmax.f32 %v598_v18, 0.0  ;;  %v1761_v24 = vpack.c.b16 %v1734_v19, %v1733_v11  ;;  %v1459_v25 = vor.u32 %v1458_v15, %v1455_v13 }
 0x129   : > { %v929_v22 = vor.u32 %v927_v17, %v926_v16  ;;  %v930_v37 = vrot.slane %v926_v16, 4  ;;  %v754_v16 = vsel %vm7810_vm4, 0, %v753_v7 }
 0x12a   : > { %v693_v29 = vpack.c.bf16 %v661_v23, %v661_v23  ;;  %6489 = vmatmul.msk.bf16.gmra.mxu1 %vm512_vm0, %v1761_v24  ;;  %v7156_v30 = vld [vmem:[#allocation2 + $0x3c] sm:$0xff]  ;;  %v1460_v39 = vrot.slane %v1459_v25, 4  ;;  %755 = vst [vmem:[#allocation2 + $0x6c] sm:$0x1] %v754_v16 }
 0x12b   : > { %v1197_v28 = vsel %vm7867_vm13, %v929_v22, %v1196_v20  ;;  %v1284_v32 = vld [vmem:[#allocation2 + $0x40] sm:$0xf]  ;;  %v1318_v34 = vld [vmem:[#allocation2 + $0x44] sm:$0x1]  ;;  %6586 = vmatmul.msk.bf16.gmra.mxu2 %vm512_vm0, %v7156_v30 }
 0x12c   : > { %1198 = vst [vmem:[#allocation2 + $0x48] sm:$0xf] %v1197_v28  ;;  %v2263_v35 = vrot.slane %v1284_v32, 5  ;;  %v1462_v36 = vshll.u32 %v1284_v32, 16  ;;  %v932_v38 = vshrl.u32 %v693_v29, 16  ;;  %v1466_v41 = vshrl.u32 %v1284_v32, 16 }
 0x12d   : > { %v600_v44 = vpop.f32.mrf.mxu0  ;;  %v2266_v47 = vrot.slane %v1318_v34, 5  ;;  %v935_v51 = vshll.u32 %v693_v29, 16  ;;  %v1472_v57 = vshll.u32 %v1318_v34, 16  ;;  %v7210_v12 = vld [vmem:[#allocation2 + $0x3c] sm:$0xff] }
 0x12e   : > { %v2264_v45 = vsel %vm7827_vm9, %v6602_v33, %v2263_v35  ;;  %v2265_v46 = vrot.slane %v2263_v35, 4  ;;  %v1464_v48 = vrot.slane %v1462_v36, 5  ;;  %v934_v50 = vrot.slane %v932_v38, 7 }
 0x12f   : > { %v601_v52 = vadd.f32 %v7855_v9, %v600_v44  ;;  %v1468_v53 = vrot.slane %v1466_v41, 4  ;;  %v2357_v56 = vunpack.c.l.b16 %v2264_v45  ;;  %v1474_v10 = vrot.slane %v1472_v57, 5  ;;  %v7146_v45 = vld [vmem:[%s7779_s15 + $0x78] sm:$0xff] }
 0x130   : > { %v2267_v55 = vsel %vm7827_vm9, %v2265_v46, %v2266_v47  ;;  %v937_v60 = vor.u32 %v935_v51, %v934_v50  ;;  %v939_v61 = vrot.slane %v934_v50, 4  ;;  %6467 = vmatmul.msk.bf16.gmra.mxu0 %vm512_vm0, %v7145_v31  ;;  %v1465_v0 = vsel %vm7838_vm12, %v1460_v39, %v1464_v48 }
 0x131   : > { %v662_v62 = vmax.f32 %v601_v52, 0.0  ;;  %v2358_v63 = vunpack.c.l.b16 %v2267_v55  ;;  %v1469_v1 = vor.u32 %v1468_v53, %v1464_v48  ;;  %v1735_v19 = vunpack.c.l.b16 %v1465_v0  ;;  %v809_v53 = vld [vmem:[#allocation2 + $0x74] sm:$0x1] }
 0x132   : > { %v938_v2 = vsel %vm7878_vm15, %v930_v37, %v937_v60  ;;  %v1201_v3 = vsel %vm7810_vm4, %v939_v61, %v1200_v54 }
 0x133   : > { %v694_v4 = vpack.c.bf16 %v662_v62, %v662_v62  ;;  %v2384_v5 = vpack.c.b16 %v2358_v63, %v2357_v56  ;;  %v1285_v6 = vld [vmem:[#allocation2 + $0x48] sm:$0xf]  ;;  %1199 = vst.msk [vmem:[#allocation2 + $0x4c] sm:$0xf] %vm714_vm1, %v938_v2  ;;  %v1470_v8 = vrot.slane %v1469_v1, 4  ;;  %v810_v63 = vsel %vm7815_vm6, 0, %v809_v53 }
 0x134   : > { %v1477_v11 = vshrl.u32 %v1285_v6, 16  ;;  %v1480_v13 = vshll.u32 %v1285_v6, 16  ;;  %1202 = vst [vmem:[#allocation2 + $0x50] sm:$0x1] %v1201_v3  ;;  %v2181_v28 = vld [vmem:[#allocation2 + $0x48] sm:$0xe] }
 0x135   : > { %v941_v15 = vshrl.u32 %v694_v4, 16  ;;  %6634 = vmatmul.msk.bf16.gmra.mxu3 %vm512_vm0, %v2384_v5  ;;  %v602_v17 = vpop.f32.mrf.mxu0  ;;  %v1475_v18 = vsel %vm7838_vm12, %v1470_v8, %v1474_v10  ;;  %v944_v23 = vshll.u32 %v694_v4, 16  ;;  %v6603_v37 = vrot.slane %v2181_v28, 9  ;;  %811 = vst [vmem:[#allocation2 + $0x74] sm:$0x1] %v810_v63 }
 0x136   : > { %v1479_v20 = vrot.slane %v1477_v11, 4  ;;  %v1482_v21 = vrot.slane %v1480_v13, 5  ;;  %v603_v24 = vadd.f32 %v7855_v9, %v602_v17  ;;  %v1736_v25 = vunpack.c.l.b16 %v1475_v18 }
 0x137   : > { %v943_v22 = vrot.slane %v941_v15, 7 }
 0x138   : > { %v663_v30 = vmax.f32 %v603_v24, 0.0  ;;  %v1762_v31 = vpack.c.b16 %v1736_v25, %v1735_v19  ;;  %v1483_v32 = vor.u32 %v1482_v21, %v1479_v20  ;;  %v756_v20 = vld [vmem:[#allocation2 + $0x78] sm:$0x1] }
 0x139   : > { %v946_v29 = vor.u32 %v944_v23, %v943_v22  ;;  %v947_v43 = vrot.slane %v943_v22, 4  ;;  %v757_v25 = vsel %vm7810_vm4, 0, %v756_v20 }
 0x13a   : > { %v695_v34 = vpack.c.bf16 %v663_v30, %v663_v30  ;;  %6490 = vmatmul.msk.bf16.gmra.mxu1 %vm512_vm0, %v1762_v31  ;;  %v7157_v35 = vld [vmem:[#allocation2 + $0x48] sm:$0xff]  ;;  %v1484_v46 = vrot.slane %v1483_v32, 4  ;;  %758 = vst [vmem:[#allocation2 + $0x78] sm:$0x1] %v757_v25  ;;  %v1210_v31 = vld [vmem:[#allocation2 + $0x60] sm:$0xf] }
 0x13b   : > { %v1204_v33 = vsel %vm7867_vm13, %v946_v29, %v1203_v26  ;;  %v1286_v36 = vld [vmem:[#allocation2 + $0x4c] sm:$0xf]  ;;  %v1319_v38 = vld [vmem:[#allocation2 + $0x50] sm:$0x1]  ;;  %6587 = vmatmul.msk.bf16.gmra.mxu2 %vm512_vm0, %v7157_v35 }
 0x13c   : > { %1205 = vst [vmem:[#allocation2 + $0x54] sm:$0xf] %v1204_v33  ;;  %v2270_v39 = vrot.slane %v1286_v36, 5  ;;  %v1486_v41 = vshll.u32 %v1286_v36, 16  ;;  %v949_v44 = vshrl.u32 %v695_v34, 16  ;;  %v1490_v47 = vshrl.u32 %v1286_v36, 16 }
 0x13d   : > { %v605_v48 = vpop.f32.mrf.mxu0  ;;  %v2273_v51 = vrot.slane %v1319_v38, 5  ;;  %v952_v55 = vshll.u32 %v695_v34, 16  ;;  %v1496_v62 = vshll.u32 %v1319_v38, 16  ;;  %v2095_v38 = vpop.f32.mrf.mxu2 }
 0x13e   : > { %v2271_v49 = vsel %vm7827_vm9, %v6603_v37, %v2270_v39  ;;  %v2272_v50 = vrot.slane %v2270_v39, 4  ;;  %v1488_v52 = vrot.slane %v1486_v41, 5  ;;  %v951_v54 = vrot.slane %v949_v44, 7  ;;  %v1854_v37 = vpop.f32.mrf.mxu1 }
 0x13f   : > { %v606_v56 = vadd.f32 %v7855_v9, %v605_v48  ;;  %v1492_v57 = vrot.slane %v1490_v47, 4  ;;  %v2359_v61 = vunpack.c.l.b16 %v2271_v49  ;;  %v1498_v15 = vrot.slane %v1496_v62, 5 }
 0x140   : > { %v2274_v60 = vsel %vm7827_vm9, %v2272_v50, %v2273_v51  ;;  %v954_v0 = vor.u32 %v952_v55, %v951_v54  ;;  %v956_v1 = vrot.slane %v951_v54, 4  ;;  %6468 = vmatmul.msk.bf16.gmra.mxu0 %vm512_vm0, %v7146_v45  ;;  %v1489_v4 = vsel %vm7838_vm12, %v1484_v46, %v1488_v52  ;;  %v2476_v46 = vpop.f32.mrf.mxu3  ;;  %v812_v55 = vld [vmem:[#allocation2 + $0x80] sm:$0x1] }
 0x141   : > { %v664_v2 = vmax.f32 %v606_v56, 0.0  ;;  %v2360_v3 = vunpack.c.l.b16 %v2274_v60  ;;  %v1493_v5 = vor.u32 %v1492_v57, %v1488_v52  ;;  %v1737_v19 = vunpack.c.l.b16 %v1489_v4  ;;  %v1214_v4 = vld [vmem:[#allocation2 + $0x68] sm:$0x1] }
 0x142   : > { %v955_v6 = vsel %vm7878_vm15, %v947_v43, %v954_v0  ;;  %v1208_v7 = vsel %vm7810_vm4, %v956_v1, %v1207_v59  ;;  %v2096_v39 = vadd.f32 %v2095_v38, %v1854_v37  ;;  %v8057_v0 = vld [vmem:[%s9764_s2] ss:$0 sm:$0xff] }
 0x143   : > { %v696_v8 = vpack.c.bf16 %v664_v2, %v664_v2  ;;  %v2385_v10 = vpack.c.b16 %v2360_v3, %v2359_v61  ;;  %v1287_v11 = vld [vmem:[#allocation2 + $0x54] sm:$0xf]  ;;  %1206 = vst.msk [vmem:[#allocation2 + $0x58] sm:$0xf] %vm714_vm1, %v955_v6  ;;  %v1494_v13 = vrot.slane %v1493_v5, 4  ;;  %v7179_v2 = vld [vmem:[#allocation2 + $0xc] sm:$0xff] }
 0x144   : > { %v1501_v16 = vshrl.u32 %v1287_v11, 16  ;;  %v1504_v17 = vshll.u32 %v1287_v11, 16  ;;  %1209 = vst [vmem:[#allocation2 + $0x5c] sm:$0x1] %v1208_v7  ;;  %v2182_v32 = vld [vmem:[#allocation2 + $0x54] sm:$0xe]  ;;  %v8049_v50 = vadd.f32 %v2476_v46, %v2096_v39 }
 0x145   : > { %v958_v18 = vshrl.u32 %v696_v8, 16  ;;  %6635 = vmatmul.msk.bf16.gmra.mxu3 %vm512_vm0, %v2385_v10  ;;  %v607_v21 = vpop.f32.mrf.mxu0  ;;  %v1499_v22 = vsel %vm7838_vm12, %v1494_v13, %v1498_v15  ;;  %v961_v28 = vshll.u32 %v696_v8, 16  ;;  %v813_v8 = vsel %vm7815_vm6, 0, %v812_v55 }
 0x146   : > { %v1503_v23 = vrot.slane %v1501_v16, 4  ;;  %v1506_v24 = vrot.slane %v1504_v17, 5  ;;  %v608_v29 = vadd.f32 %v7855_v9, %v607_v21  ;;  %v1738_v30 = vunpack.c.l.b16 %v1499_v22  ;;  %814 = vst [vmem:[#allocation2 + $0x80] sm:$0x1] %v813_v8  ;;  %v7180_v8 = vld [vmem:[#allocation2 + $0x18] sm:$0xff] }
 0x147   : > { %v960_v26 = vrot.slane %v958_v18, 7  ;;  %v6604_v9 = vrot.slane %v2182_v32, 9 }
 0x148   : > { %v665_v34 = vmax.f32 %v608_v29, 0.0  ;;  %v1763_v35 = vpack.c.b16 %v1738_v30, %v1737_v19  ;;  %v1507_v36 = vor.u32 %v1506_v24, %v1503_v23  ;;  %v7200_v30 = vld [vmem:[#allocation8 + $0x88] sm:$0xff] }
 0x149   : > { %v963_v33 = vor.u32 %v961_v28, %v960_v26  ;;  %v964_v51 = vrot.slane %v960_v26, 4  ;;  %3469 = vmatpush.bf16.msrb.mxu1 %v7200_v30 }
 0x14a   : > { %v697_v43 = vpack.c.bf16 %v665_v34, %v665_v34  ;;  %6491 = vmatmul.msk.bf16.gmra.mxu1 %vm512_vm0, %v1763_v35  ;;  %v7158_v44 = vld [vmem:[#allocation2 + $0x54] sm:$0xff]  ;;  %v1508_v53 = vrot.slane %v1507_v36, 4  ;;  %v759_v36 = vld [vmem:[#allocation2 + $0x84] sm:$0x1] }
 0x14b   : > { %v1211_v41 = vsel %vm7867_vm13, %v963_v33, %v1210_v31  ;;  %v1288_v45 = vld [vmem:[#allocation2 + $0x58] sm:$0xf]  ;;  %v1320_v47 = vld [vmem:[#allocation2 + $0x5c] sm:$0x1]  ;;  %6588 = vmatmul.msk.bf16.gmra.mxu2 %vm512_vm0, %v7158_v44 }
 0x14c   : > { %1212 = vst [vmem:[#allocation2 + $0x60] sm:$0xf] %v1211_v41  ;;  %v2277_v48 = vrot.slane %v1288_v45, 5  ;;  %v1510_v49 = vshll.u32 %v1288_v45, 16  ;;  %v966_v52 = vshrl.u32 %v697_v43, 16  ;;  %v1514_v54 = vshrl.u32 %v1288_v45, 16 }
 0x14d   : > { %v610_v56 = vpop.f32.mrf.mxu0  ;;  %v2280_v60 = vrot.slane %v1320_v47, 5  ;;  %v969_v63 = vshll.u32 %v697_v43, 16  ;;  %v1520_v7 = vshll.u32 %v1320_v47, 16  ;;  %v760_v41 = vsel %vm7810_vm4, 0, %v759_v36  ;;  %v1217_v43 = vld [vmem:[#allocation2 + $0x6c] sm:$0xf] }
 0x14e   : > { %v2278_v57 = vsel %vm7827_vm9, %v6604_v9, %v2277_v48  ;;  %v2279_v59 = vrot.slane %v2277_v48, 4  ;;  %v1512_v61 = vrot.slane %v1510_v49, 5  ;;  %v968_v62 = vrot.slane %v966_v52, 7  ;;  %761 = vst [vmem:[#allocation2 + $0x84] sm:$0x1] %v760_v41  ;;  %v7226_v36 = vld [vmem:[#allocation8 + $0xd8] sm:$0xff] }
 0x14f   : > { %v611_v1 = vadd.f32 %v8057_v0, %v610_v56  ;;  %v1516_v3 = vrot.slane %v1514_v54, 4  ;;  %v2361_v6 = vunpack.c.l.b16 %v2278_v57  ;;  %v1522_v24 = vrot.slane %v1520_v7, 5  ;;  %4208 = vmatpush.bf16.msrb.mxu3 %v7226_v36 }
 0x150   : > { %v2281_v5 = vsel %vm7827_vm9, %v2279_v59, %v2280_v60  ;;  %v971_v10 = vor.u32 %v969_v63, %v968_v62  ;;  %v973_v11 = vrot.slane %v968_v62, 4  ;;  %6725 = vmatmul.msk.bf16.vlgmr.msrb.gmra.mxu0 %vm512_vm0, %v7179_v2  ;;  %v1513_v16 = vsel %vm7838_vm12, %v1508_v53, %v1512_v61  ;;  %v815_v62 = vld [vmem:[#allocation2 + $0x8c] sm:$0x1] }
 0x151   : > { %v666_v13 = vmax.f32 %v611_v1, 0.0  ;;  %v2362_v15 = vunpack.c.l.b16 %v2281_v5  ;;  %v1517_v17 = vor.u32 %v1516_v3, %v1512_v61  ;;  %v1739_v29 = vunpack.c.l.b16 %v1513_v16 }
 0x152   : > { %v972_v18 = vsel %vm7878_vm15, %v964_v51, %v971_v10  ;;  %v1215_v19 = vsel %vm7810_vm4, %v973_v11, %v1214_v4  ;;  %v1221_v11 = vld [vmem:[#allocation2 + $0x74] sm:$0x1] }
 0x153   : > { %v698_v20 = vpack.c.bf16 %v666_v13, %v666_v13  ;;  %v2386_v21 = vpack.c.b16 %v2362_v15, %v2361_v6  ;;  %v1289_v22 = vld [vmem:[#allocation2 + $0x60] sm:$0xf]  ;;  %1213 = vst.msk [vmem:[#allocation2 + $0x64] sm:$0xf] %vm714_vm1, %v972_v18  ;;  %v1518_v23 = vrot.slane %v1517_v17, 4  ;;  %v816_v17 = vsel %vm7815_vm6, 0, %v815_v62 }
 0x154   : > { %v1525_v25 = vshrl.u32 %v1289_v22, 16  ;;  %v1528_v26 = vshll.u32 %v1289_v22, 16  ;;  %1216 = vst [vmem:[#allocation2 + $0x68] sm:$0x1] %v1215_v19  ;;  %v2183_v44 = vld [vmem:[#allocation2 + $0x60] sm:$0xe] }
 0x155   : > { %v975_v28 = vshrl.u32 %v698_v20, 16  ;;  %6636 = vmatmul.msk.bf16.gmra.mxu3 %vm512_vm0, %v2386_v21  ;;  %v978_v31 = vshll.u32 %v698_v20, 16  ;;  %v612_v32 = vpop.f32.mrf.mxu0  ;;  %v1523_v33 = vsel %vm7838_vm12, %v1518_v23, %v1522_v24  ;;  %v6605_v53 = vrot.slane %v2183_v44, 9  ;;  %817 = vst [vmem:[#allocation2 + $0x8c] sm:$0x1] %v816_v17  ;;  %v8111_v17 = vpop.f32.mrf.mxu1 }
 0x156   : > { %v1527_v34 = vrot.slane %v1525_v25, 4  ;;  %v1530_v35 = vrot.slane %v1528_v26, 5  ;;  %v613_v38 = vadd.f32 %v8057_v0, %v612_v32  ;;  %v1740_v39 = vunpack.c.l.b16 %v1523_v33 }
 0x157   : > { %v977_v37 = vrot.slane %v975_v28, 7 }
 0x158   : > { %v667_v9 = vmax.f32 %v613_v38, 0.0  ;;  %v1764_v46 = vpack.c.b16 %v1740_v39, %v1739_v29  ;;  %v1531_v47 = vor.u32 %v1530_v35, %v1527_v34  ;;  %v7206_v35 = vld [vmem:[#allocation8 + $0xb8] sm:$0xff] }
 0x159   : > { %v980_v45 = vor.u32 %v978_v31, %v977_v37  ;;  %v981_v57 = vrot.slane %v977_v37, 4  ;;  %3893 = vmatpush.bf16.msrb.mxu2 %v7206_v35 }
 0x15a   : > { %v699_v49 = vpack.c.bf16 %v667_v9, %v667_v9  ;;  %6492 = vmatmul.msk.bf16.gmra.mxu1 %vm512_vm0, %v1764_v46  ;;  %v7159_v51 = vld [vmem:[#allocation2 + $0x60] sm:$0xff]  ;;  %v1532_v60 = vrot.slane %v1531_v47, 4 }
 0x15b   : > { %v1218_v48 = vsel %vm7867_vm13, %v980_v45, %v1217_v43  ;;  %v1290_v52 = vld [vmem:[#allocation2 + $0x64] sm:$0xf]  ;;  %v1321_v54 = vld [vmem:[#allocation2 + $0x68] sm:$0x1]  ;;  %6589 = vmatmul.msk.bf16.gmra.mxu2 %vm512_vm0, %v7159_v51  ;;  %v762_v43 = vld [vmem:[#allocation2 + $0x90] sm:$0x1] }
 0x15c   : > { %1219 = vst [vmem:[#allocation2 + $0x6c] sm:$0xf] %v1218_v48  ;;  %v2284_v55 = vrot.slane %v1290_v52, 5  ;;  %v1534_v56 = vshll.u32 %v1290_v52, 16  ;;  %v983_v59 = vshrl.u32 %v699_v49, 16  ;;  %v1538_v61 = vshrl.u32 %v1290_v52, 16  ;;  %v8103_v48 = vpop.f32.mrf.mxu2 }
 0x15d   : > { %v615_v63 = vpop.f32.mrf.mxu0  ;;  %v2287_v3 = vrot.slane %v1321_v54, 5  ;;  %v986_v6 = vshll.u32 %v699_v49, 16  ;;  %v1544_v16 = vshll.u32 %v1321_v54, 16  ;;  %v1224_v45 = vld [vmem:[#allocation2 + $0x78] sm:$0xf]  ;;  %v763_v47 = vsel %vm7810_vm4, 0, %v762_v43 }
 0x15e   : > { %v2285_v1 = vsel %vm7827_vm9, %v6605_v53, %v2284_v55  ;;  %v2286_v2 = vrot.slane %v2284_v55, 4  ;;  %v1536_v4 = vrot.slane %v1534_v56, 5  ;;  %v985_v5 = vrot.slane %v983_v59, 7  ;;  %764 = vst [vmem:[#allocation2 + $0x90] sm:$0x1] %v763_v47 }
 0x15f   : > { %v616_v7 = vadd.f32 %v8057_v0, %v615_v63  ;;  %v1540_v10 = vrot.slane %v1538_v61, 4  ;;  %v2363_v15 = vunpack.c.l.b16 %v2285_v1  ;;  %v1546_v31 = vrot.slane %v1544_v16, 5  ;;  %v765_v47 = vld [vmem:[#allocation2 + $0x9c] sm:$0x1] }
 0x160   : > { %v2288_v13 = vsel %vm7827_vm9, %v2286_v2, %v2287_v3  ;;  %v988_v18 = vor.u32 %v986_v6, %v985_v5  ;;  %v990_v19 = vrot.slane %v985_v5, 4  ;;  %6726 = vmatmul.msk.bf16.gmra.mxu0 %vm512_vm0, %v7180_v8  ;;  %v1537_v22 = vsel %vm7838_vm12, %v1532_v60, %v1536_v4  ;;  %v818_v6 = vld [vmem:[#allocation2 + $0x98] sm:$0x1] }
 0x161   : > { %v668_v20 = vmax.f32 %v616_v7, 0.0  ;;  %v2364_v21 = vunpack.c.l.b16 %v2288_v13  ;;  %v1541_v23 = vor.u32 %v1540_v10, %v1536_v4  ;;  %v1741_v41 = vunpack.c.l.b16 %v1537_v22  ;;  %v8114_v22 = vpop.f32.mrf.mxu3 }
 0x162   : > { %v989_v24 = vsel %vm7878_vm15, %v981_v57, %v988_v18  ;;  %v1222_v25 = vsel %vm7810_vm4, %v990_v19, %v1221_v11  ;;  %v7181_v19 = vld [vmem:[#allocation2 + $0x24] sm:$0xff] }
 0x163   : > { %v700_v26 = vpack.c.bf16 %v668_v20, %v668_v20  ;;  %v2387_v28 = vpack.c.b16 %v2364_v21, %v2363_v15  ;;  %v1291_v29 = vld [vmem:[#allocation2 + $0x6c] sm:$0xf]  ;;  %1220 = vst.msk [vmem:[#allocation2 + $0x70] sm:$0xf] %vm714_vm1, %v989_v24  ;;  %v1542_v30 = vrot.slane %v1541_v23, 4 }
 0x164   : > { %v1549_v32 = vshrl.u32 %v1291_v29, 16  ;;  %1223 = vst [vmem:[#allocation2 + $0x74] sm:$0x1] %v1222_v25  ;;  %v1552_v34 = vshll.u32 %v1291_v29, 16  ;;  %v2184_v49 = vld [vmem:[#allocation2 + $0x6c] sm:$0xe] }
 0x165   : > { %v992_v33 = vshrl.u32 %v700_v26, 16  ;;  %6637 = vmatmul.msk.bf16.gmra.mxu3 %vm512_vm0, %v2387_v28  ;;  %v995_v37 = vshll.u32 %v700_v26, 16  ;;  %v617_v38 = vpop.f32.mrf.mxu0  ;;  %v1547_v39 = vsel %vm7838_vm12, %v1542_v30, %v1546_v31  ;;  %v6606_v61 = vrot.slane %v2184_v49, 9  ;;  %v1228_v21 = vld [vmem:[#allocation2 + $0x80] sm:$0x1] }
 0x166   : > { %v618_v9 = vadd.f32 %v8057_v0, %v617_v38  ;;  %v1742_v46 = vunpack.c.l.b16 %v1547_v39  ;;  %v1551_v51 = vrot.slane %v1549_v32, 4  ;;  %v1554_v55 = vrot.slane %v1552_v34, 5 }
 0x167   : > { %v994_v44 = vrot.slane %v992_v33, 7  ;;  %v819_v28 = vsel %vm7815_vm6, 0, %v818_v6 }
 0x168   : > { %v669_v53 = vmax.f32 %v618_v9, 0.0  ;;  %v1765_v54 = vpack.c.b16 %v1742_v46, %v1741_v41  ;;  %v1555_v4 = vor.u32 %v1554_v55, %v1551_v51  ;;  %820 = vst [vmem:[#allocation2 + $0x98] sm:$0x1] %v819_v28 }
 0x169   : > { %v997_v52 = vor.u32 %v995_v37, %v994_v44  ;;  %v998_v2 = vrot.slane %v994_v44, 4 }
 0x16a   : > { %v701_v57 = vpack.c.bf16 %v669_v53, %v669_v53  ;;  %6493 = vmatmul.msk.bf16.gmra.mxu1 %vm512_vm0, %v1765_v54  ;;  %v7160_v59 = vld [vmem:[#allocation2 + $0x6c] sm:$0xff]  ;;  %v1556_v33 = vrot.slane %v1555_v4, 4 }
 0x16b   : > { %v1225_v56 = vsel %vm7867_vm13, %v997_v52, %v1224_v45  ;;  %v1292_v60 = vld [vmem:[#allocation2 + $0x70] sm:$0xf]  ;;  %v1322_v62 = vld [vmem:[#allocation2 + $0x74] sm:$0x1]  ;;  %6590 = vmatmul.msk.bf16.gmra.mxu2 %vm512_vm0, %v7160_v59  ;;  %v766_v52 = vsel %vm7810_vm4, 0, %v765_v47 }
 0x16c   : > { %1226 = vst [vmem:[#allocation2 + $0x78] sm:$0xf] %v1225_v56  ;;  %v2291_v63 = vrot.slane %v1292_v60, 5  ;;  %v1558_v1 = vshll.u32 %v1292_v60, 16  ;;  %v1000_v3 = vshrl.u32 %v701_v57, 16  ;;  %v1562_v5 = vshrl.u32 %v1292_v60, 16 }
 0x16d   : > { %v620_v7 = vpop.f32.mrf.mxu0  ;;  %v2294_v11 = vrot.slane %v1322_v62, 5  ;;  %v1003_v16 = vshll.u32 %v701_v57, 16  ;;  %v1568_v26 = vshll.u32 %v1322_v62, 16  ;;  %767 = vst [vmem:[#allocation2 + $0x9c] sm:$0x1] %v766_v52 }
 0x16e   : > { %v2292_v8 = vsel %vm7827_vm9, %v6606_v61, %v2291_v63  ;;  %v2293_v10 = vrot.slane %v2291_v63, 4  ;;  %v1560_v13 = vrot.slane %v1558_v1, 5  ;;  %v1002_v15 = vrot.slane %v1000_v3, 7  ;;  %v2100_v23 = vpop.f32.mrf.mxu2  ;;  %v1231_v57 = vld [vmem:[#allocation2 + $0x84] sm:$0xf] }
 0x16f   : > { %v621_v18 = vadd.f32 %v8057_v0, %v620_v7  ;;  %v1564_v20 = vrot.slane %v1562_v5, 4  ;;  %v2365_v25 = vunpack.c.l.b16 %v2292_v8  ;;  %v1570_v43 = vrot.slane %v1568_v26, 5 }
 0x170   : > { %v2295_v24 = vsel %vm7827_vm9, %v2293_v10, %v2294_v11  ;;  %v1005_v29 = vor.u32 %v1003_v16, %v1002_v15  ;;  %v1007_v30 = vrot.slane %v1002_v15, 4  ;;  %6727 = vmatmul.msk.bf16.gmra.mxu0 %vm512_vm0, %v7181_v19  ;;  %v1561_v9 = vsel %vm7838_vm12, %v1556_v33, %v1560_v13  ;;  %v7182_v33 = vld [vmem:[#allocation2 + $0x30] sm:$0xff] }
 0x171   : > { %v670_v31 = vmax.f32 %v621_v18, 0.0  ;;  %v2366_v32 = vunpack.c.l.b16 %v2295_v24  ;;  %v1565_v34 = vor.u32 %v1564_v20, %v1560_v13  ;;  %v1743_v61 = vunpack.c.l.b16 %v1561_v9  ;;  %v821_v24 = vld [vmem:[#allocation2 + $0xa4] sm:$0x1] }
 0x172   : > { %v1006_v35 = vsel %vm7878_vm15, %v998_v2, %v1005_v29  ;;  %v1229_v36 = vsel %vm7810_vm4, %v1007_v30, %v1228_v21 }
 0x173   : > { %v702_v37 = vpack.c.bf16 %v670_v31, %v670_v31  ;;  %v2388_v38 = vpack.c.b16 %v2366_v32, %v2365_v25  ;;  %v1293_v39 = vld [vmem:[#allocation2 + $0x78] sm:$0xf]  ;;  %1227 = vst.msk [vmem:[#allocation2 + $0x7c] sm:$0xf] %vm714_vm1, %v1006_v35  ;;  %v1566_v41 = vrot.slane %v1565_v34, 4 }
 0x174   : > { %v1573_v44 = vshrl.u32 %v1293_v39, 16  ;;  %1230 = vst [vmem:[#allocation2 + $0x80] sm:$0x1] %v1229_v36  ;;  %v1576_v46 = vshll.u32 %v1293_v39, 16  ;;  %v2185_v6 = vld [vmem:[#allocation2 + $0x78] sm:$0xe] }
 0x175   : > { %v1009_v45 = vshrl.u32 %v702_v37, 16  ;;  %6638 = vmatmul.msk.bf16.gmra.mxu3 %vm512_vm0, %v2388_v38  ;;  %v622_v49 = vpop.f32.mrf.mxu0  ;;  %v1571_v51 = vsel %vm7838_vm12, %v1566_v41, %v1570_v43  ;;  %v1012_v54 = vshll.u32 %v702_v37, 16  ;;  %v6607_v20 = vrot.slane %v2185_v6, 9  ;;  %v1235_v37 = vld [vmem:[#allocation2 + $0x8c] sm:$0x1] }
 0x176   : > { %v623_v55 = vadd.f32 %v8057_v0, %v622_v49  ;;  %v1744_v56 = vunpack.c.l.b16 %v1571_v51  ;;  %v1575_v62 = vrot.slane %v1573_v44, 4  ;;  %v2102_v3 = vpop.f32.mrf.mxu2  ;;  %v1578_v4 = vrot.slane %v1576_v46, 5 }
 0x177   : > { %v8133_v53 = vrot.slane %v1009_v45, 7  ;;  %v1859_v59 = vpop.f32.mrf.mxu1  ;;  %v822_v44 = vsel %vm7815_vm6, 0, %v821_v24 }
 0x178   : > { %v2481_v60 = vpop.f32.mrf.mxu3  ;;  %v671_v1 = vmax.f32 %v623_v55, 0.0  ;;  %v2101_v2 = vadd.f32 %v2100_v23, %v1859_v59  ;;  %v1766_v5 = vpack.c.b16 %v1744_v56, %v1743_v61  ;;  %v1579_v21 = vor.u32 %v1578_v4, %v1575_v62  ;;  %823 = vst [vmem:[#allocation2 + $0xa4] sm:$0x1] %v822_v44 }
 0x179   : > { %v1014_v63 = vor.u32 %v1012_v54, %v8133_v53  ;;  %v1015_v36 = vrot.slane %v8133_v53, 4 }
 0x17a   : > { %v703_v8 = vpack.c.bf16 %v671_v1, %v671_v1  ;;  %v8139_v10 = vadd.f32 %v2481_v60, %v2101_v2  ;;  %v7161_v11 = vld [vmem:[#allocation2 + $0x78] sm:$0xff]  ;;  %6494 = vmatmul.msk.bf16.gmra.mxu1 %vm512_vm0, %v1766_v5  ;;  %v1580_v53 = vrot.slane %v1579_v21, 4 }
 0x17b   : > { %v1232_v7 = vsel %vm7867_vm13, %v1014_v63, %v1231_v57  ;;  %v1294_v13 = vld [vmem:[#allocation2 + $0x7c] sm:$0xf]  ;;  %v1323_v15 = vld [vmem:[#allocation2 + $0x80] sm:$0x1]  ;;  %6591 = vmatmul.msk.bf16.gmra.mxu2 %vm512_vm0, %v7161_v11 }
 0x17c   : > { %1233 = vst [vmem:[#allocation2 + $0x84] sm:$0xf] %v1232_v7  ;;  %v2298_v16 = vrot.slane %v1294_v13, 5  ;;  %v1582_v18 = vshll.u32 %v1294_v13, 16  ;;  %v1017_v19 = vshrl.u32 %v703_v8, 16  ;;  %v1586_v23 = vshrl.u32 %v1294_v13, 16 }
 0x17d   : > { %v1020_v25 = vshll.u32 %v703_v8, 16  ;;  %v625_v26 = vpop.f32.mrf.mxu0  ;;  %v2301_v29 = vrot.slane %v1323_v15, 5  ;;  %v1592_v43 = vshll.u32 %v1323_v15, 16  ;;  %v768_v7 = vld [vmem:[#allocation2 + $0xa8] sm:$0x1] }
 0x17e   : > { %v2300_v28 = vrot.slane %v2298_v16, 4  ;;  %v1584_v30 = vrot.slane %v1582_v18, 5  ;;  %v1019_v31 = vrot.slane %v1017_v19, 7  ;;  %v626_v32 = vadd.f32 %v8057_v0, %v625_v26  ;;  %v2105_v49 = vpop.f32.mrf.mxu2 }
 0x17f   : > { %v2299_v34 = vsel %vm7827_vm9, %v6607_v20, %v2298_v16  ;;  %v1588_v35 = vrot.slane %v1586_v23, 4  ;;  %v1861_v38 = vpop.f32.mrf.mxu1  ;;  %v1594_v63 = vrot.slane %v1592_v43, 5  ;;  %v1238_v16 = vld [vmem:[#allocation2 + $0x90] sm:$0xf]  ;;  %v769_v23 = vsel %vm7810_vm4, 0, %v768_v7 }
 0x180   : > { %v2483_v39 = vpop.f32.mrf.mxu3  ;;  %v2302_v41 = vsel %vm7827_vm9, %v2300_v28, %v2301_v29  ;;  %v1022_v45 = vor.u32 %v1020_v25, %v1019_v31  ;;  %v1024_v9 = vrot.slane %v1019_v31, 4  ;;  %v672_v46 = vmax.f32 %v626_v32, 0.0  ;;  %6728 = vmatmul.msk.bf16.gmra.mxu0 %vm512_vm0, %v7182_v33  ;;  %770 = vst [vmem:[#allocation2 + $0xa8] sm:$0x1] %v769_v23 }
 0x181   : > { %v2103_v47 = vadd.f32 %v2102_v3, %v1861_v38  ;;  %v2367_v51 = vunpack.c.l.b16 %v2299_v34  ;;  %v2368_v52 = vunpack.c.l.b16 %v2302_v41  ;;  %v1589_v54 = vor.u32 %v1588_v35, %v1584_v30 }
 0x182   : > { %v1023_v55 = vsel %vm7878_vm15, %v1015_v36, %v1022_v45  ;;  %v1236_v56 = vsel %vm7810_vm4, %v1024_v9, %v1235_v37  ;;  %v704_v57 = vpack.c.bf16 %v672_v46, %v672_v46  ;;  %v1585_v3 = vsel %vm7838_vm12, %v1580_v53, %v1584_v30  ;;  %v824_v9 = vld [vmem:[#allocation2 + $0xb0] sm:$0x1] }
 0x183   : > { %v8156_v59 = vadd.f32 %v2483_v39, %v2103_v47  ;;  %v1295_v60 = vld [vmem:[#allocation2 + $0x84] sm:$0xf]  ;;  %1234 = vst.msk [vmem:[#allocation2 + $0x88] sm:$0xf] %vm714_vm1, %v1023_v55  ;;  %v2389_v61 = vpack.c.b16 %v2368_v52, %v2367_v51  ;;  %v1590_v62 = vrot.slane %v1589_v54, 4  ;;  %v1745_v20 = vunpack.c.l.b16 %v1585_v3  ;;  %v7183_v55 = vld [vmem:[#allocation2 + $0x3c] sm:$0xff] }
 0x184   : > { %v1597_v1 = vshrl.u32 %v1295_v60, 16  ;;  %1237 = vst [vmem:[#allocation2 + $0x8c] sm:$0x1] %v1236_v56  ;;  %v1026_v2 = vshrl.u32 %v704_v57, 16  ;;  %v1600_v4 = vshll.u32 %v1295_v60, 16  ;;  %v1029_v11 = vshll.u32 %v704_v57, 16 }
 0x185   : > { %6639 = vmatmul.msk.bf16.gmra.mxu3 %vm512_vm0, %v2389_v61  ;;  %v627_v5 = vpop.f32.mrf.mxu0  ;;  %v1595_v6 = vsel %vm7838_vm12, %v1590_v62, %v1594_v63  ;;  %v2186_v29 = vld [vmem:[#allocation2 + $0x84] sm:$0xe]  ;;  %v1242_v60 = vld [vmem:[#allocation2 + $0x98] sm:$0x1]  ;;  %v825_v3 = vsel %vm7815_vm6, 0, %v824_v9 }
 0x186   : > { %v8164_v8 = vrot.slane %v1026_v2, 7  ;;  %v628_v13 = vadd.f32 %v8057_v0, %v627_v5  ;;  %v1746_v15 = vunpack.c.l.b16 %v1595_v6  ;;  %v1599_v21 = vrot.slane %v1597_v1, 4  ;;  %v2107_v28 = vpop.f32.mrf.mxu2  ;;  %826 = vst [vmem:[#allocation2 + $0xb0] sm:$0x1] %v825_v3 }
 0x187   : > { %v1864_v18 = vpop.f32.mrf.mxu1  ;;  %v1602_v30 = vrot.slane %v1600_v4, 5  ;;  %v6608_v38 = vrot.slane %v2186_v29, 9 }
 0x188   : > { %v2486_v19 = vpop.f32.mrf.mxu3  ;;  %v1031_v24 = vor.u32 %v1029_v11, %v8164_v8  ;;  %v673_v25 = vmax.f32 %v628_v13, 0.0  ;;  %v2106_v26 = vadd.f32 %v2105_v49, %v1864_v18  ;;  %v1767_v31 = vpack.c.b16 %v1746_v15, %v1745_v20 }
 0x189   : > { %v1032_v41 = vrot.slane %v8164_v8, 4  ;;  %v1603_v44 = vor.u32 %v1602_v30, %v1599_v21 }
 0x18a   : > { %v1239_v32 = vsel %vm7867_vm13, %v1031_v24, %v1238_v16  ;;  %v705_v33 = vpack.c.bf16 %v673_v25, %v673_v25  ;;  %v8172_v34 = vadd.f32 %v2486_v19, %v2106_v26  ;;  %v7162_v35 = vld [vmem:[#allocation2 + $0x84] sm:$0xff]  ;;  %6495 = vmatmul.msk.bf16.gmra.mxu1 %vm512_vm0, %v1767_v31 }
 0x18b   : > { %v1296_v36 = vld [vmem:[#allocation2 + $0x88] sm:$0xf]  ;;  %1240 = vst [vmem:[#allocation2 + $0x90] sm:$0xf] %v1239_v32  ;;  %v1324_v37 = vld [vmem:[#allocation2 + $0x8c] sm:$0x1]  ;;  %6592 = vmatmul.msk.bf16.gmra.mxu2 %vm512_vm0, %v7162_v35 }
 0x18c   : > { %v2305_v39 = vrot.slane %v1296_v36, 5  ;;  %v1034_v43 = vshrl.u32 %v705_v33, 16  ;;  %v1606_v45 = vshll.u32 %v1296_v36, 16  ;;  %v1037_v46 = vshll.u32 %v705_v33, 16 }
 0x18d   : > { %v630_v47 = vpop.f32.mrf.mxu0  ;;  %v2308_v51 = vrot.slane %v1324_v37, 5  ;;  %v1610_v52 = vshrl.u32 %v1296_v36, 16  ;;  %v1616_v2 = vshll.u32 %v1324_v37, 16  ;;  %v1604_v15 = vrot.slane %v1603_v44, 4  ;;  %v7199_v36 = vld [vmem:[#allocation8 + $0x80] sm:$0xff] }
 0x18e   : > { %v2307_v49 = vrot.slane %v2305_v39, 4  ;;  %v1036_v53 = vrot.slane %v1034_v43, 7  ;;  %v631_v54 = vadd.f32 %v8057_v0, %v630_v47  ;;  %v2306_v56 = vsel %vm7827_vm9, %v6608_v38, %v2305_v39  ;;  %v2110_v8 = vpop.f32.mrf.mxu2  ;;  %v1245_v44 = vld [vmem:[#allocation2 + $0x9c] sm:$0xf]  ;;  %3470 = vmatpush.bf16.msrb.mxu1 %v7199_v36 }
 0x18f   : > { %v1608_v57 = vrot.slane %v1606_v45, 5  ;;  %v1866_v61 = vpop.f32.mrf.mxu1  ;;  %v1612_v1 = vrot.slane %v1610_v52, 4  ;;  %v2369_v11 = vunpack.c.l.b16 %v2306_v56  ;;  %v1618_v26 = vrot.slane %v1616_v2, 5 }
 0x190   : > { %v2488_v62 = vpop.f32.mrf.mxu3  ;;  %v2309_v63 = vsel %vm7827_vm9, %v2307_v49, %v2308_v51  ;;  %v1039_v4 = vor.u32 %v1037_v46, %v1036_v53  ;;  %v1041_v5 = vrot.slane %v1036_v53, 4  ;;  %v674_v6 = vmax.f32 %v631_v54, 0.0  ;;  %6729 = vmatmul.msk.bf16.gmra.mxu0 %vm512_vm0, %v7183_v55 }
 0x191   : > { %v2108_v7 = vadd.f32 %v2107_v28, %v1866_v61  ;;  %v2370_v13 = vunpack.c.l.b16 %v2309_v63  ;;  %v1613_v16 = vor.u32 %v1612_v1, %v1608_v57  ;;  %v771_v28 = vld [vmem:[#allocation2 + $0xb4] sm:$0x1]  ;;  %v1609_v30 = vsel %vm7838_vm12, %v1604_v15, %v1608_v57 }
 0x192   : > { %v1040_v18 = vsel %vm7878_vm15, %v1032_v41, %v1039_v4  ;;  %v1243_v19 = vsel %vm7810_vm4, %v1041_v5, %v1242_v60  ;;  %v706_v20 = vpack.c.bf16 %v674_v6, %v674_v6  ;;  %v1297_v23 = vld [vmem:[#allocation2 + $0x90] sm:$0xf]  ;;  %v772_v37 = vsel %vm7810_vm4, 0, %v771_v28 }
 0x193   : > { %v8189_v21 = vadd.f32 %v2488_v62, %v2108_v7  ;;  %1241 = vst.msk [vmem:[#allocation2 + $0x94] sm:$0xf] %vm714_vm1, %v1040_v18  ;;  %v2390_v24 = vpack.c.b16 %v2370_v13, %v2369_v11  ;;  %v1614_v25 = vrot.slane %v1613_v16, 4  ;;  %v1621_v31 = vshrl.u32 %v1297_v23, 16  ;;  %v2187_v54 = vld [vmem:[#allocation2 + $0x90] sm:$0xe] }
 0x194   : > { %1244 = vst [vmem:[#allocation2 + $0x98] sm:$0x1] %v1243_v19  ;;  %v1043_v29 = vshrl.u32 %v706_v20, 16  ;;  %v1624_v32 = vshll.u32 %v1297_v23, 16  ;;  %v1046_v39 = vshll.u32 %v706_v20, 16  ;;  %v1747_v46 = vunpack.c.l.b16 %v1609_v30  ;;  %v7184_v23 = vld [vmem:[#allocation2 + $0x48] sm:$0xff] }
 0x195   : > { %6640 = vmatmul.msk.bf16.gmra.mxu3 %vm512_vm0, %v2390_v24  ;;  %v632_v33 = vpop.f32.mrf.mxu0  ;;  %v1619_v35 = vsel %vm7838_vm12, %v1614_v25, %v1618_v26  ;;  %773 = vst [vmem:[#allocation2 + $0xb4] sm:$0x1] %v772_v37  ;;  %v1623_v47 = vrot.slane %v1621_v31, 4  ;;  %v6609_v2 = vrot.slane %v2187_v54, 9  ;;  %v1249_v26 = vld [vmem:[#allocation2 + $0xa4] sm:$0x1] }
 0x196   : > { %v8199_v38 = vrot.slane %v1043_v29, 7  ;;  %v633_v41 = vadd.f32 %v8057_v0, %v632_v33  ;;  %v1748_v43 = vunpack.c.l.b16 %v1619_v35  ;;  %v2112_v53 = vpop.f32.mrf.mxu2  ;;  %v1626_v55 = vrot.slane %v1624_v32, 5 }
 0x197   : > { %v1869_v45 = vpop.f32.mrf.mxu1 }
 0x198   : > { %v2491_v9 = vpop.f32.mrf.mxu3  ;;  %v1048_v49 = vor.u32 %v1046_v39, %v8199_v38  ;;  %v675_v51 = vmax.f32 %v633_v41, 0.0  ;;  %v2111_v52 = vadd.f32 %v2110_v8, %v1869_v45  ;;  %v1768_v56 = vpack.c.b16 %v1748_v43, %v1747_v46  ;;  %v827_v8 = vld [vmem:[#allocation2 + $0xbc] sm:$0x1] }
 0x199   : > { %v1049_v4 = vrot.slane %v8199_v38, 4  ;;  %v1627_v6 = vor.u32 %v1626_v55, %v1623_v47  ;;  %v828_v33 = vsel %vm7815_vm6, 0, %v827_v8  ;;  %v1252_v8 = vld [vmem:[#allocation2 + $0xa8] sm:$0xf] }
 0x19a   : > { %v1246_v57 = vsel %vm7867_vm13, %v1048_v49, %v1245_v44  ;;  %v707_v60 = vpack.c.bf16 %v675_v51, %v675_v51  ;;  %v8205_v61 = vadd.f32 %v2491_v9, %v2111_v52  ;;  %v7163_v62 = vld [vmem:[#allocation2 + $0x90] sm:$0xff]  ;;  %6496 = vmatmul.msk.bf16.gmra.mxu1 %vm512_vm0, %v1768_v56  ;;  %829 = vst [vmem:[#allocation2 + $0xbc] sm:$0x1] %v828_v33 }
 0x19b   : > { %v1298_v63 = vld [vmem:[#allocation2 + $0x94] sm:$0xf]  ;;  %1247 = vst [vmem:[#allocation2 + $0x9c] sm:$0xf] %v1246_v57  ;;  %v1325_v1 = vld [vmem:[#allocation2 + $0x98] sm:$0x1]  ;;  %6593 = vmatmul.msk.bf16.gmra.mxu2 %vm512_vm0, %v7163_v62 }
 0x19c   : > { %v2312_v3 = vrot.slane %v1298_v63, 5  ;;  %v1051_v5 = vshrl.u32 %v707_v60, 16  ;;  %v1630_v7 = vshll.u32 %v1298_v63, 16  ;;  %v1054_v11 = vshll.u32 %v707_v60, 16 }
 0x19d   : > { %v635_v13 = vpop.f32.mrf.mxu0  ;;  %v2315_v16 = vrot.slane %v1325_v1, 5  ;;  %v1634_v18 = vshrl.u32 %v1298_v63, 16  ;;  %v1640_v32 = vshll.u32 %v1325_v1, 16  ;;  %v1628_v44 = vrot.slane %v1627_v6, 4  ;;  %v7205_v1 = vld [vmem:[#allocation8 + $0xb0] sm:$0xff] }
 0x19e   : > { %v2314_v15 = vrot.slane %v2312_v3, 4  ;;  %v1053_v19 = vrot.slane %v1051_v5, 7  ;;  %v636_v20 = vadd.f32 %v8057_v0, %v635_v13  ;;  %v2313_v24 = vsel %vm7827_vm9, %v6609_v2, %v2312_v3  ;;  %v2115_v39 = vpop.f32.mrf.mxu2  ;;  %v7225_v2 = vld [vmem:[#allocation8 + $0xd0] sm:$0xff]  ;;  %v774_v3 = vld [vmem:[#allocation2 + $0xc0] sm:$0x1]  ;;  %3894 = vmatpush.bf16.msrb.mxu2 %v7205_v1 }
 0x19f   : > { %v1632_v25 = vrot.slane %v1630_v7, 5  ;;  %v1871_v28 = vpop.f32.mrf.mxu1  ;;  %v1636_v31 = vrot.slane %v1634_v18, 4  ;;  %v2371_v41 = vunpack.c.l.b16 %v2313_v24  ;;  %v1642_v54 = vrot.slane %v1640_v32, 5  ;;  %4209 = vmatpush.bf16.msrb.mxu3 %v7225_v2 }
 0x1a0   : > { %v2493_v29 = vpop.f32.mrf.mxu3  ;;  %v2316_v30 = vsel %vm7827_vm9, %v2314_v15, %v2315_v16  ;;  %v1056_v35 = vor.u32 %v1054_v11, %v1053_v19  ;;  %v1058_v36 = vrot.slane %v1053_v19, 4  ;;  %v676_v37 = vmax.f32 %v636_v20, 0.0  ;;  %6730 = vmatmul.msk.bf16.gmra.mxu0 %vm512_vm0, %v7184_v23 }
 0x1a1   : > { %v2113_v38 = vadd.f32 %v2112_v53, %v1871_v28  ;;  %v2372_v43 = vunpack.c.l.b16 %v2316_v30  ;;  %v1637_v45 = vor.u32 %v1636_v31, %v1632_v25  ;;  %v1633_v56 = vsel %vm7838_vm12, %v1628_v44, %v1632_v25  ;;  %v830_v44 = vld [vmem:[#allocation2 + $0xc8] sm:$0x1] }
 0x1a2   : > { %v1057_v9 = vsel %vm7878_vm15, %v1049_v4, %v1056_v35  ;;  %v1250_v46 = vsel %vm7810_vm4, %v1058_v36, %v1249_v26  ;;  %v708_v47 = vpack.c.bf16 %v676_v37, %v676_v37  ;;  %v1299_v51 = vld [vmem:[#allocation2 + $0x9c] sm:$0xf]  ;;  %v1749_v15 = vunpack.c.l.b16 %v1633_v56 }
 0x1a3   : > { %v8222_v49 = vadd.f32 %v2493_v29, %v2113_v38  ;;  %1248 = vst.msk [vmem:[#allocation2 + $0xa0] sm:$0xf] %vm714_vm1, %v1057_v9  ;;  %v2391_v52 = vpack.c.b16 %v2372_v43, %v2371_v41  ;;  %v1638_v53 = vrot.slane %v1637_v45, 4  ;;  %v1645_v57 = vshrl.u32 %v1299_v51, 16  ;;  %v2188_v25 = vld [vmem:[#allocation2 + $0x9c] sm:$0xe] }
 0x1a4   : > { %1251 = vst [vmem:[#allocation2 + $0xa4] sm:$0x1] %v1250_v46  ;;  %v1060_v55 = vshrl.u32 %v708_v47, 16  ;;  %v1648_v60 = vshll.u32 %v1299_v51, 16  ;;  %v1063_v5 = vshll.u32 %v708_v47, 16  ;;  %v775_v18 = vsel %vm7810_vm4, 0, %v774_v3 }
 0x1a5   : > { %6641 = vmatmul.msk.bf16.gmra.mxu3 %vm512_vm0, %v2391_v52  ;;  %v637_v62 = vpop.f32.mrf.mxu0  ;;  %v1643_v63 = vsel %vm7838_vm12, %v1638_v53, %v1642_v54  ;;  %v1647_v16 = vrot.slane %v1645_v57, 4  ;;  %776 = vst [vmem:[#allocation2 + $0xc0] sm:$0x1] %v775_v18  ;;  %v6610_v36 = vrot.slane %v2188_v25, 9  ;;  %v7185_v54 = vld [vmem:[#allocation2 + $0x54] sm:$0xff]  ;;  %v831_v3 = vsel %vm7815_vm6, 0, %v830_v44 }
 0x1a6   : > { %v8230_v4 = vrot.slane %v1060_v55, 7  ;;  %v638_v6 = vadd.f32 %v8057_v0, %v637_v62  ;;  %v1750_v7 = vunpack.c.l.b16 %v1643_v63  ;;  %v2117_v24 = vpop.f32.mrf.mxu2  ;;  %v1650_v26 = vrot.slane %v1648_v60, 5  ;;  %v1256_v57 = vld [vmem:[#allocation2 + $0xb0] sm:$0x1]  ;;  %832 = vst [vmem:[#allocation2 + $0xc8] sm:$0x1] %v831_v3 }
 0x1a7   : > { %v1874_v11 = vpop.f32.mrf.mxu1  ;;  %v1259_v44 = vld [vmem:[#allocation2 + $0xb4] sm:$0xf]  ;;  %v7203_v3 = vld [vmem:[#allocation8 + $0xa0] sm:$0xff] }
 0x1a8   : > { %v2496_v13 = vpop.f32.mrf.mxu3  ;;  %v1065_v19 = vor.u32 %v1063_v5, %v8230_v4  ;;  %v677_v20 = vmax.f32 %v638_v6, 0.0  ;;  %v2116_v23 = vadd.f32 %v2115_v39, %v1874_v11  ;;  %v1769_v28 = vpack.c.b16 %v1750_v7, %v1749_v15 }
 0x1a9   : > { %v1066_v38 = vrot.slane %v8230_v4, 4  ;;  %v1651_v41 = vor.u32 %v1650_v26, %v1647_v16 }
 0x1aa   : > { %v1253_v29 = vsel %vm7867_vm13, %v1065_v19, %v1252_v8  ;;  %v709_v30 = vpack.c.bf16 %v677_v20, %v677_v20  ;;  %v8238_v31 = vadd.f32 %v2496_v13, %v2116_v23  ;;  %v7164_v32 = vld [vmem:[#allocation2 + $0x9c] sm:$0xff]  ;;  %6497 = vmatmul.msk.bf16.gmra.mxu1 %vm512_vm0, %v1769_v28 }
 0x1ab   : > { %v1300_v33 = vld [vmem:[#allocation2 + $0xa0] sm:$0xf]  ;;  %1254 = vst [vmem:[#allocation2 + $0xa8] sm:$0xf] %v1253_v29  ;;  %v1326_v35 = vld [vmem:[#allocation2 + $0xa4] sm:$0x1]  ;;  %6594 = vmatmul.msk.bf16.gmra.mxu2 %vm512_vm0, %v7164_v32 }
 0x1ac   : > { %v2319_v37 = vrot.slane %v1300_v33, 5  ;;  %v1068_v39 = vshrl.u32 %v709_v30, 16  ;;  %v1654_v43 = vshll.u32 %v1300_v33, 16  ;;  %v1071_v45 = vshll.u32 %v709_v30, 16 }
 0x1ad   : > { %v640_v9 = vpop.f32.mrf.mxu0  ;;  %v2322_v47 = vrot.slane %v1326_v35, 5  ;;  %v1658_v51 = vshrl.u32 %v1300_v33, 16  ;;  %v1664_v2 = vshll.u32 %v1326_v35, 16  ;;  %v1652_v15 = vrot.slane %v1651_v41, 4 }
 0x1ae   : > { %v2321_v46 = vrot.slane %v2319_v37, 4  ;;  %v1070_v52 = vrot.slane %v1068_v39, 7  ;;  %v641_v53 = vadd.f32 %v8057_v0, %v640_v9  ;;  %v2320_v55 = vsel %vm7827_vm9, %v6610_v36, %v2319_v37  ;;  %v2120_v8 = vpop.f32.mrf.mxu2 }
 0x1af   : > { %v1656_v56 = vrot.slane %v1654_v43, 5  ;;  %v1876_v60 = vpop.f32.mrf.mxu1  ;;  %v1660_v1 = vrot.slane %v1658_v51, 4  ;;  %v2373_v11 = vunpack.c.l.b16 %v2320_v55  ;;  %v1666_v28 = vrot.slane %v1664_v2, 5  ;;  %v7204_v43 = vld [vmem:[#allocation8 + $0xa8] sm:$0xff] }
 0x1b0   : > { %v2498_v62 = vpop.f32.mrf.mxu3  ;;  %v2323_v63 = vsel %vm7827_vm9, %v2321_v46, %v2322_v47  ;;  %v1073_v4 = vor.u32 %v1071_v45, %v1070_v52  ;;  %v1075_v5 = vrot.slane %v1070_v52, 4  ;;  %v678_v6 = vmax.f32 %v641_v53, 0.0  ;;  %6731 = vmatmul.msk.bf16.gmra.mxu0 %vm512_vm0, %v7185_v54  ;;  %3895 = vmatpush.bf16.msrb.mxu2 %v7204_v43 }
 0x1b1   : > { %v2118_v7 = vadd.f32 %v2117_v24, %v1876_v60  ;;  %v2374_v13 = vunpack.c.l.b16 %v2323_v63  ;;  %v1661_v16 = vor.u32 %v1660_v1, %v1656_v56  ;;  %v1657_v30 = vsel %vm7838_vm12, %v1652_v15, %v1656_v56  ;;  %v8267_v56 = vld [vmem:[#allocation2 + $0x10] sm:$0xf] }
 0x1b2   : > { %v1074_v18 = vsel %vm7878_vm15, %v1066_v38, %v1073_v4  ;;  %v1257_v19 = vsel %vm7810_vm4, %v1075_v5, %v1256_v57  ;;  %v710_v20 = vpack.c.bf16 %v678_v6, %v678_v6  ;;  %v1301_v25 = vld [vmem:[#allocation2 + $0xa8] sm:$0xf]  ;;  %v1751_v46 = vunpack.c.l.b16 %v1657_v30 }
 0x1b3   : > { %v8255_v23 = vadd.f32 %v2498_v62, %v2118_v7  ;;  %1255 = vst.msk [vmem:[#allocation2 + $0xac] sm:$0xf] %vm714_vm1, %v1074_v18  ;;  %v2392_v24 = vpack.c.b16 %v2374_v13, %v2373_v11  ;;  %v1662_v26 = vrot.slane %v1661_v16, 4  ;;  %v1669_v32 = vshrl.u32 %v1301_v25, 16  ;;  %v2189_v60 = vld [vmem:[#allocation2 + $0xa8] sm:$0xe] }
 0x1b4   : > { %1258 = vst [vmem:[#allocation2 + $0xb0] sm:$0x1] %v1257_v19  ;;  %v1077_v29 = vshrl.u32 %v710_v20, 16  ;;  %v1672_v33 = vshll.u32 %v1301_v25, 16  ;;  %v1080_v38 = vshll.u32 %v710_v20, 16  ;;  %v3650_v6 = vrot.slane %v8267_v56, 5  ;;  %3896 = vmatpush.bf16.msrb.mxu2 %v7203_v3 }
 0x1b5   : > { %6642 = vmatmul.msk.bf16.gmra.mxu3 %vm512_vm0, %v2392_v24  ;;  %v642_v35 = vpop.f32.mrf.mxu0  ;;  %v1667_v36 = vsel %vm7838_vm12, %v1662_v26, %v1666_v28  ;;  %v1671_v47 = vrot.slane %v1669_v32, 4  ;;  %v7366_v24 = vld [vmem:[%s9764_s2] ss:$0 sm:$0xff] }
 0x1b6   : > { %v8263_v37 = vrot.slane %v1077_v29, 7  ;;  %v643_v39 = vadd.f32 %v8057_v0, %v642_v35  ;;  %v1752_v41 = vunpack.c.l.b16 %v1667_v36  ;;  %v2122_v54 = vpop.f32.mrf.mxu2  ;;  %v1674_v55 = vrot.slane %v1672_v33, 5  ;;  %v7186_v28 = vld [vmem:[#allocation2 + $0x60] sm:$0xff]  ;;  %v1263_v33 = vld [vmem:[#allocation2 + $0xbc] sm:$0x1] }
 0x1b7   : > { %v1879_v45 = vpop.f32.mrf.mxu1 }
 0x1b8   : > { %v2501_v9 = vpop.f32.mrf.mxu3  ;;  %v1082_v51 = vor.u32 %v1080_v38, %v8263_v37  ;;  %v679_v52 = vmax.f32 %v643_v39, 0.0  ;;  %v2121_v53 = vadd.f32 %v2120_v8, %v1879_v45  ;;  %v1770_v57 = vpack.c.b16 %v1752_v41, %v1751_v46 }
 0x1b9   : > { %v6611_v8 = vrot.slane %v2189_v60, 9  ;;  %v1675_v11 = vor.u32 %v1674_v55, %v1671_v47  ;;  %v1083_v32 = vrot.slane %v8263_v37, 4  ;;  %v7224_v47 = vld [vmem:[#allocation8 + $0xc8] sm:$0xff] }
 0x1ba   : > { %v1260_v0 = vsel %vm7867_vm13, %v1082_v51, %v1259_v44  ;;  %v711_v62 = vpack.c.bf16 %v679_v52, %v679_v52  ;;  %v8271_v63 = vadd.f32 %v2501_v9, %v2121_v53  ;;  %v7165_v1 = vld [vmem:[#allocation2 + $0xa8] sm:$0xff]  ;;  %6498 = vmatmul.msk.bf16.gmra.mxu1 %vm512_vm0, %v1770_v57  ;;  %4210 = vmatpush.bf16.msrb.mxu3 %v7224_v47 }
 0x1bb   : > { %v1302_v2 = vld [vmem:[#allocation2 + $0xac] sm:$0xf]  ;;  %1261 = vst [vmem:[#allocation2 + $0xb4] sm:$0xf] %v1260_v0  ;;  %v1327_v4 = vld [vmem:[#allocation2 + $0xb0] sm:$0x1]  ;;  %6595 = vmatmul.msk.bf16.gmra.mxu2 %vm512_vm0, %v7165_v1 }
 0x1bc   : > { %v2326_v5 = vrot.slane %v1302_v2, 5  ;;  %v1085_v7 = vshrl.u32 %v711_v62, 16  ;;  %v1678_v13 = vshll.u32 %v1302_v2, 16  ;;  %v1088_v15 = vshll.u32 %v711_v62, 16 }
 0x1bd   : > { %v645_v16 = vpop.f32.mrf.mxu0  ;;  %v2329_v19 = vrot.slane %v1327_v4, 5  ;;  %v1682_v20 = vshrl.u32 %v1302_v2, 16  ;;  %v1688_v41 = vshll.u32 %v1327_v4, 16  ;;  %v1676_v53 = vrot.slane %v1675_v11, 4 }
 0x1be   : > { %v2328_v18 = vrot.slane %v2326_v5, 4  ;;  %v1087_v25 = vrot.slane %v1085_v7, 7  ;;  %v646_v26 = vadd.f32 %v7366_v24, %v645_v16  ;;  %v2327_v29 = vsel %vm7827_vm9, %v6611_v8, %v2326_v5  ;;  %v2125_v46 = vpop.f32.mrf.mxu2 }
 0x1bf   : > { %v1680_v30 = vrot.slane %v1678_v13, 5  ;;  %v1881_v35 = vpop.f32.mrf.mxu1  ;;  %v1684_v39 = vrot.slane %v1682_v20, 4  ;;  %v2375_v51 = vunpack.c.l.b16 %v2327_v29  ;;  %v1690_v4 = vrot.slane %v1688_v41, 5  ;;  %v8299_v20 = vld [vmem:[#allocation2 + $0x14] sm:$0x1] }
 0x1c0   : > { %v2503_v36 = vpop.f32.mrf.mxu3  ;;  %v2330_v38 = vsel %vm7827_vm9, %v2328_v18, %v2329_v19  ;;  %v1090_v43 = vor.u32 %v1088_v15, %v1087_v25  ;;  %v1092_v44 = vrot.slane %v1087_v25, 4  ;;  %v680_v45 = vmax.f32 %v646_v26, 0.0  ;;  %6732 = vmatmul.msk.bf16.gmra.mxu0 %vm512_vm0, %v7186_v28  ;;  %v1266_v25 = vld [vmem:[#allocation2 + $0xc0] sm:$0xf] }
 0x1c1   : > { %v2123_v9 = vadd.f32 %v2122_v54, %v1881_v35  ;;  %v2376_v52 = vunpack.c.l.b16 %v2330_v38  ;;  %v1685_v37 = vor.u32 %v1684_v39, %v1680_v30  ;;  %v7223_v54 = vld [vmem:[#allocation8 + $0xc0] sm:$0xff]  ;;  %v1681_v2 = vsel %vm7838_vm12, %v1676_v53, %v1680_v30 }
 0x1c2   : > { %v1091_v55 = vsel %vm7878_vm15, %v1083_v32, %v1090_v43  ;;  %v1264_v57 = vsel %vm7810_vm4, %v1092_v44, %v1263_v33  ;;  %v712_v60 = vpack.c.bf16 %v680_v45, %v680_v45  ;;  %v1303_v62 = vld [vmem:[#allocation2 + $0xb4] sm:$0xf]  ;;  %4211 = vmatpush.bf16.msrb.mxu3 %v7223_v54  ;;  %v1753_v29 = vunpack.c.l.b16 %v1681_v2 }
 0x1c3   : > { %v8289_v0 = vadd.f32 %v2503_v36, %v2123_v9  ;;  %1262 = vst.msk [vmem:[#allocation2 + $0xb8] sm:$0xf] %vm714_vm1, %v1091_v55  ;;  %v2393_v1 = vpack.c.b16 %v2376_v52, %v2375_v51  ;;  %v1686_v3 = vrot.slane %v1685_v37, 4  ;;  %v1693_v8 = vshrl.u32 %v1303_v62, 16  ;;  %v2190_v39 = vld [vmem:[#allocation2 + $0xb4] sm:$0xe] }
 0x1c4   : > { %1265 = vst [vmem:[#allocation2 + $0xbc] sm:$0x1] %v1264_v57  ;;  %v1094_v5 = vshrl.u32 %v712_v60, 16  ;;  %v1097_v7 = vshll.u32 %v712_v60, 16  ;;  %v1696_v11 = vshll.u32 %v1303_v62, 16  ;;  %v3652_v32 = vrot.slane %v3650_v6, 4 }
 0x1c5   : > { %6643 = vmatmul.msk.bf16.gmra.mxu3 %vm512_vm0, %v2393_v1  ;;  %v647_v13 = vpop.f32.mrf.mxu0  ;;  %v1691_v15 = vsel %vm7838_vm12, %v1686_v3, %v1690_v4  ;;  %v1695_v30 = vrot.slane %v1693_v8, 4  ;;  %v3653_v44 = vrot.slane %v8299_v20, 5  ;;  %v6612_v53 = vrot.slane %v2190_v39, 9  ;;  %v7234_v54 = vld [vmem:[#allocation8 + $0x118] sm:$0xff] }
 0x1c6   : > { %v8297_v16 = vrot.slane %v1094_v5, 7  ;;  %v648_v18 = vadd.f32 %v7366_v24, %v647_v13  ;;  %v1754_v19 = vunpack.c.l.b16 %v1691_v15  ;;  %v2127_v38 = vpop.f32.mrf.mxu2  ;;  %v1698_v41 = vrot.slane %v1696_v11, 5  ;;  %v7230_v24 = vld [vmem:[#allocation8 + $0xf8] sm:$0xff]  ;;  %5316 = vmatpush.bf16.msra.mxu1 %v7234_v54 }
 0x1c7   : > { %v1884_v26 = vpop.f32.mrf.mxu1  ;;  %4890 = vmatpush.bf16.msra.mxu0 %v7230_v24  ;;  %v8312_v55 = vsel %vm7827_vm9, %v3652_v32, %v3653_v44  ;;  %v7187_v13 = vld [vmem:[#allocation2 + $0x6c] sm:$0xff]  ;;  %v2964_v44 = vshrl.u32 %v8267_v56, 16 }
 0x1c8   : > { %v2506_v28 = vpop.f32.mrf.mxu3  ;;  %v1099_v33 = vor.u32 %v1097_v7, %v8297_v16  ;;  %v681_v35 = vmax.f32 %v648_v18, 0.0  ;;  %v2126_v36 = vadd.f32 %v2125_v46, %v1884_v26  ;;  %v1771_v43 = vpack.c.b16 %v1754_v19, %v1753_v29  ;;  %v1270_v18 = vld [vmem:[#allocation2 + $0xc8] sm:$0x1]  ;;  %v2902_v24 = vld [vmem:[#allocation2 + $0xc] sm:$0xf] }
 0x1c9   : > { %v1699_v27 = vor.u32 %v1698_v41, %v1695_v30  ;;  %v1100_v7 = vrot.slane %v8297_v16, 4  ;;  %v2954_v54 = vshll.u32 %v2902_v24, 16 }
 0x1ca   : > { %v1267_v45 = vsel %vm7867_vm13, %v1099_v33, %v1266_v25  ;;  %v713_v9 = vpack.c.bf16 %v681_v35, %v681_v35  ;;  %v8307_v47 = vadd.f32 %v2506_v28, %v2126_v36  ;;  %v7166_v51 = vld [vmem:[#allocation2 + $0xb4] sm:$0xff]  ;;  %6499 = vmatmul.msk.bf16.gmra.mxu1 %vm512_vm0, %v1771_v43  ;;  %v3584_v36 = vld [vmem:[#allocation2 + $0xc] sm:$0xe]  ;;  %v2960_v43 = vshll.u32 %v8267_v56, 16 }
 0x1cb   : > { %v1304_v52 = vld [vmem:[#allocation2 + $0xb8] sm:$0xf]  ;;  %1268 = vst [vmem:[#allocation2 + $0xc0] sm:$0xf] %v1267_v45  ;;  %v1328_v46 = vld [vmem:[#allocation2 + $0xbc] sm:$0x1]  ;;  %6596 = vmatmul.msk.bf16.gmra.mxu2 %vm512_vm0, %v7166_v51 }
 0x1cc   : > { %v2333_v37 = vrot.slane %v1304_v52, 5  ;;  %v1102_v57 = vshrl.u32 %v713_v9, 16  ;;  %v1105_v60 = vshll.u32 %v713_v9, 16  ;;  %v1702_v62 = vshll.u32 %v1304_v52, 16 }
 0x1cd   : > { %v2790_v1 = vpop.f32.mrf.mxu0  ;;  %v2336_v4 = vrot.slane %v1328_v46, 5  ;;  %v1706_v5 = vshrl.u32 %v1304_v52, 16  ;;  %v1712_v30 = vshll.u32 %v1328_v46, 16  ;;  %v1700_v39 = vrot.slane %v1699_v27, 4 }
 0x1ce   : > { %v2334_v2 = vsel %vm7827_vm9, %v6612_v53, %v2333_v37  ;;  %v2335_v3 = vrot.slane %v2333_v37, 4  ;;  %v1104_v8 = vrot.slane %v1102_v57, 7  ;;  %v8319_v11 = vadd.f32 %v2790_v1, %v8049_v50  ;;  %v2130_v16 = vpop.f32.mrf.mxu2 }
 0x1cf   : > { %v1704_v15 = vrot.slane %v1702_v62, 5  ;;  %v1886_v19 = vpop.f32.mrf.mxu1  ;;  %v2377_v28 = vunpack.c.l.b16 %v2334_v2  ;;  %v1708_v29 = vrot.slane %v1706_v5, 4  ;;  %v1714_v53 = vrot.slane %v1712_v30, 5 }
 0x1d0   : > { %v2508_v25 = vpop.f32.mrf.mxu3  ;;  %v2337_v26 = vsel %vm7827_vm9, %v2335_v3, %v2336_v4  ;;  %v1107_v32 = vor.u32 %v1105_v60, %v1104_v8  ;;  %v1109_v33 = vrot.slane %v1104_v8, 4  ;;  %v2128_v35 = vadd.f32 %v2127_v38, %v1886_v19  ;;  %6733 = vmatmul.msk.bf16.gmra.mxu0 %vm512_vm0, %v7187_v13  ;;  %v2906_v8 = vld [vmem:[#allocation2 + $0x1c] sm:$0xf] }
 0x1d1   : > { %v2378_v50 = vunpack.c.l.b16 %v2337_v26  ;;  %v1709_v41 = vor.u32 %v1708_v29, %v1704_v15  ;;  %v1705_v52 = vsel %vm7838_vm12, %v1700_v39, %v1704_v15  ;;  %v6773_v37 = vrot.slane %v3584_v36, 9  ;;  %v2905_v39 = vld [vmem:[#allocation2 + $0x18] sm:$0xf] }
 0x1d2   : > { %v1108_v45 = vsel %vm7878_vm15, %v1100_v7, %v1107_v32  ;;  %v1271_v9 = vsel %vm7810_vm4, %v1109_v33, %v1270_v18  ;;  %v8330_v51 = vadd.f32 %v2508_v25, %v2128_v35  ;;  %v2951_v57 = vshrl.u32 %v2902_v24, 16  ;;  %v8350_v33 = vld [vmem:[#allocation2 + $0x20] sm:$0x1] }
 0x1d3   : > { %v2394_v38 = vpack.c.b16 %v2378_v50, %v2377_v28  ;;  %1269 = vst.msk [vmem:[#allocation2 + $0xc4] sm:$0xf] %vm714_vm1, %v1108_v45  ;;  %v1710_v46 = vrot.slane %v1709_v41, 4  ;;  %v3651_v27 = vsel %vm7827_vm9, %v6773_v37, %v3650_v6  ;;  %v3770_v62 = vunpack.c.l.b16 %v8312_v55 }
 0x1d4   : > { %1272 = vst [vmem:[#allocation2 + $0xc8] sm:$0x1] %v1271_v9  ;;  %v1755_v1 = vunpack.c.l.b16 %v1705_v52  ;;  %v2962_v3 = vrot.slane %v2960_v43, 5  ;;  %v2966_v4 = vrot.slane %v2964_v44, 4  ;;  %v3769_v19 = vunpack.c.l.b16 %v3651_v27  ;;  %v3585_v44 = vld [vmem:[#allocation2 + $0x18] sm:$0xe] }
 0x1d5   : > { %6644 = vmatmul.msk.bf16.gmra.mxu3 %vm512_vm0, %v2394_v38  ;;  %v8336_v42 = vpop.f32.mrf.mxu0  ;;  %v1715_v60 = vsel %vm7838_vm12, %v1710_v46, %v1714_v53  ;;  %v2953_v25 = vrot.slane %v2951_v57, 4  ;;  %v2956_v26 = vrot.slane %v2954_v54, 5  ;;  %v3657_v29 = vrot.slane %v2906_v8, 5 }
 0x1d6   : > { %v1756_v2 = vunpack.c.l.b16 %v1715_v60  ;;  %v2132_v18 = vpop.f32.mrf.mxu2  ;;  %v3801_v28 = vpack.c.b16 %v3770_v62, %v3769_v19  ;;  %v2967_v6 = vor.u32 %v2966_v4, %v2962_v3  ;;  %v2970_v55 = vshll.u32 %v8299_v20, 16  ;;  %v7207_v62 = vld [vmem:[#allocation2 + $0x18] sm:$0xff] }
 0x1d7   : > { %v1889_v5 = vpop.f32.mrf.mxu1  ;;  %v2957_v32 = vor.u32 %v2956_v26, %v2953_v25  ;;  %v3659_v36 = vrot.slane %v3657_v29, 4  ;;  %v3660_v20 = vrot.slane %v8350_v33, 5  ;;  %v2984_v38 = vshll.u32 %v2906_v8, 16  ;;  %v8375_v25 = vld [vmem:[#allocation2 + $0x28] sm:$0xf] }
 0x1d8   : > { %v2511_v7 = vpop.f32.mrf.mxu3  ;;  %v2131_v13 = vadd.f32 %v2130_v16, %v1889_v5  ;;  %v1772_v15 = vpack.c.b16 %v1756_v2, %v1755_v1  ;;  %v7188_v16 = vld [vmem:[#allocation2 + $0x78] sm:$0xff]  ;;  %v2968_v50 = vrot.slane %v2967_v6, 4  ;;  %v2972_v43 = vrot.slane %v2970_v55, 5 }
 0x1d9   : > { %v2988_v52 = vshrl.u32 %v2906_v8, 16  ;;  %v2958_v46 = vrot.slane %v2957_v32, 4  ;;  %v2975_v53 = vshrl.u32 %v2905_v39, 16  ;;  %v6774_v60 = vrot.slane %v3585_v44, 9 }
 0x1da   : > { %v8345_v56 = vadd.f32 %v2511_v7, %v2131_v13  ;;  %6500 = vmatmul.msk.bf16.gmra.mxu1 %vm512_vm0, %v1772_v15  ;;  %v2973_v57 = vsel %vm7838_vm12, %v2968_v50, %v2972_v43  ;;  %v3661_v27 = vsel %vm7827_vm9, %v3659_v36, %v3660_v20  ;;  %v8367_v2 = vrot.slane %v2984_v38, 5  ;;  %v5008_v38 = vld [vmem:[#allocation2 + $0x24] sm:$0xe] }
 0x1db   : > { %6805 = vmatmul.msk.bf16.vlgmr.msrb.gmra.mxu2 %vm512_vm0, %v3801_v28  ;;  %v2963_v54 = vsel %vm7838_vm12, %v2958_v46, %v2962_v3  ;;  %v3658_v1 = vsel %vm7827_vm9, %v6774_v60, %v3657_v29  ;;  %v2990_v4 = vrot.slane %v2988_v52, 4  ;;  %v3344_v7 = vunpack.c.l.b16 %v2973_v57  ;;  %v5007_v29 = vld [vmem:[#allocation2 + $0x18] sm:$0xe]  ;;  %v8389_v46 = vld [vmem:[#allocation2 + $0x2c] sm:$0x1] }
 0x1dc   : > { %v3772_v8 = vunpack.c.l.b16 %v3661_v27  ;;  %v2977_v13 = vrot.slane %v2975_v53, 4  ;;  %v3343_v28 = vunpack.c.l.b16 %v2963_v54  ;;  %v3771_v6 = vunpack.c.l.b16 %v3658_v1 }
 0x1dd   : > { %v2795_v30 = vpop.f32.mrf.mxu0  ;;  %v2991_v32 = vor.u32 %v2990_v4, %v8367_v2  ;;  %v2994_v44 = vshll.u32 %v8350_v33, 16  ;;  %v7189_v4 = vld [vmem:[#allocation2 + $0x84] sm:$0xff] }
 0x1de   : > { %v8353_v35 = vadd.f32 %v2795_v30, %v8139_v10  ;;  %v2135_v9 = vpop.f32.mrf.mxu2  ;;  %v2978_v10 = vshll.u32 %v2905_v39, 16  ;;  %v3375_v50 = vpack.c.b16 %v3344_v7, %v3343_v28  ;;  %v3802_v36 = vpack.c.b16 %v3772_v8, %v3771_v6  ;;  %v2908_v7 = vld [vmem:[#allocation2 + $0x24] sm:$0xf]  ;;  %v8403_v28 = vld [vmem:[#allocation2 + $0x34] sm:$0xf] }
 0x1df   : > { %v1891_v41 = vpop.f32.mrf.mxu1  ;;  %v2992_v52 = vrot.slane %v2991_v32, 4 }
 0x1e0   : > { %v2513_v24 = vpop.f32.mrf.mxu3  ;;  %v2133_v45 = vadd.f32 %v2132_v18, %v1891_v41  ;;  %6734 = vmatmul.msk.bf16.gmra.mxu0 %vm512_vm0, %v7188_v16  ;;  %v2980_v15 = vrot.slane %v2978_v10, 5  ;;  %v8370_v18 = vld [vmem:[#allocation2 + $0x1c] sm:$0xf]  ;;  %v3586_v41 = vld [vmem:[#allocation2 + $0x24] sm:$0xe] }
 0x1e1   : > { %v5073_v16 = vrot.slane %v8370_v18, 5  ;;  %v6775_v33 = vrot.slane %v3586_v41, 9 }
 0x1e2   : > { %v8357_v37 = vadd.f32 %v2513_v24, %v2133_v45  ;;  %v2981_v39 = vor.u32 %v2980_v15, %v2977_v13  ;;  %v8380_v24 = vld [vmem:[#allocation2 + $0x20] sm:$0x1]  ;;  %v8385_v45 = vld [vmem:[#allocation2 + $0x28] sm:$0xf]  ;;  %v6950_v13 = vrot.slane %v5008_v38, 9 }
 0x1e3   : > { %v5075_v20 = vrot.slane %v5073_v16, 4  ;;  %v5076_v10 = vrot.slane %v8380_v24, 5  ;;  %v5080_v54 = vrot.slane %v8385_v45, 5 }
 0x1e4   : > { %v2982_v60 = vrot.slane %v2981_v39, 4  ;;  %v5009_v39 = vld [vmem:[#allocation2 + $0x30] sm:$0xe] }
 0x1e5   : > { %6901 = vmatmul.msk.bf16.vlgmr.msrb.gmra.mxu3 %vm512_vm0, %v7207_v62  ;;  %v2797_v5 = vpop.f32.mrf.mxu0  ;;  %v8394_v62 = vld [vmem:[#allocation2 + $0x2c] sm:$0x1]  ;;  %v5077_v8 = vsel %vm7827_vm9, %v5075_v20, %v5076_v10  ;;  %v8414_v20 = vld [vmem:[#allocation2 + $0x38] sm:$0x1]  ;;  %v5087_v10 = vrot.slane %v8403_v28, 5 }
 0x1e6   : > { %v8373_v19 = vadd.f32 %v2797_v5, %v8156_v59  ;;  %v2137_v30 = vpop.f32.mrf.mxu2  ;;  %v3664_v59 = vrot.slane %v8375_v25, 5  ;;  %v2996_v5 = vrot.slane %v2994_v44, 5  ;;  %v2999_v44 = vshrl.u32 %v2908_v7, 16 }
 0x1e7   : > { %v1894_v3 = vpop.f32.mrf.mxu1 }
 0x1e8   : > { %v2516_v26 = vpop.f32.mrf.mxu3  ;;  %v2136_v55 = vadd.f32 %v2135_v9, %v1894_v3  ;;  %v6949_v9 = vrot.slane %v5007_v29, 9  ;;  %v3666_v27 = vrot.slane %v3664_v59, 4  ;;  %v5193_v29 = vunpack.c.l.b16 %v5077_v8 }
 0x1e9   : > { %v2987_v8 = vsel %vm7838_vm12, %v2982_v60, %v8367_v2 }
 0x1ea   : > { %v8382_v43 = vadd.f32 %v2516_v26, %v2136_v55  ;;  %6757 = vmatmul.msk.bf16.vlgmr.msrb.gmra.mxu1 %vm512_vm0, %v3375_v50  ;;  %v5074_v53 = vsel %vm7827_vm9, %v6949_v9, %v5073_v16  ;;  %v3667_v26 = vrot.slane %v8389_v46, 5  ;;  %v5082_v55 = vrot.slane %v5080_v54, 4 }
 0x1eb   : > { %6806 = vmatmul.msk.bf16.gmra.mxu2 %vm512_vm0, %v3802_v36  ;;  %v5192_v6 = vunpack.c.l.b16 %v5074_v53  ;;  %v5081_v50 = vsel %vm7827_vm9, %v6950_v13, %v5080_v54  ;;  %v5083_v36 = vrot.slane %v8394_v62, 5  ;;  %v3008_v9 = vshll.u32 %v8375_v25, 16 }
 0x1ec   : > { %v3668_v41 = vsel %vm7827_vm9, %v3666_v27, %v3667_v26  ;;  %v3002_v54 = vshll.u32 %v2908_v7, 16  ;;  %v3665_v13 = vsel %vm7827_vm9, %v6775_v33, %v3664_v59 }
 0x1ed   : > { %v2800_v57 = vpop.f32.mrf.mxu0  ;;  %v5084_v53 = vsel %vm7827_vm9, %v5082_v55, %v5083_v36  ;;  %v8438_v2 = vrot.slane %v3008_v9, 5 }
 0x1ee   : > { %v8398_v1 = vadd.f32 %v2800_v57, %v8172_v34  ;;  %v2140_v16 = vpop.f32.mrf.mxu2  ;;  %v2997_v34 = vsel %vm7838_vm12, %v2992_v52, %v2996_v5  ;;  %v3012_v52 = vshrl.u32 %v8375_v25, 16  ;;  %v7208_v57 = vld [vmem:[#allocation2 + $0x24] sm:$0xff]  ;;  %v5195_v27 = vunpack.c.l.b16 %v5084_v53 }
 0x1ef   : > { %v1896_v15 = vpop.f32.mrf.mxu1  ;;  %v6951_v5 = vrot.slane %v5009_v39, 9  ;;  %v5090_v25 = vrot.slane %v8414_v20, 5  ;;  %v3346_v26 = vunpack.c.l.b16 %v2997_v34  ;;  %v3004_v36 = vrot.slane %v3002_v54, 5 }
 0x1f0   : > { %9801 = vst [vmem:[#allocation19_spill] sm:$0xff] %v8398_v1  ;;  %v2518_v3 = vpop.f32.mrf.mxu3  ;;  %v2138_v32 = vadd.f32 %v2137_v30, %v1896_v15  ;;  %6735 = vmatmul.msk.bf16.gmra.mxu0 %vm512_vm0, %v7189_v4  ;;  %v8416_v30 = vpack.c.b16 %v5193_v29, %v5192_v6  ;;  %v5194_v4 = vunpack.c.l.b16 %v5081_v50  ;;  %v5089_v15 = vrot.slane %v5087_v10, 4 }
 0x1f1   : > { %v3774_v6 = vunpack.c.l.b16 %v3668_v41  ;;  %v5088_v7 = vsel %vm7827_vm9, %v6951_v5, %v5087_v10  ;;  %v3014_v60 = vrot.slane %v3012_v52, 4  ;;  %v3001_v50 = vrot.slane %v2999_v44, 4  ;;  %v8443_v5 = vld [vmem:[#allocation2 + $0x40] sm:$0xf] }
 0x1f2   : > { %9802 = vst [vmem:[#allocation20_spill] sm:$0xff] %v8416_v30  ;;  %v8418_v38 = vadd.f32 %v2518_v3, %v2138_v32  ;;  %v8431_v29 = vpack.c.b16 %v5195_v27, %v5194_v4  ;;  %v5091_v59 = vsel %vm7827_vm9, %v5089_v15, %v5090_v25  ;;  %v3345_v32 = vunpack.c.l.b16 %v2987_v8  ;;  %v8452_v25 = vld [vmem:[#allocation2 + $0x44] sm:$0x1]  ;;  %v7229_v30 = vld [vmem:[#allocation8 + $0xf0] sm:$0xff] }
 0x1f3   : > { %v5197_v34 = vunpack.c.l.b16 %v5091_v59  ;;  %v3773_v53 = vunpack.c.l.b16 %v3665_v13  ;;  %v5196_v4 = vunpack.c.l.b16 %v5088_v7  ;;  %v3015_v9 = vor.u32 %v3014_v60, %v8438_v2  ;;  %v5010_v13 = vld [vmem:[#allocation2 + $0x3c] sm:$0xe]  ;;  %v8458_v60 = vld [vmem:[#allocation2 + $0x38] sm:$0x1]  ;;  %4891 = vmatpush.bf16.msra.mxu0 %v7229_v30 }
 0x1f4   : > { %9803 = vst [vmem:[#allocation21_spill] sm:$0xff] %v8431_v29  ;;  %v3376_v27 = vpack.c.b16 %v3346_v26, %v3345_v32  ;;  %v3005_v44 = vor.u32 %v3004_v36, %v3001_v50  ;;  %v3018_v8 = vshll.u32 %v8389_v46, 16  ;;  %v3587_v32 = vld [vmem:[#allocation2 + $0x30] sm:$0xe]  ;;  %v6952_v36 = vrot.slane %v5010_v13, 9 }
 0x1f5   : > { %6902 = vmatmul.msk.bf16.gmra.mxu3 %vm512_vm0, %v7208_v57  ;;  %v2802_v3 = vpop.f32.mrf.mxu0  ;;  %v2912_v57 = vld [vmem:[#allocation2 + $0x34] sm:$0xf]  ;;  %v8445_v52 = vpack.c.b16 %v5197_v34, %v5196_v4  ;;  %v3016_v7 = vrot.slane %v3015_v9, 4  ;;  %v2911_v4 = vld [vmem:[#allocation2 + $0x30] sm:$0xf]  ;;  %v3674_v9 = vrot.slane %v8458_v60, 5 }
 0x1f6   : > { %v8436_v55 = vadd.f32 %v2802_v3, %v8189_v21  ;;  %v2142_v41 = vpop.f32.mrf.mxu2  ;;  %v3803_v21 = vpack.c.b16 %v3774_v6, %v3773_v53  ;;  %v3671_v54 = vrot.slane %v2912_v57, 5  ;;  %v5094_v3 = vrot.slane %v8443_v5, 5  ;;  %v7190_v6 = vld [vmem:[#allocation2 + $0x90] sm:$0xff]  ;;  %v3588_v30 = vld [vmem:[#allocation2 + $0x3c] sm:$0xe] }
 0x1f7   : > { %v1899_v39 = vpop.f32.mrf.mxu1  ;;  %9805 = vst [vmem:[#allocation23_spill] sm:$0xff] %v8445_v52  ;;  %v3020_v53 = vrot.slane %v3018_v8, 5  ;;  %v3026_v52 = vshll.u32 %v2911_v4, 16 }
 0x1f8   : > { %9804 = vst [vmem:[#allocation22_spill] sm:$0xff] %v8436_v55  ;;  %v2521_v33 = vpop.f32.mrf.mxu3  ;;  %v2141_v10 = vadd.f32 %v2140_v16, %v1899_v39  ;;  %v3673_v50 = vrot.slane %v3671_v54, 4  ;;  %v5096_v34 = vrot.slane %v5094_v3, 4 }
 0x1fa   : > { %v8447_v15 = vadd.f32 %v2521_v33, %v2141_v10  ;;  %6758 = vmatmul.msk.bf16.gmra.mxu1 %vm512_vm0, %v3376_v27  ;;  %v3006_v33 = vrot.slane %v3005_v44, 4  ;;  %v3032_v10 = vshll.u32 %v2912_v57, 16  ;;  %v3036_v27 = vshrl.u32 %v2912_v57, 16 }
 0x1fb   : > { %6807 = vmatmul.msk.bf16.gmra.mxu2 %vm512_vm0, %v3803_v21  ;;  %v5095_v44 = vsel %vm7827_vm9, %v6952_v36, %v5094_v3 }
 0x1fc   : > { %v3011_v13 = vsel %vm7838_vm12, %v3006_v33, %v8438_v2  ;;  %v8476_v3 = vrot.slane %v3032_v10, 5  ;;  %v3038_v36 = vrot.slane %v3036_v27, 4  ;;  %v5198_v29 = vunpack.c.l.b16 %v5095_v44 }
 0x1fd   : > { %v2805_v16 = vpop.f32.mrf.mxu0 }
 0x1fe   : > { %v8456_v26 = vadd.f32 %v2805_v16, %v8205_v61  ;;  %v2145_v39 = vpop.f32.mrf.mxu2  ;;  %v5097_v61 = vrot.slane %v8452_v25, 5  ;;  %v3021_v16 = vsel %vm7838_vm12, %v3016_v7, %v3020_v53 }
 0x1ff   : > { %v1901_v46 = vpop.f32.mrf.mxu1  ;;  %v3348_v33 = vunpack.c.l.b16 %v3021_v16 }
 0x200   : > { %9806 = vst [vmem:[#allocation24_spill] sm:$0xff] %v8456_v26  ;;  %v2523_v59 = vpop.f32.mrf.mxu3  ;;  %6736 = vmatmul.msk.bf16.gmra.mxu0 %vm512_vm0, %v7190_v6  ;;  %v2143_v21 = vadd.f32 %v2142_v41, %v1901_v46  ;;  %v6776_v6 = vrot.slane %v3587_v32, 9  ;;  %v5098_v8 = vsel %vm7827_vm9, %v5096_v34, %v5097_v61  ;;  %v3675_v41 = vsel %vm7827_vm9, %v3673_v50, %v3674_v9 }
 0x201   : > { %v3023_v46 = vshrl.u32 %v2911_v4, 16  ;;  %v5199_v2 = vunpack.c.l.b16 %v5098_v8  ;;  %v3776_v34 = vunpack.c.l.b16 %v3675_v41  ;;  %v3347_v50 = vunpack.c.l.b16 %v3011_v13  ;;  %v7233_v41 = vld [vmem:[#allocation8 + $0x110] sm:$0xff] }
 0x202   : > { %v8472_v57 = vadd.f32 %v2523_v59, %v2143_v21  ;;  %v3672_v32 = vsel %vm7827_vm9, %v6776_v6, %v3671_v54  ;;  %v3028_v21 = vrot.slane %v3026_v52, 5  ;;  %v3039_v9 = vor.u32 %v3038_v36, %v8476_v3  ;;  %v8488_v6 = vld [vmem:[#allocation2 + $0x4c] sm:$0xf]  ;;  %5317 = vmatpush.bf16.msra.mxu1 %v7233_v41 }
 0x203   : > { %v8484_v53 = vpack.c.b16 %v5199_v2, %v5198_v29  ;;  %v3775_v61 = vunpack.c.l.b16 %v3672_v32  ;;  %v3025_v27 = vrot.slane %v3023_v46, 4  ;;  %v3377_v8 = vpack.c.b16 %v3348_v33, %v3347_v50  ;;  %v8494_v2 = vld [vmem:[#allocation2 + $0x44] sm:$0x1]  ;;  %v7191_v32 = vld [vmem:[#allocation2 + $0x9c] sm:$0xff] }
 0x204   : > { %v3040_v46 = vrot.slane %v3039_v9, 4 }
 0x205   : > { %6903 = vmatmul.msk.bf16.gmra.mxu3 %vm512_vm0, %v7209_v14  ;;  %v2807_v7 = vpop.f32.mrf.mxu0  ;;  %9808 = vst [vmem:[#allocation26_spill] sm:$0xff] %v8484_v53  ;;  %v2915_v14 = vld [vmem:[#allocation2 + $0x40] sm:$0xf]  ;;  %v3804_v54 = vpack.c.b16 %v3776_v34, %v3775_v61  ;;  %v3029_v52 = vor.u32 %v3028_v21, %v3025_v27  ;;  %v2914_v53 = vld [vmem:[#allocation2 + $0x3c] sm:$0xf] }
 0x206   : > { %v8482_v59 = vadd.f32 %v2807_v7, %v8222_v49  ;;  %v2147_v16 = vpop.f32.mrf.mxu2  ;;  %v3042_v49 = vshll.u32 %v8458_v60, 16  ;;  %v3678_v13 = vrot.slane %v2915_v14, 5  ;;  %v8496_v7 = vld [vmem:[#allocation2 + $0x50] sm:$0x1]  ;;  %v5101_v60 = vrot.slane %v8488_v6, 5 }
 0x207   : > { %v1904_v4 = vpop.f32.mrf.mxu1  ;;  %v3030_v21 = vrot.slane %v3029_v52, 4  ;;  %v3056_v41 = vshll.u32 %v2915_v14, 16 }
 0x208   : > { %9807 = vst [vmem:[#allocation25_spill] sm:$0xff] %v8482_v59  ;;  %v2526_v10 = vpop.f32.mrf.mxu3  ;;  %v2146_v44 = vadd.f32 %v2145_v39, %v1904_v4  ;;  %v5011_v39 = vld [vmem:[#allocation2 + $0x48] sm:$0xe]  ;;  %v3044_v34 = vrot.slane %v3042_v49, 5  ;;  %v3680_v50 = vrot.slane %v3678_v13, 4  ;;  %v3060_v49 = vshrl.u32 %v2915_v14, 16 }
 0x209   : > { %v6953_v4 = vrot.slane %v5011_v39, 9 }
 0x20a   : > { %v8490_v29 = vadd.f32 %v2526_v10, %v2146_v44  ;;  %6759 = vmatmul.msk.bf16.gmra.mxu1 %vm512_vm0, %v3377_v8  ;;  %v5103_v10 = vrot.slane %v5101_v60, 4  ;;  %v3045_v9 = vsel %vm7838_vm12, %v3040_v46, %v3044_v34  ;;  %v3681_v44 = vrot.slane %v8494_v2, 5 }
 0x20b   : > { %6808 = vmatmul.msk.bf16.gmra.mxu2 %vm512_vm0, %v3804_v54  ;;  %v5104_v8 = vrot.slane %v8496_v7, 5  ;;  %v5102_v39 = vsel %vm7827_vm9, %v6953_v4, %v5101_v60  ;;  %v3035_v46 = vsel %vm7838_vm12, %v3030_v21, %v8476_v3  ;;  %v3350_v34 = vunpack.c.l.b16 %v3045_v9  ;;  %v8528_v9 = vld [vmem:[#allocation2 + $0x4c] sm:$0xf] }
 0x20c   : > { %v5200_v60 = vunpack.c.l.b16 %v5102_v39  ;;  %v3349_v3 = vunpack.c.l.b16 %v3035_v46  ;;  %v3685_v46 = vrot.slane %v8528_v9, 5 }
 0x20d   : > { %v2810_v36 = vpop.f32.mrf.mxu0 }
 0x20e   : > { %v8500_v33 = vadd.f32 %v2810_v36, %v8238_v31  ;;  %v2150_v54 = vpop.f32.mrf.mxu2  ;;  %v6777_v36 = vrot.slane %v3588_v30, 9  ;;  %v3378_v39 = vpack.c.b16 %v3350_v34, %v3349_v3  ;;  %v3080_v34 = vshll.u32 %v8528_v9, 16 }
 0x20f   : > { %v1906_v61 = vpop.f32.mrf.mxu1 }
 0x210   : > { %9809 = vst [vmem:[#allocation27_spill] sm:$0xff] %v8500_v33  ;;  %v2528_v27 = vpop.f32.mrf.mxu3  ;;  %6737 = vmatmul.msk.bf16.gmra.mxu0 %vm512_vm0, %v7191_v32  ;;  %v2148_v31 = vadd.f32 %v2147_v16, %v1906_v61  ;;  %v5105_v32 = vsel %vm7827_vm9, %v5103_v10, %v5104_v8  ;;  %v3682_v16 = vsel %vm7827_vm9, %v3680_v50, %v3681_v44  ;;  %v3047_v10 = vshrl.u32 %v2914_v53, 16 }
 0x211   : > { %v3679_v14 = vsel %vm7827_vm9, %v6777_v36, %v3678_v13  ;;  %v5201_v30 = vunpack.c.l.b16 %v5105_v32  ;;  %v3050_v61 = vshll.u32 %v2914_v53, 16  ;;  %v3062_v8 = vrot.slane %v3060_v49, 4 }
 0x212   : > { %v8511_v52 = vadd.f32 %v2528_v27, %v2148_v31  ;;  %v8521_v27 = vrot.slane %v3056_v41, 5  ;;  %v3778_v21 = vunpack.c.l.b16 %v3682_v16  ;;  %v3777_v36 = vunpack.c.l.b16 %v3679_v14  ;;  %v8533_v16 = vld [vmem:[#allocation2 + $0x58] sm:$0xf]  ;;  %v2919_v14 = vld [vmem:[#allocation2 + $0x50] sm:$0x1] }
 0x213   : > { %v8526_v50 = vpack.c.b16 %v5201_v30, %v5200_v60  ;;  %v3049_v33 = vrot.slane %v3047_v10, 4  ;;  %v3052_v53 = vrot.slane %v3050_v61, 5  ;;  %v2917_v30 = vld [vmem:[#allocation2 + $0x48] sm:$0xf]  ;;  %v5108_v3 = vrot.slane %v8533_v16, 5 }
 0x214   : > { %v3063_v41 = vor.u32 %v3062_v8, %v8521_v27  ;;  %v3805_v49 = vpack.c.b16 %v3778_v21, %v3777_v36  ;;  %v5012_v8 = vld [vmem:[#allocation2 + $0x54] sm:$0xe]  ;;  %v3071_v36 = vshrl.u32 %v2917_v30, 16 }
 0x215   : > { %6904 = vmatmul.msk.bf16.gmra.mxu3 %vm512_vm0, %v7210_v12  ;;  %v2812_v4 = vpop.f32.mrf.mxu0  ;;  %9811 = vst [vmem:[#allocation29_spill] sm:$0xff] %v8526_v50  ;;  %v3053_v10 = vor.u32 %v3052_v53, %v3049_v33  ;;  %v3074_v50 = vshll.u32 %v2917_v30, 16  ;;  %v3688_v53 = vrot.slane %v2919_v14, 5 }
 0x216   : > { %v8524_v31 = vadd.f32 %v2812_v4, %v8255_v23  ;;  %v2152_v32 = vpop.f32.mrf.mxu2  ;;  %v3066_v23 = vshll.u32 %v8494_v2, 16  ;;  %v3064_v61 = vrot.slane %v3063_v41, 4  ;;  %v4342_v2 = vld [vmem:[#allocation2 + $0x5c] sm:$0x1]  ;;  %v6954_v41 = vrot.slane %v5012_v8, 9  ;;  %v7211_v8 = vld [vmem:[#allocation2 + $0x48] sm:$0xff] }
 0x217   : > { %v1909_v13 = vpop.f32.mrf.mxu1  ;;  %v5111_v26 = vrot.slane %v4342_v2, 5  ;;  %v3073_v2 = vrot.slane %v3071_v36, 4  ;;  %v2921_v36 = vld [vmem:[#allocation2 + $0x58] sm:$0xf] }
 0x218   : > { %9810 = vst [vmem:[#allocation28_spill] sm:$0xff] %v8524_v31  ;;  %v2531_v44 = vpop.f32.mrf.mxu3  ;;  %v2151_v12 = vadd.f32 %v2150_v54, %v1909_v13  ;;  %v3084_v54 = vshrl.u32 %v8528_v9, 16  ;;  %v7192_v13 = vld [vmem:[#allocation2 + $0xa8] sm:$0xff]  ;;  %v8545_v9 = vrot.slane %v3080_v34, 5  ;;  %v5110_v31 = vrot.slane %v5108_v3, 4 }
 0x219   : > { %v5109_v34 = vsel %vm7827_vm9, %v6954_v41, %v5108_v3 }
 0x21a   : > { %v8535_v60 = vadd.f32 %v2531_v44, %v2151_v12  ;;  %6760 = vmatmul.msk.bf16.gmra.mxu1 %vm512_vm0, %v3378_v39  ;;  %v3068_v44 = vrot.slane %v3066_v23, 5  ;;  %v3687_v39 = vrot.slane %v3685_v46, 4  ;;  %v3589_v12 = vld [vmem:[#allocation2 + $0x48] sm:$0xe] }
 0x21b   : > { %6809 = vmatmul.msk.bf16.gmra.mxu2 %vm512_vm0, %v3805_v49  ;;  %v3086_v49 = vrot.slane %v3084_v54, 4  ;;  %v5112_v54 = vsel %vm7827_vm9, %v5110_v31, %v5111_v26  ;;  %v3090_v26 = vshll.u32 %v2919_v14, 16  ;;  %v2920_v14 = vld [vmem:[#allocation2 + $0x54] sm:$0xf] }
 0x21c   : > { %v3069_v23 = vsel %vm7838_vm12, %v3064_v61, %v3068_v44  ;;  %v3689_v30 = vsel %vm7827_vm9, %v3687_v39, %v3688_v53  ;;  %v5203_v61 = vunpack.c.l.b16 %v5112_v54 }
 0x21d   : > { %v2815_v4 = vpop.f32.mrf.mxu0  ;;  %v3352_v39 = vunpack.c.l.b16 %v3069_v23  ;;  %v3092_v1 = vrot.slane %v3090_v26, 5 }
 0x21e   : > { %v8543_v21 = vadd.f32 %v2815_v4, %v8271_v63  ;;  %v2155_v63 = vpop.f32.mrf.mxu2  ;;  %v3054_v4 = vrot.slane %v3053_v10, 4 }
 0x21f   : > { %v1911_v59 = vpop.f32.mrf.mxu1 }
 0x220   : > { %9812 = vst [vmem:[#allocation30_spill] sm:$0xff] %v8543_v21  ;;  %v2533_v33 = vpop.f32.mrf.mxu3  ;;  %6738 = vmatmul.msk.bf16.gmra.mxu0 %vm512_vm0, %v7192_v13  ;;  %v2153_v55 = vadd.f32 %v2152_v32, %v1911_v59  ;;  %v6778_v21 = vrot.slane %v3589_v12, 9  ;;  %v3076_v59 = vrot.slane %v3074_v50, 5  ;;  %v3087_v32 = vor.u32 %v3086_v49, %v8545_v9 }
 0x221   : > { %v3059_v10 = vsel %vm7838_vm12, %v3054_v4, %v8521_v27  ;;  %v3780_v50 = vunpack.c.l.b16 %v3689_v30 }
 0x222   : > { %v8556_v13 = vadd.f32 %v2533_v33, %v2153_v55  ;;  %v3686_v3 = vsel %vm7827_vm9, %v6778_v21, %v3685_v46  ;;  %v5202_v55 = vunpack.c.l.b16 %v5109_v34  ;;  %v3351_v12 = vunpack.c.l.b16 %v3059_v10  ;;  %v3590_v34 = vld [vmem:[#allocation2 + $0x54] sm:$0xe] }
 0x223   : > { %v3077_v49 = vor.u32 %v3076_v59, %v3073_v2  ;;  %v3088_v33 = vrot.slane %v3087_v32, 4  ;;  %v3779_v4 = vunpack.c.l.b16 %v3686_v3  ;;  %v3692_v46 = vrot.slane %v2921_v36, 5  ;;  %v7228_v32 = vld [vmem:[#allocation8 + $0xe8] sm:$0xff] }
 0x224   : > { %9813 = vst [vmem:[#allocation31_spill] sm:$0xff] %v8556_v13  ;;  %v8568_v53 = vpack.c.b16 %v5203_v61, %v5202_v55  ;;  %v3095_v10 = vshrl.u32 %v2920_v14, 16  ;;  %v3098_v61 = vshll.u32 %v2920_v14, 16  ;;  %v6779_v55 = vrot.slane %v3590_v34, 9  ;;  %4892 = vmatpush.bf16.msra.mxu0 %v7228_v32 }
 0x225   : > { %6905 = vmatmul.msk.bf16.gmra.mxu3 %vm512_vm0, %v7211_v8  ;;  %v2817_v44 = vpop.f32.mrf.mxu0  ;;  %v3379_v8 = vpack.c.b16 %v3352_v39, %v3351_v12  ;;  %v3806_v21 = vpack.c.b16 %v3780_v50, %v3779_v4  ;;  %v3078_v2 = vrot.slane %v3077_v49, 4  ;;  %v3093_v59 = vsel %vm7838_vm12, %v3088_v33, %v3092_v1  ;;  %v8578_v39 = vld [vmem:[#allocation2 + $0x64] sm:$0xf]  ;;  %v7193_v1 = vld [vmem:[#allocation2 + $0xb4] sm:$0xff] }
 0x226   : > { %v8566_v31 = vadd.f32 %v2817_v44, %v8289_v0  ;;  %9815 = vst [vmem:[#allocation33_spill] sm:$0xff] %v8568_v53  ;;  %v2157_v23 = vpop.f32.mrf.mxu2  ;;  %v3104_v0 = vshll.u32 %v2921_v36, 16  ;;  %v3108_v44 = vshrl.u32 %v2921_v36, 16  ;;  %v3694_v50 = vrot.slane %v3692_v46, 4  ;;  %v8591_v4 = vld [vmem:[#allocation2 + $0x64] sm:$0xf] }
 0x227   : > { %v1914_v27 = vpop.f32.mrf.mxu1  ;;  %9817 = vst [vmem:[#allocation35_spill] sm:$0xff] %v8578_v39  ;;  %v3083_v26 = vsel %vm7838_vm12, %v3078_v2, %v8545_v9  ;;  %v8586_v12 = vunpack.c.l.b16 %v3093_v59  ;;  %v3100_v34 = vrot.slane %v3098_v61, 5  ;;  %v7227_v59 = vld [vmem:[#allocation8 + $0xe0] sm:$0xff]  ;;  %v4383_v61 = vshll.u32 %v8370_v18, 16 }
 0x228   : > { %9814 = vst [vmem:[#allocation32_spill] sm:$0xff] %v8566_v31  ;;  %v2536_v41 = vpop.f32.mrf.mxu3  ;;  %v2156_v54 = vadd.f32 %v2155_v63, %v1914_v27  ;;  %v8576_v63 = vld [vmem:[#allocation2 + $0x5c] sm:$0x1]  ;;  %v8588_v49 = vrot.slane %v3104_v0, 5  ;;  %v3110_v33 = vrot.slane %v3108_v44, 4  ;;  %v3353_v14 = vunpack.c.l.b16 %v3083_v26  ;;  %4893 = vmatpush.bf16.msra.mxu0 %v7227_v59 }
 0x229   : > { %v4325_v27 = vld [vmem:[#allocation2 + $0x18] sm:$0xf]  ;;  %v8602_v26 = vld [vmem:[#allocation2 + $0x68] sm:$0x1]  ;;  %v5013_v31 = vld [vmem:[#allocation2 + $0x60] sm:$0xe] }
 0x22a   : > { %v8570_v30 = vadd.f32 %v2536_v41, %v2156_v54  ;;  %6761 = vmatmul.msk.bf16.gmra.mxu1 %vm512_vm0, %v3379_v8  ;;  %v3695_v41 = vrot.slane %v8576_v63, 5  ;;  %v5115_v54 = vrot.slane %v8578_v39, 5  ;;  %v4374_v32 = vshrl.u32 %v4325_v27, 16  ;;  %9819 = vst [vmem:[#allocation37_spill] sm:$0xff] %v8602_v26 }
 0x22b   : > { %6810 = vmatmul.msk.bf16.gmra.mxu2 %vm512_vm0, %v3806_v21  ;;  %v3097_v21 = vrot.slane %v3095_v10, 4  ;;  %v3380_v53 = vpack.c.b16 %v8586_v12, %v3353_v14  ;;  %v7212_v10 = vld [vmem:[#allocation2 + $0x54] sm:$0xff]  ;;  %v8610_v14 = vld [vmem:[#allocation2 + $0x68] sm:$0x1]  ;;  %v5118_v59 = vrot.slane %v8602_v26, 5 }
 0x22c   : > { %9816 = vst [vmem:[#allocation34_spill] sm:$0xff] %v8570_v30  ;;  %v3696_v44 = vsel %vm7827_vm9, %v3694_v50, %v3695_v41  ;;  %v5117_v50 = vrot.slane %v5115_v54, 4  ;;  %v3702_v26 = vrot.slane %v8610_v14, 5 }
 0x22d   : > { %v2820_v3 = vpop.f32.mrf.mxu0  ;;  %v3782_v41 = vunpack.c.l.b16 %v3696_v44  ;;  %v3101_v12 = vor.u32 %v3100_v34, %v3097_v21  ;;  %v4385_v44 = vrot.slane %v4383_v61, 5  ;;  %v4328_v34 = vld [vmem:[#allocation2 + $0x24] sm:$0xf] }
 0x22e   : > { %v8584_v36 = vadd.f32 %v2820_v3, %v8307_v47  ;;  %v3693_v47 = vsel %vm7827_vm9, %v6779_v55, %v3692_v46  ;;  %v2160_v2 = vpop.f32.mrf.mxu2  ;;  %v4377_v3 = vshll.u32 %v4325_v27, 16  ;;  %v4387_v55 = vshrl.u32 %v8370_v18, 16 }
 0x22f   : > { %v1916_v9 = vpop.f32.mrf.mxu1  ;;  %v3781_v27 = vunpack.c.l.b16 %v3693_v47  ;;  %v3102_v13 = vrot.slane %v3101_v12, 4  ;;  %v8636_v12 = vld [vmem:[#allocation2 + $0x70] sm:$0xf] }
 0x230   : > { %9818 = vst [vmem:[#allocation36_spill] sm:$0xff] %v8584_v36  ;;  %v2538_v8 = vpop.f32.mrf.mxu3  ;;  %6739 = vmatmul.msk.bf16.gmra.mxu0 %vm512_vm0, %v7193_v1  ;;  %v2158_v0 = vadd.f32 %v2157_v23, %v1916_v9  ;;  %v3111_v36 = vor.u32 %v3110_v33, %v8588_v49  ;;  %v3699_v1 = vrot.slane %v8591_v4, 5  ;;  %v3591_v23 = vld [vmem:[#allocation2 + $0x60] sm:$0xe]  ;;  %v3114_v33 = vshll.u32 %v8576_v63, 16 }
 0x231   : > { %v6780_v39 = vrot.slane %v3591_v23, 9  ;;  %v4389_v21 = vrot.slane %v4387_v55, 4 }
 0x232   : > { %v8604_v46 = vadd.f32 %v2538_v8, %v2158_v0  ;;  %v4376_v8 = vrot.slane %v4374_v32, 4  ;;  %v4379_v0 = vrot.slane %v4377_v3, 5  ;;  %v3112_v18 = vrot.slane %v3111_v36, 4 }
 0x233   : > { %v3701_v47 = vrot.slane %v3699_v1, 4  ;;  %v3116_v23 = vrot.slane %v3114_v33, 5  ;;  %v3700_v61 = vsel %vm7827_vm9, %v6780_v39, %v3699_v1  ;;  %v3107_v39 = vsel %vm7838_vm12, %v3102_v13, %v8588_v49 }
 0x234   : > { %9820 = vst [vmem:[#allocation38_spill] sm:$0xff] %v8604_v46  ;;  %v6955_v46 = vrot.slane %v5013_v31, 9  ;;  %v3807_v31 = vpack.c.b16 %v3782_v41, %v3781_v27  ;;  %v4380_v55 = vor.u32 %v4379_v0, %v4376_v8  ;;  %v7194_v41 = vld [vmem:[#allocation2 + $0xc0] sm:$0xff]  ;;  %v4407_v1 = vshll.u32 %v8385_v45, 16 }
 0x235   : > { %6906 = vmatmul.msk.bf16.gmra.mxu3 %vm512_vm0, %v7212_v10  ;;  %v2822_v9 = vpop.f32.mrf.mxu0  ;;  %v5119_v10 = vsel %vm7827_vm9, %v5117_v50, %v5118_v59  ;;  %v3117_v27 = vsel %vm7838_vm12, %v3112_v18, %v3116_v23  ;;  %v3783_v8 = vunpack.c.l.b16 %v3700_v61 }
 0x236   : > { %v8614_v30 = vadd.f32 %v2822_v9, %v8330_v51  ;;  %v5116_v63 = vsel %vm7827_vm9, %v6955_v46, %v5115_v54  ;;  %v5205_v51 = vunpack.c.l.b16 %v5119_v10  ;;  %v2162_v36 = vpop.f32.mrf.mxu2  ;;  %v3703_v54 = vsel %vm7827_vm9, %v3701_v47, %v3702_v26 }
 0x237   : > { %v1919_v32 = vpop.f32.mrf.mxu1  ;;  %v4398_v46 = vshrl.u32 %v4328_v34, 16  ;;  %v5204_v50 = vunpack.c.l.b16 %v5116_v63  ;;  %v4411_v26 = vshrl.u32 %v8385_v45, 16  ;;  %v3784_v0 = vunpack.c.l.b16 %v3703_v54 }
 0x238   : > { %9821 = vst [vmem:[#allocation39_spill] sm:$0xff] %v8614_v30  ;;  %v2541_v3 = vpop.f32.mrf.mxu3  ;;  %v2161_v9 = vadd.f32 %v2160_v2, %v1919_v32  ;;  %v4401_v30 = vshll.u32 %v4328_v34, 16  ;;  %v4390_v2 = vor.u32 %v4389_v21, %v4385_v44  ;;  %v4381_v18 = vrot.slane %v4380_v55, 4  ;;  %v8641_v21 = vld [vmem:[#allocation2 + $0x30] sm:$0xf] }
 0x239   : > { %v8638_v33 = vpack.c.b16 %v5205_v51, %v5204_v50  ;;  %v4393_v47 = vshll.u32 %v8380_v24, 16  ;;  %v8646_v13 = vunpack.c.l.b16 %v3117_v27  ;;  %v4400_v49 = vrot.slane %v4398_v46, 4 }
 0x23a   : > { %v8625_v59 = vadd.f32 %v2541_v3, %v2161_v9  ;;  %6762 = vmatmul.msk.bf16.gmra.mxu1 %vm512_vm0, %v3380_v53  ;;  %v4403_v63 = vrot.slane %v4401_v30, 5  ;;  %v8648_v45 = vunpack.c.l.b16 %v3107_v39  ;;  %v4386_v10 = vsel %vm7838_vm12, %v4381_v18, %v4385_v44  ;;  %v5014_v39 = vld [vmem:[#allocation2 + $0x6c] sm:$0xe] }
 0x23b   : > { %6811 = vmatmul.msk.bf16.gmra.mxu2 %vm512_vm0, %v3807_v31  ;;  %9822 = vst [vmem:[#allocation40_spill] sm:$0xff] %v8638_v33  ;;  %v4391_v32 = vrot.slane %v4390_v2, 4  ;;  %v5122_v3 = vrot.slane %v8636_v12, 5  ;;  %v8654_v24 = vrot.slane %v4407_v1, 5  ;;  %v4417_v9 = vshll.u32 %v8394_v62, 16  ;;  %v7213_v62 = vld [vmem:[#allocation2 + $0x60] sm:$0xff] }
 0x23c   : > { %v4422_v23 = vshrl.u32 %v8641_v21, 16  ;;  %v4395_v55 = vrot.slane %v4393_v47, 5  ;;  %v3128_v54 = vshll.u32 %v8591_v4, 16  ;;  %v3132_v44 = vshrl.u32 %v8591_v4, 16 }
 0x23d   : > { %v2825_v53 = vpop.f32.mrf.mxu0  ;;  %v3381_v46 = vpack.c.b16 %v8646_v13, %v8648_v45  ;;  %v3808_v50 = vpack.c.b16 %v3784_v0, %v3783_v8  ;;  %v8662_v27 = vunpack.c.l.b16 %v4386_v10  ;;  %v4404_v2 = vor.u32 %v4403_v63, %v4400_v49  ;;  %v4334_v45 = vld [vmem:[#allocation2 + $0x3c] sm:$0xf] }
 0x23e   : > { %v8644_v34 = vadd.f32 %v2825_v53, %v8345_v56  ;;  %v4413_v56 = vrot.slane %v4411_v26, 4  ;;  %v2165_v61 = vpop.f32.mrf.mxu2  ;;  %v2923_v26 = vld [vmem:[#allocation2 + $0x60] sm:$0xf]  ;;  %v4431_v53 = vshll.u32 %v8403_v28, 16  ;;  %v5124_v18 = vrot.slane %v5122_v3, 4 }
 0x23f   : > { %v1921_v31 = vpop.f32.mrf.mxu1  ;;  %v8670_v47 = vrot.slane %v4417_v9, 5  ;;  %v8672_v8 = vrot.slane %v4422_v23, 4  ;;  %v4435_v0 = vshrl.u32 %v8403_v28, 16  ;;  %v8676_v49 = vrot.slane %v3128_v54, 5 }
 0x240   : > { %9823 = vst [vmem:[#allocation41_spill] sm:$0xff] %v8644_v34  ;;  %v2543_v51 = vpop.f32.mrf.mxu3  ;;  %6740 = vmatmul.msk.bf16.gmra.mxu0 %vm512_vm0, %v7194_v41  ;;  %v2163_v30 = vadd.f32 %v2162_v36, %v1921_v31  ;;  %v4348_v41 = vld [vmem:[#allocation2 + $0x74] sm:$0x1]  ;;  %v4396_v36 = vsel %vm7838_vm12, %v4391_v32, %v4395_v55  ;;  %v4414_v4 = vor.u32 %v4413_v56, %v8654_v24  ;;  %v3134_v63 = vrot.slane %v3132_v44, 4 }
 0x241   : > { %v6956_v10 = vrot.slane %v5014_v39, 9  ;;  %v5125_v32 = vrot.slane %v4348_v41, 5  ;;  %v3122_v56 = vshll.u32 %v2923_v26, 16  ;;  %v4425_v9 = vshll.u32 %v8641_v21, 16  ;;  %v8688_v39 = vld [vmem:[#allocation2 + $0x70] sm:$0xf] }
 0x242   : > { %v8664_v1 = vadd.f32 %v2543_v51, %v2163_v30  ;;  %v3119_v51 = vshrl.u32 %v2923_v26, 16  ;;  %v4767_v23 = vunpack.c.l.b16 %v4396_v36  ;;  %v8682_v30 = vrot.slane %v4431_v53, 5 }
 0x243   : > { %v5123_v28 = vsel %vm7827_vm9, %v6956_v10, %v5122_v3  ;;  %v5126_v55 = vsel %vm7827_vm9, %v5124_v18, %v5125_v32  ;;  %v4437_v41 = vrot.slane %v4435_v0, 4  ;;  %v3135_v21 = vor.u32 %v3134_v63, %v8676_v49  ;;  %v4350_v32 = vld [vmem:[#allocation2 + $0x7c] sm:$0xf] }
 0x244   : > { %v4405_v36 = vrot.slane %v4404_v2, 4  ;;  %v4415_v53 = vrot.slane %v4414_v4, 4  ;;  %v3124_v34 = vrot.slane %v3122_v56, 5  ;;  %v8691_v3 = vrot.slane %v4425_v9, 5 }
 0x245   : > { %6907 = vmatmul.msk.bf16.gmra.mxu3 %vm512_vm0, %v7213_v62  ;;  %v2827_v13 = vpop.f32.mrf.mxu0  ;;  %v4449_v62 = vshll.u32 %v4334_v45, 16  ;;  %v5206_v10 = vunpack.c.l.b16 %v5123_v28  ;;  %v3138_v0 = vshll.u32 %v8610_v14, 16  ;;  %v4438_v2 = vor.u32 %v4437_v41, %v8682_v30 }
 0x246   : > { %v8679_v31 = vadd.f32 %v2827_v13, %v8357_v37  ;;  %v4446_v37 = vshrl.u32 %v4334_v45, 16  ;;  %v5207_v13 = vunpack.c.l.b16 %v5126_v55  ;;  %v2167_v33 = vpop.f32.mrf.mxu2  ;;  %v3706_v45 = vrot.slane %v8688_v39, 5 }
 0x247   : > { %v1924_v54 = vpop.f32.mrf.mxu1  ;;  %v8705_v63 = vrot.slane %v4449_v62, 5  ;;  %v8711_v14 = vadd.f32 %v8103_v48, %v8111_v17  ;;  %v3136_v56 = vrot.slane %v3135_v21, 4  ;;  %v4798_v28 = vpack.c.b16 %v4767_v23, %v8662_v27  ;;  %v3592_v48 = vld [vmem:[#allocation2 + $0x6c] sm:$0xe]  ;;  %v5015_v23 = vld [vmem:[#allocation2 + $0x78] sm:$0xe] }
 0x248   : > { %9824 = vst [vmem:[#allocation42_spill] sm:$0xff] %v8679_v31  ;;  %v2546_v44 = vpop.f32.mrf.mxu3  ;;  %v2166_v26 = vadd.f32 %v2165_v61, %v1924_v54  ;;  %v3121_v31 = vrot.slane %v3119_v51, 4  ;;  %v4410_v61 = vsel %vm7838_vm12, %v4405_v36, %v8654_v24  ;;  %v8703_v4 = vrot.slane %v4446_v37, 4  ;;  %v8720_v54 = vld [vmem:[#allocation2 + $0x74] sm:$0x1] }
 0x249   : > { %v8707_v51 = vpack.c.b16 %v5207_v13, %v5206_v10  ;;  %v4420_v24 = vsel %vm7838_vm12, %v4415_v53, %v8670_v47  ;;  %v3140_v41 = vrot.slane %v3138_v0, 5  ;;  %v3708_v17 = vrot.slane %v3706_v45, 4  ;;  %v2926_v10 = vld [vmem:[#allocation2 + $0x6c] sm:$0xf] }
 0x24a   : > { %v8693_v18 = vadd.f32 %v2546_v44, %v2166_v26  ;;  %6763 = vmatmul.msk.bf16.gmra.mxu1 %vm512_vm0, %v3381_v46  ;;  %v3125_v55 = vor.u32 %v3124_v34, %v3121_v31  ;;  %v4441_v44 = vshll.u32 %v8414_v20, 16  ;;  %v8723_v37 = vunpack.c.l.b16 %v4410_v61 }
 0x24b   : > { %6812 = vmatmul.msk.bf16.gmra.mxu2 %vm512_vm0, %v3808_v50  ;;  %9825 = vst [vmem:[#allocation43_spill] sm:$0xff] %v8707_v51  ;;  %v7232_v50 = vld [vmem:[#allocation8 + $0x108] sm:$0xff]  ;;  %v5129_v62 = vrot.slane %v4350_v32, 5  ;;  %v4428_v34 = vor.u32 %v8691_v3, %v8672_v8  ;;  %v8730_v27 = vrot.slane %v4438_v2, 4  ;;  %v4452_v31 = vor.u32 %v8705_v63, %v8703_v4  ;;  %v7214_v4 = vld [vmem:[#allocation2 + $0x6c] sm:$0xff] }
 0x24c   : > { %5318 = vmatpush.bf16.msra.mxu1 %v7232_v50  ;;  %v3141_v36 = vsel %vm7838_vm12, %v3136_v56, %v3140_v41  ;;  %v3709_v53 = vrot.slane %v8720_v54, 5  ;;  %v4455_v0 = vshll.u32 %v8443_v5, 16  ;;  %v3126_v61 = vrot.slane %v3125_v55, 4  ;;  %v4351_v2 = vld [vmem:[#allocation2 + $0x80] sm:$0x1] }
 0x24d   : > { %v2830_v46 = vpop.f32.mrf.mxu0  ;;  %v6781_v32 = vrot.slane %v3592_v48, 9  ;;  %v3152_v8 = vshll.u32 %v8688_v39, 16  ;;  %v3156_v3 = vshrl.u32 %v8688_v39, 16  ;;  %v6957_v63 = vrot.slane %v5015_v23, 9 }
 0x24e   : > { %v8717_v9 = vadd.f32 %v2830_v46, %v8382_v43  ;;  %v8726_v43 = vunpack.c.l.b16 %v4420_v24  ;;  %v2170_v21 = vpop.f32.mrf.mxu2  ;;  %v5131_v56 = vrot.slane %v5129_v62, 4  ;;  %v3131_v24 = vsel %vm7838_vm12, %v3126_v61, %v8676_v49 }
 0x24f   : > { %v1926_v13 = vpop.f32.mrf.mxu1  ;;  %v3358_v50 = vunpack.c.l.b16 %v3141_v36  ;;  %v4459_v55 = vshrl.u32 %v8443_v5, 16  ;;  %v3707_v41 = vsel %vm7827_vm9, %v6781_v32, %v3706_v45  ;;  %v3146_v48 = vshll.u32 %v2926_v10, 16 }
 0x250   : > { %v2548_v47 = vpop.f32.mrf.mxu3  ;;  %6933 = vmatmul.msk.bf16.vlgmr.msra.gmra.mxu0 %vm512_vm0, %v4798_v28  ;;  %v2168_v26 = vadd.f32 %v2167_v33, %v1926_v13  ;;  %v3710_v33 = vsel %vm7827_vm9, %v3708_v17, %v3709_v53  ;;  %v3143_v28 = vshrl.u32 %v2926_v10, 16  ;;  %v5130_v17 = vsel %vm7827_vm9, %v6957_v63, %v5129_v62  ;;  %v8763_v62 = vld [vmem:[#allocation2 + $0x7c] sm:$0xf] }
 0x251   : > { %v5132_v13 = vrot.slane %v4351_v2, 5  ;;  %v3786_v23 = vunpack.c.l.b16 %v3710_v33  ;;  %v8756_v49 = vrot.slane %v3152_v8, 5  ;;  %v3357_v36 = vunpack.c.l.b16 %v3131_v24 }
 0x252   : > { %v8740_v46 = vadd.f32 %v2548_v47, %v2168_v26  ;;  %v3158_v26 = vrot.slane %v3156_v3, 4  ;;  %v8758_v5 = vrot.slane %v4455_v0, 5  ;;  %v4465_v53 = vshll.u32 %v8452_v25, 16  ;;  %v8765_v0 = vld [vmem:[#allocation2 + $0x48] sm:$0xf] }
 0x253   : > { %v5133_v45 = vsel %vm7827_vm9, %v5131_v56, %v5132_v13  ;;  %v3785_v32 = vunpack.c.l.b16 %v3707_v41  ;;  %v4461_v2 = vrot.slane %v4459_v55, 4  ;;  %v3382_v63 = vpack.c.b16 %v3358_v50, %v3357_v36  ;;  %v4353_v55 = vld [vmem:[#allocation2 + $0x88] sm:$0xf] }
 0x254   : > { %v3145_v3 = vrot.slane %v3143_v28, 4  ;;  %v3148_v24 = vrot.slane %v3146_v48, 5  ;;  %v3159_v25 = vor.u32 %v3158_v26, %v8756_v49  ;;  %v4443_v56 = vrot.slane %v4441_v44, 5 }
 0x255   : > { %6908 = vmatmul.msk.bf16.gmra.mxu3 %vm512_vm0, %v7214_v4  ;;  %v2832_v39 = vpop.f32.mrf.mxu0  ;;  %v5209_v4 = vunpack.c.l.b16 %v5133_v45  ;;  %v3713_v50 = vrot.slane %v8763_v62, 5  ;;  %v4429_v28 = vrot.slane %v4428_v34, 4  ;;  %v4799_v48 = vpack.c.b16 %v8726_v43, %v8723_v37  ;;  %v7119_v45 = vld [vmem:[#allocation11 + $0x70] sm:$0xf]  ;;  %v7265_v37 = vld [vmem:[#allocation11 + $0x74] sm:$0xf] }
 0x256   : > { %v8754_v47 = vadd.f32 %v2832_v39, %v8418_v38  ;;  %v5208_v38 = vunpack.c.l.b16 %v5130_v17  ;;  %v2172_v8 = vpop.f32.mrf.mxu2  ;;  %v3809_v39 = vpack.c.b16 %v3786_v23, %v3785_v32  ;;  %v8780_v17 = vrot.slane %v4452_v31, 4  ;;  %v4354_v23 = vld [vmem:[#allocation2 + $0x8c] sm:$0x1] }
 0x257   : > { %v1929_v10 = vpop.f32.mrf.mxu1  ;;  %v8782_v20 = vrot.slane %v4465_v53, 5  ;;  %v4470_v44 = vshrl.u32 %v8765_v0, 16  ;;  %v3149_v36 = vor.u32 %v3148_v24, %v3145_v3  ;;  %v4444_v34 = vsel %vm7838_vm12, %v8730_v27, %v4443_v56 }
 0x258   : > { %v2551_v61 = vpop.f32.mrf.mxu3  ;;  %v2171_v33 = vadd.f32 %v2170_v21, %v1929_v10  ;;  %v8770_v13 = vpack.c.b16 %v5209_v4, %v5208_v38  ;;  %v3162_v21 = vshll.u32 %v8720_v54, 16  ;;  %v4434_v54 = vsel %vm7838_vm12, %v4429_v28, %v8682_v30  ;;  %v7266_v10 = vld [vmem:[#allocation11 + $0x74] sm:$0xf0]  ;;  %v7121_v38 = vld [vmem:[#allocation11 + $0x78] sm:$0xf0] }
 0x259   : > { %v4462_v43 = vor.u32 %v4461_v2, %v8758_v5  ;;  %v3160_v53 = vrot.slane %v3159_v25, 4  ;;  %v7120_v32 = vor.u32 %v7266_v10, %v7119_v45  ;;  %v5136_v4 = vrot.slane %v4353_v55, 5  ;;  %v5016_v25 = vld [vmem:[#allocation2 + $0x84] sm:$0xe]  ;;  %v2929_v10 = vld [vmem:[#allocation2 + $0x78] sm:$0xf] }
 0x25a   : > { %9826 = vst [vmem:[#allocation44_spill] sm:$0xff] %v8770_v13  ;;  %v8772_v41 = vadd.f32 %v2551_v61, %v2171_v33  ;;  %6764 = vmatmul.msk.bf16.gmra.mxu1 %vm512_vm0, %v3382_v63  ;;  %v8795_v61 = vld [vmem:[#allocation2 + $0x80] sm:$0x1]  ;;  %v3164_v33 = vrot.slane %v3162_v21, 5  ;;  %v3715_v30 = vrot.slane %v3713_v50, 4  ;;  %v7124_v63 = vor.u32 %v7265_v37, %v7121_v38 }
 0x25b   : > { %6813 = vmatmul.msk.bf16.gmra.mxu2 %vm512_vm0, %v3809_v39  ;;  %v4473_v3 = vshll.u32 %v8765_v0, 16  ;;  %v3593_v39 = vld [vmem:[#allocation2 + $0x78] sm:$0xe]  ;;  %v8799_v2 = vunpack.c.l.b16 %v4434_v54  ;;  %v5138_v56 = vrot.slane %v5136_v4, 4  ;;  %v5139_v28 = vrot.slane %v4354_v23, 5 }
 0x25c   : > { %5923 = vmatpush.bf16.msra.mxu2 %v7120_v32  ;;  %v3150_v21 = vrot.slane %v3149_v36, 4  ;;  %v3716_v45 = vrot.slane %v8795_v61, 5  ;;  %6012 = vmatpush.bf16.msra.mxu3 %v7124_v63  ;;  %v4463_v0 = vrot.slane %v4462_v43, 4  ;;  %v3176_v54 = vshll.u32 %v8763_v62, 16  ;;  %v9013_v13 = vld [vmem:[#allocation2 + $0x6c] sm:$0xf] }
 0x25d   : > { %v2835_v26 = vpop.f32.mrf.mxu0  ;;  %v5140_v37 = vsel %vm7827_vm9, %v5138_v56, %v5139_v28  ;;  %v6782_v23 = vrot.slane %v3593_v39, 9  ;;  %v6958_v38 = vrot.slane %v5016_v25, 9  ;;  %v4475_v63 = vrot.slane %v4473_v3, 5 }
 0x25e   : > { %v8793_v31 = vadd.f32 %v2835_v26, %v8447_v15  ;;  %v8801_v15 = vunpack.c.l.b16 %v4444_v34  ;;  %v3898_v55 = vpop.f32.mrf.mxu2  ;;  %v3180_v34 = vshrl.u32 %v8763_v62, 16  ;;  %v3717_v36 = vsel %vm7827_vm9, %v3715_v30, %v3716_v45 }
 0x25f   : > { %v1931_v27 = vpop.f32.mrf.mxu1  ;;  %v3155_v43 = vsel %vm7838_vm12, %v3150_v21, %v8756_v49  ;;  %v3170_v56 = vshll.u32 %v2929_v10, 16  ;;  %v5137_v39 = vsel %vm7827_vm9, %v6958_v38, %v5136_v4  ;;  %v3788_v25 = vunpack.c.l.b16 %v3717_v36 }
 0x260   : > { %v2553_v24 = vpop.f32.mrf.mxu3  ;;  %6934 = vmatmul.msk.bf16.gmra.mxu0 %vm512_vm0, %v4799_v48  ;;  %v2173_v26 = vadd.f32 %v2172_v8, %v1931_v27  ;;  %v3165_v48 = vsel %vm7838_vm12, %v3160_v53, %v3164_v33  ;;  %v7215_v8 = vld [vmem:[#allocation2 + $0x78] sm:$0xff]  ;;  %v3167_v53 = vshrl.u32 %v2929_v10, 16  ;;  %v4472_v33 = vrot.slane %v4470_v44, 4 }
 0x261   : > { %v3360_v27 = vunpack.c.l.b16 %v3165_v48  ;;  %v8825_v28 = vrot.slane %v3176_v54, 5  ;;  %v3182_v49 = vrot.slane %v3180_v34, 4  ;;  %v3359_v44 = vunpack.c.l.b16 %v3155_v43 }
 0x262   : > { %v8810_v32 = vadd.f32 %v2553_v24, %v2173_v26  ;;  %v3714_v24 = vsel %vm7827_vm9, %v6782_v23, %v3713_v50  ;;  %v4458_v3 = vsel %vm7838_vm12, %v8780_v17, %v8758_v5  ;;  %v4468_v50 = vsel %vm7838_vm12, %v4463_v0, %v8782_v20 }
 0x263   : > { %v5211_v26 = vunpack.c.l.b16 %v5140_v37  ;;  %v3787_v45 = vunpack.c.l.b16 %v3714_v24  ;;  %v4476_v10 = vor.u32 %v4475_v63, %v4472_v33  ;;  %v4479_v48 = vshll.u32 %v8488_v6, 16 }
 0x264   : > { %v5210_v54 = vunpack.c.l.b16 %v5137_v39  ;;  %v3169_v36 = vrot.slane %v3167_v53, 4  ;;  %v4483_v5 = vshrl.u32 %v8488_v6, 16  ;;  %v3172_v38 = vrot.slane %v3170_v56, 5 }
 0x265   : > { %6909 = vmatmul.msk.bf16.gmra.mxu3 %vm512_vm0, %v7215_v8  ;;  %v2837_v62 = vpop.f32.mrf.mxu0  ;;  %v3383_v8 = vpack.c.b16 %v3360_v27, %v3359_v44  ;;  %v3810_v17 = vpack.c.b16 %v3788_v25, %v3787_v45  ;;  %v3183_v20 = vor.u32 %v3182_v49, %v8825_v28  ;;  %v2557_v37 = vadd.f32 %v8114_v22, %v8711_v14  ;;  %v8860_v25 = vld [vmem:[#allocation2 + $0x8c] sm:$0x1] }
 0x266   : > { %v8823_v30 = vadd.f32 %v2837_v62, %v8472_v57  ;;  %v8834_v57 = vld [vmem:[#allocation2 + $0x88] sm:$0xf]  ;;  %v3900_v23 = vpop.f32.mrf.mxu2  ;;  %v8840_v0 = vpack.c.b16 %v5211_v26, %v5210_v54  ;;  %v3186_v6 = vshll.u32 %v8795_v61, 16  ;;  %v8850_v53 = vunpack.c.l.b16 %v4468_v50  ;;  %v3594_v50 = vld [vmem:[#allocation2 + $0x84] sm:$0xe] }
 0x267   : > { %v3472_v21 = vpop.f32.mrf.mxu1  ;;  %v3720_v33 = vrot.slane %v8834_v57, 5  ;;  %v4481_v63 = vrot.slane %v4479_v48, 5  ;;  %v8854_v24 = vunpack.c.l.b16 %v4458_v3  ;;  %v4485_v22 = vrot.slane %v4483_v5, 4  ;;  %v4340_v26 = vld [vmem:[#allocation2 + $0x54] sm:$0xf] }
 0x268   : > { %v4213_v4 = vpop.f32.mrf.mxu3  ;;  %v3552_v34 = vadd.f32 %v3472_v21, %v8319_v11  ;;  %9827 = vst [vmem:[#allocation45_spill] sm:$0xff] %v8840_v0  ;;  %v4800_v11 = vpack.c.b16 %v8801_v15, %v8799_v2  ;;  %v4489_v14 = vshll.u32 %v8496_v7, 16  ;;  %v3173_v56 = vor.u32 %v3172_v38, %v3169_v36  ;;  %v8871_v54 = vld [vmem:[#allocation2 + $0x94] sm:$0xf]  ;;  %v7216_v38 = vld [vmem:[#allocation2 + $0x84] sm:$0xff] }
 0x269   : > { %v3184_v39 = vrot.slane %v3183_v20, 4  ;;  %v4477_v2 = vrot.slane %v4476_v10, 4  ;;  %v2871_v61 = vadd.f32 %v8336_v42, %v2557_v37  ;;  %v3722_v15 = vrot.slane %v3720_v33, 4  ;;  %v2932_v10 = vld [vmem:[#allocation2 + $0x84] sm:$0xf] }
 0x26a   : > { %v3978_v43 = vadd.f32 %v3898_v55, %v3552_v34  ;;  %6765 = vmatmul.msk.bf16.gmra.mxu1 %vm512_vm0, %v3383_v8  ;;  %v3188_v3 = vrot.slane %v3186_v6, 5  ;;  %v4801_v7 = vpack.c.b16 %v8850_v53, %v8854_v24  ;;  %v3723_v45 = vrot.slane %v8860_v25, 5 }
 0x26b   : > { %6814 = vmatmul.msk.bf16.gmra.mxu2 %vm512_vm0, %v3810_v17  ;;  %v4486_v42 = vor.u32 %v4485_v22, %v4481_v63  ;;  %v8869_v48 = vrot.slane %v4489_v14, 5  ;;  %v3174_v34 = vrot.slane %v3173_v56, 4  ;;  %v3200_v36 = vshll.u32 %v8834_v57, 16 }
 0x26c   : > { %v8852_v62 = vadd.f32 %v4213_v4, %v3978_v43  ;;  %v3189_v8 = vsel %vm7838_vm12, %v3184_v39, %v3188_v3  ;;  %v3204_v5 = vshrl.u32 %v8834_v57, 16  ;;  %v6783_v20 = vrot.slane %v3594_v50, 9 }
 0x26d   : > { %v2840_v27 = vpop.f32.mrf.mxu0  ;;  %v3724_v37 = vsel %vm7827_vm9, %v3722_v15, %v3723_v45  ;;  %v3191_v6 = vshrl.u32 %v2932_v10, 16  ;;  %v3194_v56 = vshll.u32 %v2932_v10, 16  ;;  %v5017_v15 = vld [vmem:[#allocation2 + $0x90] sm:$0xe]  ;;  %v8895_v3 = vrot.slane %v4486_v42, 4 }
 0x26e   : > { %v8858_v55 = vadd.f32 %v2840_v27, %v8490_v29  ;;  %v4482_v29 = vsel %vm7838_vm12, %v4477_v2, %v4481_v63  ;;  %v3903_v4 = vpop.f32.mrf.mxu2  ;;  %v4494_v63 = vshrl.u32 %v4340_v26, 16  ;;  %v5143_v27 = vrot.slane %v8871_v54, 5 }
 0x26f   : > { %v3474_v49 = vpop.f32.mrf.mxu1  ;;  %v8879_v43 = vunpack.c.l.b16 %v4482_v29  ;;  %v3721_v14 = vsel %vm7827_vm9, %v6783_v20, %v3720_v33  ;;  %v3790_v2 = vunpack.c.l.b16 %v3724_v37  ;;  %v4503_v50 = vshll.u32 %v8533_v16, 16  ;;  %v8898_v29 = vld [vmem:[#allocation2 + $0x98] sm:$0x1] }
 0x270   : > { %v4215_v44 = vpop.f32.mrf.mxu3  ;;  %6935 = vmatmul.msk.bf16.gmra.mxu0 %vm512_vm0, %v4800_v11  ;;  %v3553_v21 = vadd.f32 %v3474_v49, %v2871_v61  ;;  %v3179_v11 = vsel %vm7838_vm12, %v3174_v34, %v8825_v28  ;;  %v8893_v61 = vrot.slane %v3200_v36, 5  ;;  %v3206_v28 = vrot.slane %v3204_v5, 4  ;;  %v8900_v34 = vld [vmem:[#allocation2 + $0x94] sm:$0xf] }
 0x271   : > { %v3361_v49 = vunpack.c.l.b16 %v3179_v11  ;;  %v3789_v33 = vunpack.c.l.b16 %v3721_v14  ;;  %v3193_v10 = vrot.slane %v3191_v6, 4  ;;  %v3196_v42 = vrot.slane %v3194_v56, 5 }
 0x272   : > { %v3979_v17 = vadd.f32 %v3900_v23, %v3553_v21  ;;  %v3362_v23 = vunpack.c.l.b16 %v3189_v8  ;;  %v5145_v8 = vrot.slane %v5143_v27, 4  ;;  %v3207_v20 = vor.u32 %v3206_v28, %v8893_v61 }
 0x273   : > { %v8905_v37 = vrot.slane %v4494_v63, 4  ;;  %v5146_v11 = vrot.slane %v8898_v29, 5  ;;  %v3210_v6 = vshll.u32 %v8860_v25, 16  ;;  %v8914_v56 = vrot.slane %v4503_v50, 5 }
 0x274   : > { %v8885_v22 = vadd.f32 %v4215_v44, %v3979_v17  ;;  %v4497_v44 = vshll.u32 %v4340_v26, 16  ;;  %v3384_v5 = vpack.c.b16 %v3362_v23, %v3361_v49  ;;  %v3811_v26 = vpack.c.b16 %v3790_v2, %v3789_v33  ;;  %v2935_v23 = vld [vmem:[#allocation2 + $0x90] sm:$0xf]  ;;  %v7264_v49 = vld [vmem:[#allocation11 + $0x64] sm:$0xf0] }
 0x275   : > { %6910 = vmatmul.msk.bf16.gmra.mxu3 %vm512_vm0, %v7216_v38  ;;  %v2842_v57 = vpop.f32.mrf.mxu0  ;;  %v6959_v38 = vrot.slane %v5017_v15, 9  ;;  %v5147_v2 = vsel %vm7827_vm9, %v5145_v8, %v5146_v11  ;;  %v3197_v15 = vor.u32 %v3196_v42, %v3193_v10  ;;  %v4492_v25 = vsel %vm7838_vm12, %v8895_v3, %v8869_v48 }
 0x276   : > { %v8891_v39 = vadd.f32 %v2842_v57, %v8511_v52  ;;  %v4507_v52 = vshrl.u32 %v8533_v16, 16  ;;  %v3905_v17 = vpop.f32.mrf.mxu2  ;;  %v3727_v16 = vrot.slane %v8900_v34, 5  ;;  %v4499_v14 = vrot.slane %v4497_v44, 5 }
 0x277   : > { %v3477_v21 = vpop.f32.mrf.mxu1  ;;  %v5213_v33 = vunpack.c.l.b16 %v5147_v2  ;;  %v3208_v50 = vrot.slane %v3207_v20, 4  ;;  %v3215_v42 = vshrl.u32 %v2935_v23, 16  ;;  %v3218_v3 = vshll.u32 %v2935_v23, 16 }
 0x278   : > { %9828 = vst [vmem:[#allocation46_spill] sm:$0xff] %v8891_v39  ;;  %v4218_v45 = vpop.f32.mrf.mxu3  ;;  %v3554_v36 = vadd.f32 %v3477_v21, %v8353_v35  ;;  %v5144_v35 = vsel %vm7827_vm9, %v6959_v38, %v5143_v27  ;;  %v4509_v63 = vrot.slane %v4507_v52, 4  ;;  %v7111_v27 = vld [vmem:[#allocation11 + $0x60] sm:$0xf]  ;;  %v7263_v21 = vld [vmem:[#allocation11 + $0x64] sm:$0xf]  ;;  %v4500_v24 = vor.u32 %v4499_v14, %v8905_v37 }
 0x279   : > { %v8927_v52 = vld [vmem:[#allocation2 + $0x98] sm:$0x1]  ;;  %v7112_v8 = vor.u32 %v7264_v49, %v7111_v27  ;;  %v3729_v10 = vrot.slane %v3727_v16, 4  ;;  %v3224_v20 = vshll.u32 %v8900_v34, 16  ;;  %v8939_v49 = vunpack.c.l.b16 %v4492_v25 }
 0x27a   : > { %v3980_v57 = vadd.f32 %v3903_v4, %v3554_v36  ;;  %6766 = vmatmul.msk.bf16.gmra.mxu1 %vm512_vm0, %v3384_v5  ;;  %v5212_v36 = vunpack.c.l.b16 %v5144_v35  ;;  %v3212_v5 = vrot.slane %v3210_v6, 5  ;;  %v3730_v27 = vrot.slane %v8927_v52, 5 }
 0x27b   : > { %6815 = vmatmul.msk.bf16.gmra.mxu2 %vm512_vm0, %v3811_v26  ;;  %v4343_v26 = vld [vmem:[#allocation2 + $0x60] sm:$0xf] }
 0x27c   : > { %v8918_v4 = vadd.f32 %v4218_v45, %v3980_v57  ;;  %v7113_v45 = vld [vmem:[#allocation11 + $0x68] sm:$0xf0]  ;;  %v3228_v57 = vshrl.u32 %v8900_v34, 16  ;;  %5924 = vmatpush.bf16.msra.mxu2 %v7112_v8  ;;  %v8935_v35 = vpack.c.b16 %v5213_v33, %v5212_v36  ;;  %v3213_v53 = vsel %vm7838_vm12, %v3208_v50, %v3212_v5 }
 0x27d   : > { %v2845_v28 = vpop.f32.mrf.mxu0  ;;  %v7116_v38 = vor.u32 %v7263_v21, %v7113_v45  ;;  %v4518_v34 = vshrl.u32 %v4343_v26, 16  ;;  %v7217_v21 = vld [vmem:[#allocation2 + $0x90] sm:$0xff]  ;;  %v3731_v25 = vsel %vm7827_vm9, %v3729_v10, %v3730_v27  ;;  %v3217_v33 = vrot.slane %v3215_v42, 4  ;;  %v7367_v42 = vld [vmem:[#allocation2 + $0x5c] sm:$0x1] }
 0x27e   : > { %v8925_v44 = vadd.f32 %v2845_v28, %v8535_v60  ;;  %v3595_v60 = vld [vmem:[#allocation2 + $0x90] sm:$0xe]  ;;  %9830 = vst [vmem:[#allocation48_spill] sm:$0xff] %v8935_v35  ;;  %v3908_v2 = vpop.f32.mrf.mxu2  ;;  %v3198_v28 = vrot.slane %v3197_v15, 4  ;;  %v3220_v8 = vrot.slane %v3218_v3, 5  ;;  %v8950_v45 = vrot.slane %v3224_v20, 5 }
 0x27f   : > { %v3479_v11 = vpop.f32.mrf.mxu1  ;;  %6013 = vmatpush.bf16.msra.mxu3 %v7116_v38  ;;  %v6784_v15 = vrot.slane %v3595_v60, 9  ;;  %v3230_v50 = vrot.slane %v3228_v57, 4  ;;  %v3792_v38 = vunpack.c.l.b16 %v3731_v25  ;;  %v4501_v10 = vrot.slane %v4500_v24, 4  ;;  %v8960_v3 = vld [vmem:[#allocation2 + $0xa0] sm:$0xf]  ;;  %v9833_v57 = vld [vmem:[#allocation35_spill] sm:$0xff] }
 0x280   : > { %9829 = vst [vmem:[#allocation47_spill] sm:$0xff] %v8925_v44  ;;  %v4220_v48 = vpop.f32.mrf.mxu3  ;;  %6936 = vmatmul.msk.bf16.gmra.mxu0 %vm512_vm0, %v4801_v7  ;;  %v3555_v6 = vadd.f32 %v3479_v11, %v8373_v19  ;;  %v4510_v7 = vor.u32 %v4509_v63, %v8914_v56  ;;  %v3203_v19 = vsel %vm7838_vm12, %v3198_v28, %v8893_v61  ;;  %v4521_v63 = vshll.u32 %v4343_v26, 16  ;;  %v9831_v61 = vld [vmem:[#allocation31_spill] sm:$0xff] }
 0x281   : > { %v3728_v14 = vsel %vm7827_vm9, %v6784_v15, %v3727_v16  ;;  %v4513_v11 = vshll.u32 %v7367_v42, 16  ;;  %v3363_v60 = vunpack.c.l.b16 %v3203_v19  ;;  %v4520_v20 = vrot.slane %v4518_v34, 4 }
 0x282   : > { %v3981_v23 = vadd.f32 %v3905_v17, %v3555_v6  ;;  %v3364_v17 = vunpack.c.l.b16 %v3213_v53  ;;  %v4527_v6 = vshll.u32 %v9833_v57, 16  ;;  %v3791_v53 = vunpack.c.l.b16 %v3728_v14 }
 0x283   : > { %v3231_v16 = vor.u32 %v3230_v50, %v8950_v45  ;;  %v4531_v26 = vshrl.u32 %v9833_v57, 16  ;;  %v3234_v19 = vshll.u32 %v8927_v52, 16  ;;  %v4515_v50 = vrot.slane %v4513_v11, 5  ;;  %v2938_v52 = vld [vmem:[#allocation2 + $0x9c] sm:$0xf]  ;;  %v9835_v11 = vld [vmem:[#allocation34_spill] sm:$0xff] }
 0x284   : > { %v8952_v36 = vadd.f32 %v4220_v48, %v3981_v23  ;;  %v4511_v48 = vrot.slane %v4510_v7, 4  ;;  %v3221_v23 = vor.u32 %v3220_v8, %v3217_v33  ;;  %v3385_v24 = vpack.c.b16 %v3364_v17, %v3363_v60  ;;  %v8979_v57 = vld [vmem:[#allocation2 + $0xa4] sm:$0x1] }
 0x285   : > { %6911 = vmatmul.msk.bf16.gmra.mxu3 %vm512_vm0, %v7217_v21  ;;  %v2847_v37 = vpop.f32.mrf.mxu0  ;;  %v9834_v21 = vld [vmem:[#allocation19_spill] sm:$0xff]  ;;  %v3734_v7 = vrot.slane %v8960_v3, 5  ;;  %v4802_v33 = vpack.c.b16 %v8939_v49, %v8879_v43  ;;  %v4506_v8 = vsel %vm7838_vm12, %v4501_v10, %v8914_v56  ;;  %v3232_v14 = vrot.slane %v3231_v16, 4  ;;  %v7231_v49 = vld [vmem:[#allocation8 + $0x100] sm:$0xff]  ;;  %v8983_v10 = vld [vmem:[#allocation2 + $0xa0] sm:$0xf] }
 0x286   : > { %v8958_v5 = vadd.f32 %v2847_v37, %v9831_v61  ;;  %v3910_v25 = vpop.f32.mrf.mxu2  ;;  %v4523_v37 = vrot.slane %v4521_v63, 5  ;;  %v3812_v61 = vpack.c.b16 %v3792_v38, %v3791_v53  ;;  %v3222_v17 = vrot.slane %v3221_v23, 4  ;;  %5319 = vmatpush.bf16.msra.mxu1 %v7231_v49 }
 0x287   : > { %v3482_v28 = vpop.f32.mrf.mxu1  ;;  %v8975_v63 = vrot.slane %v4527_v6, 5  ;;  %v4533_v38 = vrot.slane %v4531_v26, 4  ;;  %v3236_v60 = vrot.slane %v3234_v19, 5  ;;  %v4516_v43 = vsel %vm7838_vm12, %v4511_v48, %v4515_v50  ;;  %v9838_v50 = vld [vmem:[#allocation37_spill] sm:$0xff] }
 0x288   : > { %9832 = vst [vmem:[#allocation31_spill] sm:$0xff] %v8958_v5  ;;  %v4223_v27 = vpop.f32.mrf.mxu3  ;;  %v3556_v15 = vadd.f32 %v3482_v28, %v9834_v21  ;;  %v4524_v56 = vor.u32 %v4523_v37, %v4520_v20  ;;  %v3736_v53 = vrot.slane %v3734_v7, 4  ;;  %v3248_v6 = vshll.u32 %v8960_v3, 16  ;;  %v9837_v37 = vld [vmem:[#allocation22_spill] sm:$0xff] }
 0x289   : > { %v3227_v23 = vsel %vm7838_vm12, %v3222_v17, %v8950_v45  ;;  %v8993_v16 = vunpack.c.l.b16 %v4506_v8  ;;  %v3239_v26 = vshrl.u32 %v2938_v52, 16  ;;  %v3237_v21 = vsel %vm7838_vm12, %v3232_v14, %v3236_v60 }
 0x28a   : > { %v3982_v34 = vadd.f32 %v3908_v2, %v3556_v15  ;;  %6767 = vmatmul.msk.bf16.gmra.mxu1 %vm512_vm0, %v3385_v24  ;;  %v3596_v15 = vld [vmem:[#allocation2 + $0x9c] sm:$0xe]  ;;  %v3737_v24 = vrot.slane %v8979_v57, 5  ;;  %v3242_v19 = vshll.u32 %v2938_v52, 16  ;;  %v9003_v8 = vrot.slane %v4524_v56, 4 }
 0x28b   : > { %6816 = vmatmul.msk.bf16.gmra.mxu2 %vm512_vm0, %v3812_v61  ;;  %v4537_v17 = vshll.u32 %v9838_v50, 16  ;;  %v9008_v14 = vrot.slane %v3248_v6, 5  ;;  %v4534_v52 = vor.u32 %v4533_v38, %v8975_v63  ;;  %v3365_v35 = vunpack.c.l.b16 %v3227_v23 }
 0x28c   : > { %v8977_v42 = vadd.f32 %v4223_v27, %v3982_v34  ;;  %v3252_v27 = vshrl.u32 %v8960_v3, 16  ;;  %v5150_v3 = vrot.slane %v8983_v10, 5  ;;  %v9001_v34 = vunpack.c.l.b16 %v4516_v43  ;;  %v9011_v43 = vld [vmem:[#allocation2 + $0xa4] sm:$0x1] }
 0x28d   : > { %v2850_v2 = vpop.f32.mrf.mxu0  ;;  %v3241_v56 = vrot.slane %v3239_v26, 4  ;;  %v3244_v0 = vrot.slane %v3242_v19, 5  ;;  %v3258_v6 = vshll.u32 %v8979_v57, 16 }
 0x28e   : > { %v8986_v28 = vadd.f32 %v2850_v2, %v9835_v11  ;;  %v3913_v45 = vpop.f32.mrf.mxu2  ;;  %v5018_v2 = vld [vmem:[#allocation2 + $0x9c] sm:$0xe]  ;;  %v3254_v60 = vrot.slane %v3252_v27, 4  ;;  %v5152_v51 = vrot.slane %v5150_v3, 4  ;;  %v9839_v27 = vld [vmem:[#allocation38_spill] sm:$0xff] }
 0x28f   : > { %v3484_v48 = vpop.f32.mrf.mxu1  ;;  %v7218_v11 = vld [vmem:[#allocation2 + $0x9c] sm:$0xff]  ;;  %v6960_v50 = vrot.slane %v5018_v2, 9 }
 0x290   : > { %9836 = vst [vmem:[#allocation35_spill] sm:$0xff] %v8986_v28  ;;  %v4225_v20 = vpop.f32.mrf.mxu3  ;;  %6937 = vmatmul.msk.bf16.gmra.mxu0 %vm512_vm0, %v4802_v33  ;;  %v3557_v61 = vadd.f32 %v3484_v48, %v9837_v37  ;;  %v3738_v33 = vsel %vm7827_vm9, %v3736_v53, %v3737_v24  ;;  %v3366_v48 = vunpack.c.l.b16 %v3237_v21  ;;  %v6785_v37 = vrot.slane %v3596_v15, 9 }
 0x291   : > { %v3794_v38 = vunpack.c.l.b16 %v3738_v33  ;;  %v3255_v26 = vor.u32 %v3254_v60, %v9008_v14  ;;  %v5151_v21 = vsel %vm7827_vm9, %v6960_v50, %v5150_v3  ;;  %v9028_v15 = vrot.slane %v4534_v52, 4  ;;  %v9036_v60 = vld [vmem:[#allocation2 + $0xac] sm:$0xf] }
 0x292   : > { %v3983_v49 = vadd.f32 %v3910_v25, %v3557_v61  ;;  %v3735_v25 = vsel %vm7827_vm9, %v6785_v37, %v3734_v7  ;;  %v9030_v24 = vrot.slane %v4537_v17, 5  ;;  %v9034_v61 = vld [vmem:[#allocation2 + $0xac] sm:$0xf]  ;;  %v3386_v33 = vpack.c.b16 %v3366_v48, %v3365_v35  ;;  %v9841_v17 = vld [vmem:[#allocation24_spill] sm:$0xff] }
 0x293   : > { %v5214_v7 = vunpack.c.l.b16 %v5151_v21  ;;  %v3256_v5 = vrot.slane %v3255_v26, 4  ;;  %v3260_v35 = vrot.slane %v3258_v6, 5  ;;  %v5157_v48 = vrot.slane %v9034_v61, 5 }
 0x294   : > { %v9015_v28 = vadd.f32 %v4225_v20, %v3983_v49  ;;  %v5153_v20 = vrot.slane %v9011_v43, 5  ;;  %v3793_v49 = vunpack.c.l.b16 %v3735_v25  ;;  %v3741_v3 = vrot.slane %v9036_v60, 5 }
 0x295   : > { %6912 = vmatmul.msk.bf16.gmra.mxu3 %vm512_vm0, %v7218_v11  ;;  %v2852_v53 = vpop.f32.mrf.mxu0  ;;  %v5019_v11 = vld [vmem:[#allocation2 + $0xa8] sm:$0xe]  ;;  %v3272_v44 = vshll.u32 %v9036_v60, 16 }
 0x296   : > { %v9022_v23 = vadd.f32 %v2852_v53, %v9839_v27  ;;  %v5154_v52 = vsel %vm7827_vm9, %v5152_v51, %v5153_v20  ;;  %v3915_v50 = vpop.f32.mrf.mxu2  ;;  %v3245_v53 = vor.u32 %v3244_v0, %v3241_v56  ;;  %v9042_v27 = vld [vmem:[#allocation2 + $0xb0] sm:$0x1]  ;;  %v6961_v20 = vrot.slane %v5019_v11, 9  ;;  %v9050_v0 = vld [vmem:[#allocation2 + $0xb8] sm:$0xf] }
 0x297   : > { %v3487_v57 = vpop.f32.mrf.mxu1  ;;  %v5215_v19 = vunpack.c.l.b16 %v5154_v52  ;;  %v5159_v56 = vrot.slane %v5157_v48, 4  ;;  %v5160_v21 = vrot.slane %v9042_v27, 5  ;;  %v9066_v52 = vld [vmem:[#allocation2 + $0xb0] sm:$0x1] }
 0x298   : > { %9840 = vst [vmem:[#allocation19_spill] sm:$0xff] %v9022_v23  ;;  %v4228_v2 = vpop.f32.mrf.mxu3  ;;  %v3558_v37 = vadd.f32 %v3487_v57, %v9841_v17  ;;  %v3813_v23 = vpack.c.b16 %v3794_v38, %v3793_v49  ;;  %v5020_v38 = vld [vmem:[#allocation2 + $0xb4] sm:$0xe] }
 0x299   : > { %v9047_v51 = vpack.c.b16 %v5215_v19, %v5214_v7  ;;  %v7103_v7 = vld [vmem:[#allocation11 + $0x50] sm:$0xf]  ;;  %v7262_v57 = vld [vmem:[#allocation11 + $0x54] sm:$0xf0]  ;;  %v7105_v17 = vld [vmem:[#allocation11 + $0x58] sm:$0xf0] }
 0x29a   : > { %v3984_v25 = vadd.f32 %v3913_v45, %v3558_v37  ;;  %6768 = vmatmul.msk.bf16.gmra.mxu1 %vm512_vm0, %v3386_v33  ;;  %v4803_v45 = vpack.c.b16 %v9001_v34, %v8993_v16  ;;  %v5158_v33 = vsel %vm7827_vm9, %v6961_v20, %v5157_v48  ;;  %v7104_v11 = vor.u32 %v7262_v57, %v7103_v7  ;;  %v9068_v16 = vld [vmem:[#allocation2 + $0x70] sm:$0xf]  ;;  %v3597_v20 = vld [vmem:[#allocation2 + $0xa8] sm:$0xe] }
 0x29b   : > { %9842 = vst [vmem:[#allocation34_spill] sm:$0xff] %v9047_v51  ;;  %6817 = vmatmul.msk.bf16.gmra.mxu2 %vm512_vm0, %v3813_v23  ;;  %v7261_v23 = vld [vmem:[#allocation11 + $0x54] sm:$0xf]  ;;  %v4555_v34 = vshrl.u32 %v9068_v16, 16  ;;  %v3261_v37 = vsel %vm7838_vm12, %v3256_v5, %v3260_v35  ;;  %v9073_v51 = vld [vmem:[#allocation2 + $0xbc] sm:$0x1] }
 0x29c   : > { %v9053_v26 = vadd.f32 %v4228_v2, %v3984_v25  ;;  %v3246_v2 = vrot.slane %v3245_v53, 4  ;;  %v3743_v25 = vrot.slane %v3741_v3, 4  ;;  %v7108_v19 = vor.u32 %v7261_v23, %v7105_v17  ;;  %5925 = vmatpush.bf16.msra.mxu2 %v7104_v11  ;;  %v2941_v17 = vld [vmem:[#allocation2 + $0xa8] sm:$0xf] }
 0x29d   : > { %v2855_v6 = vpop.f32.mrf.mxu0  ;;  %v6962_v57 = vrot.slane %v5020_v38, 9  ;;  %v5164_v16 = vrot.slane %v9050_v0, 5  ;;  %v3744_v23 = vrot.slane %v9066_v52, 5  ;;  %v5167_v38 = vrot.slane %v9073_v51, 5 }
 0x29e   : > { %v9064_v49 = vadd.f32 %v2855_v6, %v8625_v59  ;;  %v5161_v59 = vsel %vm7827_vm9, %v5159_v56, %v5160_v21  ;;  %v5216_v6 = vunpack.c.l.b16 %v5158_v33  ;;  %v3918_v35 = vpop.f32.mrf.mxu2  ;;  %v3276_v56 = vshrl.u32 %v9036_v60, 16  ;;  %6014 = vmatpush.bf16.msra.mxu3 %v7108_v19 }
 0x29f   : > { %v3489_v48 = vpop.f32.mrf.mxu1  ;;  %v5217_v7 = vunpack.c.l.b16 %v5161_v59  ;;  %v5166_v33 = vrot.slane %v5164_v16, 4  ;;  %v7219_v59 = vld [vmem:[#allocation2 + $0xa8] sm:$0xff]  ;;  %v3745_v39 = vsel %vm7827_vm9, %v3743_v25, %v3744_v23  ;;  %v3368_v60 = vunpack.c.l.b16 %v3261_v37 }
 0x2a0   : > { %9843 = vst [vmem:[#allocation22_spill] sm:$0xff] %v9064_v49  ;;  %v4230_v53 = vpop.f32.mrf.mxu3  ;;  %6938 = vmatmul.msk.bf16.gmra.mxu0 %vm512_vm0, %v4803_v45  ;;  %v9844_v49 = vld [vmem:[#allocation25_spill] sm:$0xff]  ;;  %v5165_v45 = vsel %vm7827_vm9, %v6962_v57, %v5164_v16  ;;  %v3263_v19 = vshrl.u32 %v2941_v17, 16  ;;  %v3796_v25 = vunpack.c.l.b16 %v3745_v39  ;;  %v9103_v37 = vrot.slane %v3272_v44, 5 }
 0x2a1   : > { %v3559_v5 = vadd.f32 %v3489_v48, %v9844_v49  ;;  %v9083_v21 = vpack.c.b16 %v5217_v7, %v5216_v6  ;;  %v3251_v49 = vsel %vm7838_vm12, %v3246_v2, %v9008_v14  ;;  %v6786_v48 = vrot.slane %v3597_v20, 9 }
 0x2a2   : > { %v3266_v6 = vshll.u32 %v2941_v17, 16  ;;  %v5168_v7 = vsel %vm7827_vm9, %v5166_v33, %v5167_v38  ;;  %v3278_v20 = vrot.slane %v3276_v56, 4  ;;  %v3367_v23 = vunpack.c.l.b16 %v3251_v49  ;;  %v2945_v56 = vld [vmem:[#allocation2 + $0xb8] sm:$0xf]  ;;  %v9850_v49 = vld [vmem:[#allocation27_spill] sm:$0xff] }
 0x2a3   : > { %9845 = vst [vmem:[#allocation37_spill] sm:$0xff] %v9083_v21  ;;  %v3985_v11 = vadd.f32 %v3915_v50, %v3559_v5  ;;  %v3742_v16 = vsel %vm7827_vm9, %v6786_v48, %v3741_v3  ;;  %v5218_v5 = vunpack.c.l.b16 %v5165_v45  ;;  %v5219_v14 = vunpack.c.l.b16 %v5168_v7 }
 0x2a4   : > { %v9846_v17 = vshrl.u32 %v9013_v13, 16  ;;  %v9847_v33 = vshll.u32 %v9013_v13, 16  ;;  %v3795_v45 = vunpack.c.l.b16 %v3742_v16  ;;  %v9849_v39 = vsel %vm7838_vm12, %v9028_v15, %v9030_v24 }
 0x2a5   : > { %v9095_v57 = vadd.f32 %v4230_v53, %v3985_v11  ;;  %6913 = vmatmul.msk.bf16.gmra.mxu3 %vm512_vm0, %v7219_v59  ;;  %v2857_v50 = vpop.f32.mrf.mxu0  ;;  %v9109_v11 = vpack.c.b16 %v5219_v14, %v5218_v5  ;;  %v4779_v44 = vunpack.c.l.b16 %v9849_v39  ;;  %v3387_v48 = vpack.c.b16 %v3368_v60, %v3367_v23 }
 0x2a6   : > { %v9101_v2 = vadd.f32 %v2857_v50, %v8664_v1  ;;  %v4544_v53 = vrot.slane %v9846_v17, 4  ;;  %v4547_v38 = vrot.slane %v9847_v33, 5  ;;  %v4530_v1 = vsel %vm7838_vm12, %v9003_v8, %v8975_v63  ;;  %v9121_v7 = vpop.f32.mrf.mxu2 }
 0x2a7   : > { %9848 = vst [vmem:[#allocation38_spill] sm:$0xff] %v9109_v11  ;;  %v3492_v59 = vpop.f32.mrf.mxu1  ;;  %v3265_v50 = vrot.slane %v3263_v19, 4  ;;  %v3268_v5 = vrot.slane %v3266_v6, 5  ;;  %v3814_v16 = vpack.c.b16 %v3796_v25, %v3795_v45  ;;  %v3279_v14 = vor.u32 %v3278_v20, %v9103_v37  ;;  %v4349_v45 = vld [vmem:[#allocation2 + $0x78] sm:$0xf] }
 0x2a8   : > { %v4233_v3 = vpop.f32.mrf.mxu3  ;;  %v3560_v13 = vadd.f32 %v3492_v59, %v9850_v49  ;;  %9851 = vst [vmem:[#allocation24_spill] sm:$0xff] %v9121_v7  ;;  %v9852_v17 = vshll.u32 %v8636_v12, 16  ;;  %v4557_v8 = vrot.slane %v4555_v34, 4  ;;  %v3748_v15 = vrot.slane %v2945_v56, 5  ;;  %v9136_v34 = vld [vmem:[#allocation2 + $0xbc] sm:$0x1] }
 0x2a9   : > { %v4548_v24 = vor.u32 %v4547_v38, %v4544_v53  ;;  %v4778_v60 = vunpack.c.l.b16 %v4530_v1  ;;  %v3282_v23 = vshll.u32 %v9066_v52, 16  ;;  %v3269_v25 = vor.u32 %v3268_v5, %v3265_v50  ;;  %v7369_v49 = vld [vmem:[#allocation2 + $0x74] sm:$0x1] }
 0x2aa   : > { %v9126_v63 = vrot.slane %v9852_v17, 5  ;;  %v3986_v33 = vadd.f32 %v3918_v35, %v3560_v13  ;;  %6769 = vmatmul.msk.bf16.gmra.mxu1 %vm512_vm0, %v3387_v48  ;;  %v3280_v59 = vrot.slane %v3279_v14, 4  ;;  %v3750_v53 = vrot.slane %v3748_v15, 4  ;;  %v9854_v48 = vld [vmem:[#allocation28_spill] sm:$0xff] }
 0x2ab   : > { %6818 = vmatmul.msk.bf16.gmra.mxu2 %vm512_vm0, %v3814_v16  ;;  %v4804_v12 = vpack.c.b16 %v4779_v44, %v4778_v60  ;;  %v9139_v38 = vrot.slane %v4548_v24, 4  ;;  %v3284_v52 = vrot.slane %v3282_v23, 5  ;;  %v3296_v13 = vshll.u32 %v2945_v56, 16  ;;  %v2944_v17 = vld [vmem:[#allocation2 + $0xb4] sm:$0xf] }
 0x2ac   : > { %v9131_v19 = vadd.f32 %v4233_v3, %v3986_v33  ;;  %v4558_v35 = vor.u32 %v4557_v8, %v9126_v63  ;;  %v3598_v3 = vld [vmem:[#allocation2 + $0xb4] sm:$0xe]  ;;  %v3300_v44 = vshrl.u32 %v2945_v56, 16  ;;  %v3270_v16 = vrot.slane %v3269_v25, 4  ;;  %v7370_v23 = vld [vmem:[#allocation2 + $0x7c] sm:$0xf] }
 0x2ad   : > { %v2860_v6 = vpop.f32.mrf.mxu0  ;;  %v3751_v14 = vrot.slane %v9136_v34, 5  ;;  %v4566_v8 = vshrl.u32 %v4349_v45, 16  ;;  %v3285_v33 = vsel %vm7838_vm12, %v3280_v59, %v3284_v52  ;;  %v4569_v60 = vshll.u32 %v4349_v45, 16 }
 0x2ae   : > { %v9134_v20 = vadd.f32 %v2860_v6, %v8693_v18  ;;  %v4561_v18 = vshll.u32 %v7369_v49, 16  ;;  %v3923_v5 = vpop.f32.mrf.mxu2  ;;  %v4559_v24 = vrot.slane %v4558_v35, 4  ;;  %v4575_v6 = vshll.u32 %v7370_v23, 16 }
 0x2af   : > { %v3494_v1 = vpop.f32.mrf.mxu1  ;;  %v3275_v56 = vsel %vm7838_vm12, %v3270_v16, %v9103_v37  ;;  %v3752_v25 = vsel %vm7827_vm9, %v3750_v53, %v3751_v14  ;;  %v4579_v49 = vshrl.u32 %v7370_v23, 16  ;;  %v3290_v11 = vshll.u32 %v2944_v17, 16 }
 0x2b0   : > { %v9141_v39 = vpop.f32.mrf.mxu3  ;;  %6939 = vmatmul.msk.bf16.gmra.mxu0 %vm512_vm0, %v4804_v12  ;;  %v9145_v50 = vadd.f32 %v3494_v1, %v9854_v48  ;;  %v7220_v12 = vld [vmem:[#allocation2 + $0xb4] sm:$0xff]  ;;  %v6787_v1 = vrot.slane %v3598_v3, 9  ;;  %v3287_v48 = vshrl.u32 %v2944_v17, 16  ;;  %v3302_v21 = vrot.slane %v3300_v44, 4 }
 0x2b1   : > { %9853 = vst [vmem:[#allocation25_spill] sm:$0xff] %v9141_v39  ;;  %v9155_v39 = vrot.slane %v3296_v13, 5  ;;  %v3370_v35 = vunpack.c.l.b16 %v3285_v33  ;;  %v4554_v37 = vsel %vm7838_vm12, %v9139_v38, %v9126_v63  ;;  %v4563_v52 = vrot.slane %v4561_v18, 5  ;;  %v9855_v38 = vld [vmem:[#allocation30_spill] sm:$0xff] }
 0x2b2   : > { %v3749_v45 = vsel %vm7827_vm9, %v6787_v1, %v3748_v15  ;;  %v3798_v3 = vunpack.c.l.b16 %v3752_v25  ;;  %v4568_v13 = vrot.slane %v4566_v8, 4  ;;  %v4571_v16 = vrot.slane %v4569_v60, 5  ;;  %v9176_v60 = vld [vmem:[#allocation2 + $0xc4] sm:$0xf] }
 0x2b3   : > { %v3369_v44 = vunpack.c.l.b16 %v3275_v56  ;;  %v4564_v14 = vsel %vm7838_vm12, %v4559_v24, %v4563_v52  ;;  %v9169_v17 = vrot.slane %v4575_v6, 5  ;;  %v4581_v33 = vrot.slane %v4579_v49, 4  ;;  %v777_v24 = vld [vmem:[#allocation2 + $0xcc] sm:$0x1]  ;;  %v3599_v49 = vld [vmem:[#allocation2 + $0xc0] sm:$0xe] }
 0x2b4   : > { %v3289_v1 = vrot.slane %v3287_v48, 4  ;;  %v3292_v7 = vrot.slane %v3290_v11, 5  ;;  %v3303_v63 = vor.u32 %v3302_v21, %v9155_v39  ;;  %v3306_v8 = vshll.u32 %v9136_v34, 16 }
 0x2b5   : > { %6914 = vmatmul.msk.bf16.gmra.mxu3 %vm512_vm0, %v7220_v12  ;;  %v2862_v59 = vpop.f32.mrf.mxu0  ;;  %v3797_v12 = vunpack.c.l.b16 %v3749_v45  ;;  %v3388_v18 = vpack.c.b16 %v3370_v35, %v3369_v44  ;;  %v4781_v56 = vunpack.c.l.b16 %v4564_v14  ;;  %v778_v11 = vsel %vm7810_vm4, 0, %v777_v24  ;;  %v9182_v35 = vld [vmem:[#allocation2 + $0xc8] sm:$0x1]  ;;  %v7371_v14 = vld [vmem:[#allocation2 + $0x80] sm:$0x1] }
 0x2b6   : > { %v9165_v53 = vadd.f32 %v2862_v59, %v8740_v46  ;;  %v9173_v25 = vpop.f32.mrf.mxu2  ;;  %v3755_v59 = vrot.slane %v9176_v60, 5  ;;  %v4780_v21 = vunpack.c.l.b16 %v4554_v37  ;;  %v4572_v52 = vor.u32 %v4571_v16, %v4568_v13  ;;  %779 = vst [vmem:[#allocation2 + $0xcc] sm:$0x1] %v778_v11  ;;  %v7095_v16 = vld [vmem:[#allocation11 + $0x40] sm:$0xf] }
 0x2b7   : > { %v3497_v15 = vpop.f32.mrf.mxu1  ;;  %9856 = vst [vmem:[#allocation27_spill] sm:$0xff] %v9173_v25  ;;  %v3815_v6 = vpack.c.b16 %v3798_v3, %v3797_v12  ;;  %v3293_v34 = vor.u32 %v3292_v7, %v3289_v1  ;;  %v3304_v44 = vrot.slane %v3303_v63, 4  ;;  %v4582_v3 = vor.u32 %v4581_v33, %v9169_v17  ;;  %v2947_v1 = vld [vmem:[#allocation2 + $0xc0] sm:$0xf] }
 0x2b8   : > { %v4238_v23 = vpop.f32.mrf.mxu3  ;;  %v3562_v46 = vadd.f32 %v3497_v15, %v9855_v38  ;;  %v4585_v15 = vshll.u32 %v7371_v14, 16  ;;  %v3308_v24 = vrot.slane %v3306_v8, 5  ;;  %v4805_v37 = vpack.c.b16 %v4781_v56, %v4780_v21  ;;  %v7259_v33 = vld [vmem:[#allocation11 + $0x44] sm:$0xf] }
 0x2b9   : > { %v3758_v13 = vrot.slane %v9182_v35, 5  ;;  %v4573_v7 = vrot.slane %v4572_v52, 4  ;;  %v4583_v8 = vrot.slane %v4582_v3, 4  ;;  %v7221_v3 = vld [vmem:[#allocation2 + $0xc0] sm:$0xff] }
 0x2ba   : > { %v3988_v48 = vadd.f32 %v3923_v5, %v3562_v46  ;;  %6770 = vmatmul.msk.bf16.gmra.mxu1 %vm512_vm0, %v3388_v18  ;;  %v6788_v5 = vrot.slane %v3599_v49, 9  ;;  %v3757_v18 = vrot.slane %v3755_v59, 4  ;;  %v4587_v56 = vrot.slane %v4585_v15, 5  ;;  %v7097_v49 = vld [vmem:[#allocation11 + $0x48] sm:$0xf0] }
 0x2bb   : > { %6819 = vmatmul.msk.bf16.gmra.mxu2 %vm512_vm0, %v3815_v6  ;;  %v7260_v6 = vld [vmem:[#allocation11 + $0x44] sm:$0xf0] }
 0x2bc   : > { %v9186_v12 = vadd.f32 %v4238_v23, %v3988_v48  ;;  %v7096_v63 = vor.u32 %v7260_v6, %v7095_v16  ;;  %v3294_v23 = vrot.slane %v3293_v34, 4  ;;  %v9859_v48 = vld [vmem:[#allocation32_spill] sm:$0xff]  ;;  %v3756_v52 = vsel %vm7827_vm9, %v6788_v5, %v3755_v59 }
 0x2bd   : > { %v2865_v38 = vpop.f32.mrf.mxu0  ;;  %v7100_v16 = vor.u32 %v7259_v33, %v7097_v49  ;;  %v3759_v34 = vsel %vm7827_vm9, %v3757_v18, %v3758_v13  ;;  %v3314_v6 = vshll.u32 %v2947_v1, 16  ;;  %v4578_v59 = vsel %vm7838_vm12, %v4573_v7, %v9169_v17 }
 0x2be   : > { %v9189_v46 = vadd.f32 %v2865_v38, %v8772_v41  ;;  %v3309_v41 = vsel %vm7838_vm12, %v3304_v44, %v3308_v24  ;;  %v3928_v14 = vpop.f32.mrf.mxu2  ;;  %v3320_v38 = vshll.u32 %v9176_v60, 16  ;;  %5926 = vmatpush.bf16.msra.mxu2 %v7096_v63  ;;  %v3324_v44 = vshrl.u32 %v9176_v60, 16 }
 0x2bf   : > { %v3499_v45 = vpop.f32.mrf.mxu1  ;;  %6015 = vmatpush.bf16.msra.mxu3 %v7100_v16  ;;  %v3299_v15 = vsel %vm7838_vm12, %v3294_v23, %v9155_v39  ;;  %v4588_v24 = vsel %vm7838_vm12, %v4583_v8, %v4587_v56  ;;  %v3372_v18 = vunpack.c.l.b16 %v3309_v41  ;;  %v3799_v13 = vunpack.c.l.b16 %v3756_v52  ;;  %v4352_v23 = vld [vmem:[#allocation2 + $0x84] sm:$0xf] }
 0x2c0   : > { %v9192_v11 = vpop.f32.mrf.mxu3  ;;  %6940 = vmatmul.msk.bf16.gmra.mxu0 %vm512_vm0, %v4805_v37  ;;  %v9198_v21 = vadd.f32 %v3499_v45, %v9859_v48  ;;  %v3311_v37 = vshrl.u32 %v2947_v1, 16  ;;  %v3800_v1 = vunpack.c.l.b16 %v3759_v34  ;;  %v3322_v60 = vrot.slane %v3320_v38, 5  ;;  %v7372_v48 = vld [vmem:[#allocation2 + $0x88] sm:$0xf] }
 0x2c1   : > { %9858 = vst [vmem:[#allocation28_spill] sm:$0xff] %v9192_v11  ;;  %v3316_v45 = vrot.slane %v3314_v6, 5  ;;  %v3326_v39 = vrot.slane %v3324_v44, 4  ;;  %v3371_v49 = vunpack.c.l.b16 %v3299_v15  ;;  %v4599_v17 = vshll.u32 %v7372_v48, 16 }
 0x2c2   : > { %v3313_v33 = vrot.slane %v3311_v37, 4  ;;  %v4603_v7 = vshrl.u32 %v7372_v48, 16  ;;  %v4782_v56 = vunpack.c.l.b16 %v4578_v59  ;;  %v4783_v38 = vunpack.c.l.b16 %v4588_v24 }
 0x2c3   : > { %v3389_v41 = vpack.c.b16 %v3372_v18, %v3371_v49  ;;  %v4590_v34 = vshrl.u32 %v4352_v23, 16  ;;  %v3327_v37 = vor.u32 %v3326_v39, %v3322_v60  ;;  %v3330_v6 = vshll.u32 %v9182_v35, 16 }
 0x2c4   : > { %v4593_v15 = vshll.u32 %v4352_v23, 16  ;;  %v4601_v48 = vrot.slane %v4599_v17, 5  ;;  %v4605_v25 = vrot.slane %v4603_v7, 4  ;;  %v4806_v49 = vpack.c.b16 %v4783_v38, %v4782_v56  ;;  %v9861_v23 = vld [vmem:[#allocation39_spill] sm:$0xff] }
 0x2c5   : > { %6915 = vmatmul.msk.bf16.gmra.mxu3 %vm512_vm0, %v7221_v3  ;;  %v2867_v5 = vpop.f32.mrf.mxu0  ;;  %v9860_v3 = vld [vmem:[#allocation36_spill] sm:$0xff] }
 0x2c6   : > { %v9216_v63 = vadd.f32 %v2867_v5, %v8810_v32  ;;  %v9219_v52 = vpop.f32.mrf.mxu2  ;;  %v3816_v32 = vpack.c.b16 %v3800_v1, %v3799_v13  ;;  %v3317_v5 = vor.u32 %v3316_v45, %v3313_v33  ;;  %v3328_v1 = vrot.slane %v3327_v37, 4 }
 0x2c7   : > { %v3502_v16 = vpop.f32.mrf.mxu1  ;;  %v3332_v33 = vrot.slane %v3330_v6, 5  ;;  %v4592_v45 = vrot.slane %v4590_v34, 4  ;;  %v4595_v35 = vrot.slane %v4593_v15, 5  ;;  %v4355_v15 = vld [vmem:[#allocation2 + $0x90] sm:$0xf] }
 0x2c8   : > { %v4243_v8 = vpop.f32.mrf.mxu3  ;;  %v3564_v11 = vadd.f32 %v3502_v16, %v9860_v3  ;;  %v3318_v13 = vrot.slane %v3317_v5, 4  ;;  %v7222_v16 = vld [vmem:[#allocation2 + $0xcc] sm:$0xff] }
 0x2c9   : > { %v3333_v3 = vsel %vm7838_vm12, %v3328_v1, %v3332_v33  ;;  %v9862_v1 = vld [vmem:[#allocation41_spill] sm:$0xff] }
 0x2ca   : > { %v3990_v44 = vadd.f32 %v3928_v14, %v3564_v11  ;;  %6771 = vmatmul.msk.bf16.gmra.mxu1 %vm512_vm0, %v3389_v41  ;;  %v4606_v11 = vor.u32 %v4605_v25, %v4601_v48  ;;  %v4596_v41 = vor.u32 %v4595_v35, %v4592_v45 }
 0x2cb   : > { %6820 = vmatmul.msk.bf16.gmra.mxu2 %vm512_vm0, %v3816_v32  ;;  %v3374_v32 = vunpack.c.l.b16 %v3333_v3 }
 0x2cc   : > { %v9224_v59 = vadd.f32 %v4243_v8, %v3990_v44  ;;  %v7373_v8 = vld [vmem:[#allocation2 + $0x8c] sm:$0x1]  ;;  %v4607_v25 = vrot.slane %v4606_v11, 4  ;;  %v4597_v6 = vrot.slane %v4596_v41, 4 }
 0x2cd   : > { %v4895_v18 = vpop.f32.mrf.mxu0  ;;  %v4609_v56 = vshll.u32 %v7373_v8, 16  ;;  %v7087_v41 = vld [vmem:[#allocation11 + $0x30] sm:$0xf] }
 0x2ce   : > { %v9227_v24 = vadd.f32 %v4895_v18, %v8852_v62  ;;  %v3933_v7 = vpop.f32.mrf.mxu2  ;;  %v3323_v62 = vsel %vm7838_vm12, %v3318_v13, %v3322_v60  ;;  %v4623_v60 = vshll.u32 %v8871_v54, 16  ;;  %v4627_v18 = vshrl.u32 %v8871_v54, 16 }
 0x2cf   : > { %v3504_v14 = vpop.f32.mrf.mxu1  ;;  %v3373_v34 = vunpack.c.l.b16 %v3323_v62  ;;  %v4611_v5 = vrot.slane %v4609_v56, 5 }
 0x2d0   : > { %v9229_v39 = vpop.f32.mrf.mxu3  ;;  %6941 = vmatmul.msk.bf16.gmra.mxu0 %vm512_vm0, %v4806_v49  ;;  %v9233_v17 = vadd.f32 %v3504_v14, %v9861_v23  ;;  %v4614_v14 = vshrl.u32 %v4355_v15, 16  ;;  %v4625_v8 = vrot.slane %v4623_v60, 5  ;;  %v4629_v56 = vrot.slane %v4627_v18, 4  ;;  %v9863_v18 = vld [vmem:[#allocation42_spill] sm:$0xff] }
 0x2d1   : > { %v4612_v44 = vsel %vm7838_vm12, %v4607_v25, %v4611_v5  ;;  %v3390_v45 = vpack.c.b16 %v3374_v32, %v3373_v34  ;;  %v7258_v25 = vld [vmem:[#allocation11 + $0x34] sm:$0xf0]  ;;  %v7089_v5 = vld [vmem:[#allocation11 + $0x38] sm:$0xf0] }
 0x2d2   : > { %v4785_v11 = vunpack.c.l.b16 %v4612_v44  ;;  %v4630_v44 = vor.u32 %v4629_v56, %v4625_v8  ;;  %v4358_v56 = vld [vmem:[#allocation2 + $0x9c] sm:$0xf] }
 0x2d5   : > { %v4897_v38 = vpop.f32.mrf.mxu0  ;;  %6916 = vmatmul.msk.bf16.gmra.mxu3 %vm512_vm0, %v7222_v16  ;;  %v4617_v16 = vshll.u32 %v4355_v15, 16 }
 0x2d6   : > { %v9241_v37 = vadd.f32 %v4897_v38, %v8885_v22  ;;  %v9248_v35 = vpop.f32.mrf.mxu2  ;;  %v4602_v22 = vsel %vm7838_vm12, %v4597_v6, %v4601_v48  ;;  %v7257_v38 = vld [vmem:[#allocation11 + $0x34] sm:$0xf]  ;;  %v7088_v48 = vor.u32 %v7258_v25, %v7087_v41  ;;  %v4616_v6 = vrot.slane %v4614_v14, 4 }
 0x2d7   : > { %v3507_v49 = vpop.f32.mrf.mxu1  ;;  %v4784_v62 = vunpack.c.l.b16 %v4602_v22 }
 0x2d8   : > { %v4248_v13 = vpop.f32.mrf.mxu3  ;;  %v3566_v33 = vadd.f32 %v3507_v49, %v9862_v1  ;;  %v7092_v49 = vor.u32 %v7257_v38, %v7089_v5  ;;  %5927 = vmatpush.bf16.msra.mxu2 %v7088_v48  ;;  %v4638_v5 = vshrl.u32 %v4358_v56, 16 }
 0x2d9   : > { %v4807_v32 = vpack.c.b16 %v4785_v11, %v4784_v62  ;;  %v4647_v62 = vshll.u32 %v8983_v10, 16 }
 0x2da   : > { %v3992_v23 = vadd.f32 %v3933_v7, %v3566_v33  ;;  %6772 = vmatmul.msk.bf16.gmra.mxu1 %vm512_vm0, %v3390_v45  ;;  %v4619_v7 = vrot.slane %v4617_v16, 5  ;;  %6016 = vmatpush.bf16.msra.mxu3 %v7092_v49  ;;  %v4631_v45 = vrot.slane %v4630_v44, 4  ;;  %v4641_v44 = vshll.u32 %v4358_v56, 16 }
 0x2db   : > { %v4649_v49 = vrot.slane %v4647_v62, 5  ;;  %v4657_v56 = vshll.u32 %v9011_v43, 16 }
 0x2dc   : > { %v9253_v54 = vadd.f32 %v4248_v13, %v3992_v23  ;;  %v4620_v33 = vor.u32 %v4619_v7, %v4616_v6  ;;  %v9864_v7 = vld [vmem:[#allocation20_spill] sm:$0xff] }
 0x2dd   : > { %v4900_v3 = vpop.f32.mrf.mxu0 }
 0x2de   : > { %v9256_v34 = vadd.f32 %v4900_v3, %v8918_v4  ;;  %v3938_v1 = vpop.f32.mrf.mxu2  ;;  %v4633_v4 = vshll.u32 %v8898_v29, 16  ;;  %v4621_v23 = vrot.slane %v4620_v33, 4  ;;  %v4651_v3 = vshrl.u32 %v8983_v10, 16 }
 0x2df   : > { %v3509_v15 = vpop.f32.mrf.mxu1  ;;  %v4640_v33 = vrot.slane %v4638_v5, 4 }
 0x2e0   : > { %v9258_v60 = vpop.f32.mrf.mxu3  ;;  %6942 = vmatmul.msk.bf16.gmra.mxu0 %vm512_vm0, %v4807_v32  ;;  %v9262_v13 = vadd.f32 %v3509_v15, %v9863_v18  ;;  %v4635_v11 = vrot.slane %v4633_v4, 5  ;;  %v4626_v32 = vsel %vm7838_vm12, %v4621_v23, %v4625_v8  ;;  %v4653_v15 = vrot.slane %v4651_v3, 4 }
 0x2e1   : > { %v4786_v10 = vunpack.c.l.b16 %v4626_v32 }
 0x2e2   : > { %v4636_v16 = vsel %vm7838_vm12, %v4631_v45, %v4635_v11  ;;  %v4643_v45 = vrot.slane %v4641_v44, 5 }
 0x2e3   : > { %v4787_v48 = vunpack.c.l.b16 %v4636_v16 }
 0x2e4   : > { %v4644_v62 = vor.u32 %v4643_v45, %v4640_v33 }
 0x2e5   : > { %v4902_v22 = vpop.f32.mrf.mxu0  ;;  %v4808_v8 = vpack.c.b16 %v4787_v48, %v4786_v10  ;;  %v4671_v48 = vshll.u32 %v9034_v61, 16 }
 0x2e6   : > { %v9266_v14 = vadd.f32 %v4902_v22, %v8952_v36  ;;  %v9273_v38 = vpop.f32.mrf.mxu2  ;;  %v7235_v36 = vld [vmem:[%s7779_s15] sm:$0xff] }
 0x2e7   : > { %v3512_v41 = vpop.f32.mrf.mxu1  ;;  %5725 = vrot.lane.b32.xlu0 %v7235_v36, %s7609_s14  ;;  %v4361_v36 = vld [vmem:[#allocation2 + $0xa8] sm:$0xf]  ;;  %v4673_v45 = vrot.slane %v4671_v48, 5 }
 0x2e8   : > { %v4253_v29 = vpop.f32.mrf.mxu3  ;;  %v3568_v25 = vadd.f32 %v3512_v41, %v8717_v9  ;;  %v4659_v41 = vrot.slane %v4657_v56, 5  ;;  %v4662_v10 = vshrl.u32 %v4361_v36, 16  ;;  %v4665_v33 = vshll.u32 %v4361_v36, 16  ;;  %v7079_v56 = vld [vmem:[#allocation11 + $0x20] sm:$0xf] }
 0x2ea   : > { %v3994_v6 = vadd.f32 %v3938_v1, %v3568_v25  ;;  %6981 = vmatmul.msk.bf16.vlgmr.msra.gmra.mxu1 %vm512_vm0, %v9864_v7  ;;  %v4654_v1 = vor.u32 %v4653_v15, %v4649_v49  ;;  %v4645_v25 = vrot.slane %v4644_v62, 4  ;;  %v7256_v62 = vld [vmem:[#allocation11 + $0x24] sm:$0xf0] }
 0x2ec   : > { %v9281_v9 = vadd.f32 %v4253_v29, %v3994_v6  ;;  %v4655_v3 = vrot.slane %v4654_v1, 4  ;;  %v4650_v44 = vsel %vm7838_vm12, %v4645_v25, %v4649_v49  ;;  %v4664_v25 = vrot.slane %v4662_v10, 4 }
 0x2ed   : > { %v4905_v18 = vpop.f32.mrf.mxu0 }
 0x2ee   : > { %v9284_v4 = vadd.f32 %v4905_v18, %v8977_v42  ;;  %v3943_v16 = vpop.f32.mrf.mxu2  ;;  %v4660_v32 = vsel %vm7838_vm12, %v4655_v3, %v4659_v41  ;;  %v7255_v3 = vld [vmem:[#allocation11 + $0x24] sm:$0xf]  ;;  %v7081_v41 = vld [vmem:[#allocation11 + $0x28] sm:$0xf0] }
 0x2ef   : > { %v3514_v22 = vpop.f32.mrf.mxu1  ;;  %v4789_v15 = vunpack.c.l.b16 %v4660_v32  ;;  %v4667_v32 = vrot.slane %v4665_v33, 5  ;;  %v7084_v48 = vor.u32 %v7255_v3, %v7081_v41 }
 0x2f0   : > { %v9286_v11 = vpop.f32.mrf.mxu3  ;;  %6943 = vmatmul.msk.bf16.gmra.mxu0 %vm512_vm0, %v4808_v8  ;;  %v9290_v23 = vadd.f32 %v3514_v22, %v8754_v47  ;;  %v4675_v47 = vshrl.u32 %v9034_v61, 16  ;;  %v9865_v8 = vld [vmem:[#allocation21_spill] sm:$0xff]  ;;  %v4788_v61 = vunpack.c.l.b16 %v4650_v44 }
 0x2f1   : > { %6017 = vmatpush.bf16.msra.mxu3 %v7084_v48  ;;  %v4668_v44 = vor.u32 %v4667_v32, %v4664_v25  ;;  %v9867_v32 = vld [vmem:[#allocation23_spill] sm:$0xff] }
 0x2f2   : > { %v4677_v1 = vrot.slane %v4675_v47, 4 }
 0x2f4   : > { %v4678_v36 = vor.u32 %v4677_v1, %v4673_v45  ;;  %v4364_v1 = vld [vmem:[#allocation2 + $0xb4] sm:$0xf] }
 0x2f5   : > { %v4907_v42 = vpop.f32.mrf.mxu0  ;;  %v4689_v41 = vshll.u32 %v4364_v1, 16 }
 0x2f6   : > { %v9294_v29 = vadd.f32 %v4907_v42, %v9015_v28  ;;  %v9301_v7 = vpop.f32.mrf.mxu2  ;;  %v7236_v28 = vld [vmem:[%s7779_s15 + $0x8] sm:$0xff]  ;;  %v4809_v42 = vpack.c.b16 %v4789_v15, %v4788_v61  ;;  %v4699_v61 = vshrl.u32 %v9050_v0, 16 }
 0x2f7   : > { %v3517_v5 = vpop.f32.mrf.mxu1  ;;  %5727 = vrot.lane.b32.xlu0 %v7236_v28, %s7609_s14  ;;  %v4679_v28 = vrot.slane %v4678_v36, 4 }
 0x2f8   : > { %v4258_v6 = vpop.f32.mrf.mxu3  ;;  %v3570_v43 = vadd.f32 %v3517_v5, %v8793_v31  ;;  %v4701_v48 = vrot.slane %v4699_v61, 4 }
 0x2fa   : > { %v3996_v18 = vadd.f32 %v3943_v16, %v3570_v43  ;;  %6982 = vmatmul.msk.bf16.gmra.mxu1 %vm512_vm0, %v9865_v8  ;;  %v7080_v16 = vor.u32 %v7256_v62, %v7079_v56  ;;  %v4669_v8 = vrot.slane %v4668_v44, 4  ;;  %v4691_v44 = vrot.slane %v4689_v41, 5 }
 0x2fc   : > { %v9309_v22 = vadd.f32 %v4258_v6, %v3996_v18  ;;  %5928 = vmatpush.bf16.msra.mxu2 %v7080_v16  ;;  %v4674_v3 = vsel %vm7838_vm12, %v4669_v8, %v4673_v45  ;;  %v4686_v16 = vshrl.u32 %v4364_v1, 16 }
 0x2fd   : > { %v4910_v31 = vpop.f32.mrf.mxu0 }
 0x2fe   : > { %v9312_v49 = vadd.f32 %v4910_v31, %v9053_v26  ;;  %v3948_v43 = vpop.f32.mrf.mxu2  ;;  %v4681_v26 = vshll.u32 %v9042_v27, 16 }
 0x2ff   : > { %v3519_v47 = vpop.f32.mrf.mxu1 }
 0x300   : > { %v9314_v5 = vpop.f32.mrf.mxu3  ;;  %6944 = vmatmul.msk.bf16.gmra.mxu0 %vm512_vm0, %v4809_v42  ;;  %v9318_v6 = vadd.f32 %v3519_v47, %v8823_v30  ;;  %v4683_v10 = vrot.slane %v4681_v26, 5  ;;  %v4695_v30 = vshll.u32 %v9050_v0, 16  ;;  %v4790_v0 = vunpack.c.l.b16 %v4674_v3 }
 0x301   : > { %v4688_v26 = vrot.slane %v4686_v16, 4 }
 0x302   : > { %v4684_v33 = vsel %vm7838_vm12, %v4679_v28, %v4683_v10  ;;  %v4697_v36 = vrot.slane %v4695_v30, 5 }
 0x303   : > { %v4791_v42 = vunpack.c.l.b16 %v4684_v33  ;;  %v4705_v33 = vshll.u32 %v9073_v51, 16  ;;  %v4692_v1 = vor.u32 %v4691_v44, %v4688_v26  ;;  %v9871_v51 = vld [vmem:[#allocation47_spill] sm:$0xff] }
 0x304   : > { %v4702_v28 = vor.u32 %v4701_v48, %v4697_v36  ;;  %v7238_v26 = vld [vmem:[%s7779_s15 + $0x18] sm:$0xff] }
 0x305   : > { %v4912_v15 = vpop.f32.mrf.mxu0  ;;  %v4707_v61 = vrot.slane %v4705_v33, 5 }
 0x306   : > { %v9322_v18 = vadd.f32 %v4912_v15, %v9095_v57  ;;  %v9329_v62 = vpop.f32.mrf.mxu2  ;;  %v7237_v57 = vld [vmem:[%s7779_s15 + $0x10] sm:$0xff]  ;;  %v4703_v30 = vrot.slane %v4702_v28, 4 }
 0x307   : > { %v3522_v31 = vpop.f32.mrf.mxu1  ;;  %9866 = vst [vmem:[#allocation30_spill] sm:$0xff] %v9329_v62  ;;  %5729 = vrot.lane.b32.xlu1 %v7237_v57, %s7609_s14 }
 0x308   : > { %v4263_v27 = vpop.f32.mrf.mxu3  ;;  %v3572_v56 = vadd.f32 %v3522_v31, %v8858_v55  ;;  %v4810_v55 = vpack.c.b16 %v4791_v42, %v4790_v0  ;;  %v4367_v31 = vld [vmem:[#allocation2 + $0xc0] sm:$0xf]  ;;  %v4708_v57 = vsel %vm7838_vm12, %v4703_v30, %v4707_v61 }
 0x309   : > { %v4710_v3 = vshrl.u32 %v4367_v31, 16  ;;  %v4713_v42 = vshll.u32 %v4367_v31, 16  ;;  %v4793_v44 = vunpack.c.l.b16 %v4708_v57  ;;  %v9361_v31 = vld [vmem:[#allocation2 + $0xc8] sm:$0x1]  ;;  %v7253_v57 = vld [vmem:[#allocation11 + $0x14] sm:$0xf] }
 0x30a   : > { %v3998_v25 = vadd.f32 %v3948_v43, %v3572_v56  ;;  %6983 = vmatmul.msk.bf16.gmra.mxu1 %vm512_vm0, %v9867_v32  ;;  %v9869_v43 = vld [vmem:[#allocation46_spill] sm:$0xff]  ;;  %v4693_v56 = vrot.slane %v4692_v1, 4 }
 0x30b   : > { %v4712_v28 = vrot.slane %v4710_v3, 4  ;;  %v4715_v33 = vrot.slane %v4713_v42, 5  ;;  %v7073_v3 = vld [vmem:[#allocation11 + $0x18] sm:$0xf0] }
 0x30c   : > { %v9337_v47 = vadd.f32 %v4263_v27, %v3998_v25  ;;  %v9346_v27 = vld [vmem:[#allocation2 + $0xc4] sm:$0xf]  ;;  %v7076_v42 = vor.u32 %v7253_v57, %v7073_v3 }
 0x30d   : > { %v4719_v16 = vshll.u32 %v9346_v27, 16  ;;  %v4723_v41 = vshrl.u32 %v9346_v27, 16 }
 0x30e   : > { %v3953_v8 = vpop.f32.mrf.mxu2  ;;  %6018 = vmatpush.bf16.msra.mxu3 %v7076_v42 }
 0x30f   : > { %v3524_v45 = vpop.f32.mrf.mxu1  ;;  %v4721_v1 = vrot.slane %v4719_v16, 5  ;;  %v4725_v30 = vrot.slane %v4723_v41, 4  ;;  %5731 = vrot.lane.b32.xlu1 %v7238_v26, %s7609_s14 }
 0x310   : > { %v9339_v15 = vpop.f32.mrf.mxu3  ;;  %6945 = vmatmul.msk.bf16.gmra.mxu0 %vm512_vm0, %v4810_v55  ;;  %v9343_v10 = vadd.f32 %v3524_v45, %v9869_v43  ;;  %v4698_v55 = vsel %vm7838_vm12, %v4693_v56, %v4697_v36  ;;  %v9873_v43 = vld [vmem:[#allocation26_spill] sm:$0xff] }
 0x311   : > { %9868 = vst [vmem:[#allocation17_spill] sm:$0xff] %v9339_v15  ;;  %v4792_v61 = vunpack.c.l.b16 %v4698_v55  ;;  %v9876_v55 = vld [vmem:[#allocation31_spill] sm:$0xff]  ;;  %v9880_v15 = vld [vmem:[#allocation29_spill] sm:$0xff] }
 0x312   : > { %9870 = vst [vmem:[#allocation32_spill] sm:$0xff] %v9343_v10 }
 0x313   : > { %v4811_v36 = vpack.c.b16 %v4793_v44, %v4792_v61  ;;  %v833_v61 = vld [vmem:[#allocation2 + $0xd4] sm:$0x1] }
 0x316   : > { %v9353_v0 = vpop.f32.mrf.mxu2 }
 0x317   : > { %v3527_v25 = vpop.f32.mrf.mxu1  ;;  %9872 = vst [vmem:[#allocation36_spill] sm:$0xff] %v9353_v0  ;;  %v7254_v0 = vld [vmem:[#allocation11 + $0x14] sm:$0xf0] }
 0x318   : > { %v4268_v32 = vpop.f32.mrf.mxu3  ;;  %v3574_v48 = vadd.f32 %v3527_v25, %v9871_v51  ;;  %v7071_v51 = vld [vmem:[#allocation11 + $0x10] sm:$0xf] }
 0x319   : > { %v7072_v56 = vor.u32 %v7254_v0, %v7071_v51  ;;  %v834_v51 = vsel %vm7815_vm6, 0, %v833_v61 }
 0x31a   : > { %v4000_v45 = vadd.f32 %v3953_v8, %v3574_v48  ;;  %6984 = vmatmul.msk.bf16.gmra.mxu1 %vm512_vm0, %v9873_v43  ;;  %v4716_v8 = vor.u32 %v4715_v33, %v4712_v28  ;;  %v4726_v48 = vor.u32 %v4725_v30, %v4721_v1  ;;  %v4729_v43 = vshll.u32 %v9361_v31, 16  ;;  %v4370_v28 = vld [vmem:[#allocation2 + $0xcc] sm:$0xf]  ;;  %v9372_v33 = vld [vmem:[#allocation2 + $0xd0] sm:$0xf] }
 0x31b   : > { %5929 = vmatpush.bf16.msra.mxu2 %v7072_v56  ;;  %v4734_v57 = vshrl.u32 %v4370_v28, 16  ;;  %v4737_v3 = vshll.u32 %v4370_v28, 16  ;;  %835 = vst [vmem:[#allocation2 + $0xd4] sm:$0x1] %v834_v51 }
 0x31c   : > { %v9363_v25 = vadd.f32 %v4268_v32, %v4000_v45  ;;  %v4717_v44 = vrot.slane %v4716_v8, 4  ;;  %v4727_v0 = vrot.slane %v4726_v48, 4  ;;  %v4731_v45 = vrot.slane %v4729_v43, 5 }
 0x31d   : > { %v4743_v8 = vshll.u32 %v9372_v33, 16  ;;  %v4747_v48 = vshrl.u32 %v9372_v33, 16  ;;  %v4739_v61 = vrot.slane %v4737_v3, 5  ;;  %v9881_v3 = vld [vmem:[#allocation19_spill] sm:$0xff] }
 0x31e   : > { %9874 = vst [vmem:[#allocation39_spill] sm:$0xff] %v9363_v25  ;;  %v3958_v26 = vpop.f32.mrf.mxu2  ;;  %v4732_v56 = vsel %vm7838_vm12, %v4727_v0, %v4731_v45 }
 0x31f   : > { %v3529_v16 = vpop.f32.mrf.mxu1  ;;  %v4745_v28 = vrot.slane %v4743_v8, 5  ;;  %v5171_v8 = vrot.slane %v9346_v27, 5 }
 0x320   : > { %v9366_v41 = vpop.f32.mrf.mxu3  ;;  %6946 = vmatmul.msk.bf16.gmra.mxu0 %vm512_vm0, %v4811_v36  ;;  %v9370_v32 = vadd.f32 %v3529_v16, %v9876_v55  ;;  %v4722_v36 = vsel %vm7838_vm12, %v4717_v44, %v4721_v1  ;;  %v4736_v16 = vrot.slane %v4734_v57, 4  ;;  %v9879_v55 = vld [vmem:[#allocation35_spill] sm:$0xff]  ;;  %v4795_v1 = vunpack.c.l.b16 %v4732_v56 }
 0x321   : > { %9875 = vst [vmem:[#allocation41_spill] sm:$0xff] %v9366_v41  ;;  %v4794_v25 = vunpack.c.l.b16 %v4722_v36 }
 0x322   : > { %9877 = vst [vmem:[#allocation42_spill] sm:$0xff] %v9370_v32  ;;  %v4749_v32 = vrot.slane %v4747_v48, 4  ;;  %v4740_v45 = vor.u32 %v4739_v61, %v4736_v16  ;;  %v9389_v10 = vld [vmem:[#allocation2 + $0xd4] sm:$0x1] }
 0x323   : > { %v4812_v62 = vpack.c.b16 %v4795_v1, %v4794_v25  ;;  %v4753_v57 = vshll.u32 %v9389_v10, 16  ;;  %v9882_v1 = vld [vmem:[#allocation22_spill] sm:$0xff] }
 0x324   : > { %v4750_v51 = vor.u32 %v4749_v32, %v4745_v28 }
 0x326   : > { %v9383_v30 = vpop.f32.mrf.mxu2 }
 0x327   : > { %v3532_v43 = vpop.f32.mrf.mxu1 }
 0x328   : > { %v4273_v42 = vpop.f32.mrf.mxu3  ;;  %v3576_v41 = vadd.f32 %v3532_v43, %v9879_v55 }
 0x32a   : > { %v4002_v44 = vadd.f32 %v3958_v26, %v3576_v41  ;;  %6985 = vmatmul.msk.bf16.gmra.mxu1 %vm512_vm0, %v9880_v15  ;;  %v4741_v41 = vrot.slane %v4740_v45, 4  ;;  %v4751_v26 = vrot.slane %v4750_v51, 4  ;;  %v4755_v15 = vrot.slane %v4753_v57, 5 }
 0x32b   : > { %v5173_v45 = vrot.slane %v5171_v8, 4  ;;  %v5174_v51 = vrot.slane %v9361_v31, 5  ;;  %v7252_v31 = vld [vmem:[#allocation11 + $0x4] sm:$0xf0] }
 0x32c   : > { %v9387_v0 = vadd.f32 %v4273_v42, %v4002_v44  ;;  %v4746_v32 = vsel %vm7838_vm12, %v4741_v41, %v4745_v28  ;;  %v4756_v25 = vsel %vm7838_vm12, %v4751_v26, %v4755_v15 }
 0x32d   : > { %v4796_v16 = vunpack.c.l.b16 %v4746_v32  ;;  %v4797_v61 = vunpack.c.l.b16 %v4756_v25  ;;  %v5175_v27 = vsel %vm7827_vm9, %v5173_v45, %v5174_v51  ;;  %v7063_v25 = vld [vmem:[#allocation11] sm:$0xf] }
 0x32e   : > { %v3963_v56 = vpop.f32.mrf.mxu2  ;;  %v5221_v15 = vunpack.c.l.b16 %v5175_v27 }
 0x32f   : > { %v3534_v43 = vpop.f32.mrf.mxu1  ;;  %v4813_v41 = vpack.c.b16 %v4797_v61, %v4796_v16 }
 0x330   : > { %v9392_v55 = vpop.f32.mrf.mxu3  ;;  %6947 = vmatmul.msk.bf16.gmra.mxu0 %vm512_vm0, %v4812_v62  ;;  %v9396_v36 = vadd.f32 %v3534_v43, %v9881_v3  ;;  %v5021_v62 = vld [vmem:[#allocation2 + $0xc0] sm:$0xe] }
 0x331   : > { %v6963_v43 = vrot.slane %v5021_v62, 9  ;;  %v9883_v3 = vld [vmem:[#allocation33_spill] sm:$0xff]  ;;  %v7065_v62 = vld [vmem:[#allocation11 + $0x8] sm:$0xf0] }
 0x333   : > { %v5172_v58 = vsel %vm7827_vm9, %v6963_v43, %v5171_v8 }
 0x334   : > { %v5220_v26 = vunpack.c.l.b16 %v5172_v58  ;;  %v9884_v58 = vld [vmem:[#allocation40_spill] sm:$0xff] }
 0x336   : > { %v9411_v28 = vpop.f32.mrf.mxu2 }
 0x337   : > { %v3537_v48 = vpop.f32.mrf.mxu1 }
 0x338   : > { %v4278_v42 = vpop.f32.mrf.mxu3  ;;  %v3578_v44 = vadd.f32 %v3537_v48, %v9882_v1  ;;  %v7064_v48 = vor.u32 %v7252_v31, %v7063_v25  ;;  %v9415_v1 = vpack.c.b16 %v5221_v15, %v5220_v26  ;;  %v7241_v15 = vld [vmem:[%s7779_s15 + $0x30] sm:$0xff] }
 0x339   : > { %5737 = vrot.lane.b32.xlu0 %v7241_v15, %s7609_s14 }
 0x33a   : > { %v4004_v57 = vadd.f32 %v3963_v56, %v3578_v44  ;;  %6986 = vmatmul.msk.bf16.gmra.mxu1 %vm512_vm0, %v9883_v3  ;;  %v7251_v56 = vld [vmem:[#allocation11 + $0x4] sm:$0xf]  ;;  %5930 = vmatpush.bf16.msra.mxu2 %v7064_v48 }
 0x33b   : > { %v7068_v44 = vor.u32 %v7251_v56, %v7065_v62  ;;  %v7240_v56 = vld [vmem:[%s7779_s15 + $0x28] sm:$0xff] }
 0x33c   : > { %v9413_v32 = vadd.f32 %v4278_v42, %v4004_v57  ;;  %v7239_v42 = vld [vmem:[%s7779_s15 + $0x20] sm:$0xff] }
 0x33d   : > { %6019 = vmatpush.bf16.msra.mxu3 %v7068_v44  ;;  %5733 = vrot.lane.b32.xlu2 %v7239_v42, %s7609_s14  ;;  %v9885_v44 = vld [vmem:[#allocation43_spill] sm:$0xff] }
 0x33e   : > { %v3968_v61 = vpop.f32.mrf.mxu2 }
 0x33f   : > { %v3539_v8 = vpop.f32.mrf.mxu1 }
 0x340   : > { %v9417_v43 = vpop.f32.mrf.mxu3  ;;  %6948 = vmatmul.msk.bf16.gmra.mxu0 %vm512_vm0, %v4813_v41  ;;  %v9421_v16 = vadd.f32 %v3539_v8, %v9101_v2 }
 0x345   : > { %5735 = vrot.lane.b32.xlu2 %v7240_v56, %s7609_s14 }
 0x346   : > { %v9430_v41 = vpop.f32.mrf.mxu2 }
 0x347   : > { %v3542_v45 = vpop.f32.mrf.mxu1 }
 0x348   : > { %v4283_v51 = vpop.f32.mrf.mxu3  ;;  %v3580_v57 = vadd.f32 %v3542_v45, %v9134_v20  ;;  %v7242_v45 = vld [vmem:[%s7779_s15 + $0x38] sm:$0xff] }
 0x349   : > { %5739 = vrot.lane.b32.xlu1 %v7242_v45, %s7609_s14 }
 0x34a   : > { %v4006_v3 = vadd.f32 %v3968_v61, %v3580_v57  ;;  %6987 = vmatmul.msk.bf16.gmra.mxu1 %vm512_vm0, %v9884_v58  ;;  %v9452_v57 = vld [vmem:[#allocation9] ss:$0 sm:$0xff] }
 0x34c   : > { %v9428_v27 = vadd.f32 %v4283_v51, %v4006_v3  ;;  %v9886_v3 = vld [vmem:[#allocation44_spill] sm:$0xff] }
 0x34e   : > { %v3973_v48 = vpop.f32.mrf.mxu2 }
 0x34f   : > { %v3544_v2 = vpop.f32.mrf.mxu1 }
 0x350   : > { %v9433_v26 = vadd.f32 %v3544_v2, %v9165_v53  ;;  %v9436_v25 = vpop.f32.mrf.mxu3 }
 0x357   : > { %v3547_v31 = vpop.f32.mrf.mxu1 }
 0x358   : > { %v3582_v20 = vadd.f32 %v3547_v31, %v9189_v46  ;;  %v4288_v62 = vpop.f32.mrf.mxu3 }
 0x359   : > { %v5726_v45 = vpop.permute.xlu0 %5725 }
 0x35a   : > { %6988 = vmatmul.msk.bf16.gmra.mxu1 %vm512_vm0, %v9885_v44  ;;  %v4008_v8 = vadd.f32 %v3973_v48, %v3582_v20  ;;  %v9459_v48 = vpop.f32.mrf.mxu0 }
 0x35c   : > { %v9444_v42 = vadd.f32 %v4288_v62, %v4008_v8 }
 0x35f   : > { %v3549_v53 = vpop.f32.mrf.mxu1 }
 0x360   : > { %v9447_v61 = vadd.f32 %v3549_v53, %v9216_v63 }
 0x367   : > { %v5321_v51 = vpop.f32.mrf.mxu1 }
 0x368   : > { %v5401_v46 = vadd.f32 %v5321_v51, %v9227_v24  ;;  %v9887_v51 = vld [vmem:[#allocation45_spill] sm:$0xff] }
 0x36a   : > { %6989 = vmatmul.msk.bf16.gmra.mxu1 %vm512_vm0, %v9886_v3  ;;  %v5437_v58 = vadd.f32 %v9452_v57, %v5401_v46 }
 0x36c   : > { %v5469_v15 = vmax.f32 %v5437_v58, 0.0  ;;  %v9466_v58 = vpop.f32.mrf.mxu0 }
 0x36e   : > { %v5501_v20 = vpack.c.bf16 %v5469_v15, %v5469_v15 }
 0x36f   : > { %v5323_v2 = vpop.f32.mrf.mxu1 }
 0x370   : > { %v5402_v31 = vadd.f32 %v5323_v2, %v9241_v37  ;;  %v5597_v44 = vunpack.c.l.b16 %v5501_v20 }
 0x372   : > { %v5438_v63 = vadd.f32 %v9452_v57, %v5402_v31 }
 0x374   : > { %v5470_v56 = vmax.f32 %v5438_v63, 0.0  ;;  %v7244_v63 = vld [vmem:[%s7779_s15 + $0x48] sm:$0xff] }
 0x375   : > { %5743 = vrot.lane.b32.xlu0 %v7244_v63, %s7609_s14  ;;  %v7245_v63 = vld [vmem:[%s7779_s15 + $0x50] sm:$0xff] }
 0x376   : > { %v5502_v62 = vpack.c.bf16 %v5470_v56, %v5470_v56  ;;  %5745 = vrot.lane.b32.xlu1 %v7245_v63, %s7609_s14 }
 0x377   : > { %v5326_v24 = vpop.f32.mrf.mxu1 }
 0x378   : > { %v5598_v8 = vunpack.c.l.b16 %v5502_v62  ;;  %v5403_v53 = vadd.f32 %v5326_v24, %v9256_v34 }
 0x37a   : > { %6990 = vmatmul.msk.bf16.gmra.mxu1 %vm512_vm0, %v9887_v51  ;;  %v5629_v46 = vpack.c.b16 %v5598_v8, %v5597_v44  ;;  %v5439_v37 = vadd.f32 %v9452_v57, %v5403_v53  ;;  %v9474_v51 = vpop.f32.mrf.mxu0 }
 0x37c   : > { %v5759_v3 = vsel %vm512_vm0, %v5629_v46, %v5726_v45  ;;  %v5471_v15 = vmax.f32 %v5439_v37, 0.0  ;;  %v7243_v45 = vld [vmem:[%s7779_s15 + $0x40] sm:$0xff]  ;;  %v5728_v46 = vpop.permute.xlu0 %5727 }
 0x37d   : > { %5931 = vmatmul.bf16.vlgmr.msra.gmra.mxu2 %v5759_v3  ;;  %6020 = vmatmul.bf16.vlgmr.msra.gmra.mxu3 %v5759_v3  ;;  %v9888_v37 = vld [vmem:[#allocation48_spill] sm:$0xff] }
 0x37e   : > { %v5503_v20 = vpack.c.bf16 %v5471_v15, %v5471_v15  ;;  %5741 = vrot.lane.b32.xlu2 %v7243_v45, %s7609_s14 }
 0x37f   : > { %v5328_v2 = vpop.f32.mrf.mxu1 }
 0x380   : > { %v5404_v31 = vadd.f32 %v5328_v2, %v9266_v14  ;;  %v5599_v44 = vunpack.c.l.b16 %v5503_v20 }
 0x382   : > { %v5440_v34 = vadd.f32 %v9452_v57, %v5404_v31  ;;  %v9485_v20 = vpop.f32.mrf.mxu0 }
 0x384   : > { %v5472_v56 = vmax.f32 %v5440_v34, 0.0 }
 0x386   : > { %v5504_v62 = vpack.c.bf16 %v5472_v56, %v5472_v56 }
 0x387   : > { %v5331_v24 = vpop.f32.mrf.mxu1 }
 0x388   : > { %v5600_v8 = vunpack.c.l.b16 %v5504_v62  ;;  %v5405_v53 = vadd.f32 %v5331_v24, %v9284_v4 }
 0x38a   : > { %6991 = vmatmul.msk.bf16.gmra.mxu1 %vm512_vm0, %v9888_v37  ;;  %v5630_v14 = vpack.c.b16 %v5600_v8, %v5599_v44  ;;  %v5441_v3 = vadd.f32 %v9452_v57, %v5405_v53  ;;  %v9889_v37 = vld [vmem:[#allocation34_spill] sm:$0xff] }
 0x38c   : > { %v5763_v2 = vsel %vm512_vm0, %v5630_v14, %v5728_v46  ;;  %v5473_v31 = vmax.f32 %v5441_v3, 0.0  ;;  %v5730_v46 = vpop.permute.xlu1 %5729 }
 0x38d   : > { %5936 = vmatmul.bf16.gmra.mxu2 %v5763_v2  ;;  %6025 = vmatmul.bf16.gmra.mxu3 %v5763_v2  ;;  %v9492_v2 = vpop.f32.mrf.mxu0 }
 0x38e   : > { %v5505_v56 = vpack.c.bf16 %v5473_v31, %v5473_v31 }
 0x38f   : > { %v5333_v15 = vpop.f32.mrf.mxu1 }
 0x390   : > { %v5406_v4 = vadd.f32 %v5333_v15, %v9294_v29  ;;  %v5601_v8 = vunpack.c.l.b16 %v5505_v56  ;;  %v4983_v56 = vadd.f32 %v9459_v48, %v9131_v19 }
 0x392   : > { %v5442_v34 = vadd.f32 %v9452_v57, %v5406_v4 }
 0x394   : > { %v5474_v62 = vmax.f32 %v5442_v34, 0.0 }
 0x396   : > { %v5506_v24 = vpack.c.bf16 %v5474_v62, %v5474_v62 }
 0x397   : > { %v5336_v44 = vpop.f32.mrf.mxu1 }
 0x398   : > { %v5602_v53 = vunpack.c.l.b16 %v5506_v24  ;;  %v5407_v45 = vadd.f32 %v5336_v44, %v9312_v49  ;;  %v9498_v24 = vpop.f32.mrf.mxu0 }
 0x39a   : > { %6992 = vmatmul.msk.bf16.gmra.mxu1 %vm512_vm0, %v9889_v37  ;;  %v5631_v29 = vpack.c.b16 %v5602_v53, %v5601_v8  ;;  %v5443_v14 = vadd.f32 %v9452_v57, %v5407_v45  ;;  %v9890_v8 = vld [vmem:[#allocation24_spill] sm:$0xff] }
 0x39b   : > { %v3987_v53 = vadd.f32 %v9890_v8, %v9145_v50  ;;  %v4985_v8 = vadd.f32 %v9474_v51, %v9186_v12 }
 0x39c   : > { %v5767_v3 = vsel %vm512_vm0, %v5631_v29, %v5730_v46  ;;  %v5475_v31 = vmax.f32 %v5443_v14, 0.0  ;;  %v5732_v29 = vpop.permute.xlu1 %5731 }
 0x39d   : > { %5941 = vmatmul.bf16.gmra.mxu2 %v5767_v3  ;;  %6030 = vmatmul.bf16.gmra.mxu3 %v5767_v3  ;;  %v9892_v3 = vld [vmem:[#allocation25_spill] sm:$0xff] }
 0x39e   : > { %v5507_v49 = vpack.c.bf16 %v5475_v31, %v5475_v31 }
 0x39f   : > { %v5338_v15 = vpop.f32.mrf.mxu1 }
 0x3a0   : > { %v5408_v4 = vadd.f32 %v5338_v15, %v9322_v18  ;;  %v5603_v45 = vunpack.c.l.b16 %v5507_v49  ;;  %v9891_v18 = vld [vmem:[#allocation37_spill] sm:$0xff]  ;;  %v4302_v15 = vadd.f32 %v9892_v3, %v3987_v53 }
 0x3a1   : > { %v7247_v49 = vld [vmem:[%s7779_s15 + $0x60] sm:$0xff] }
 0x3a2   : > { %v5444_v63 = vadd.f32 %v9452_v57, %v5408_v4  ;;  %v4984_v31 = vadd.f32 %v9466_v58, %v4302_v15  ;;  %5749 = vrot.lane.b32.xlu0 %v7247_v49, %s7609_s14  ;;  %v9893_v58 = vld [vmem:[#allocation27_spill] sm:$0xff]  ;;  %v9894_v15 = vld [vmem:[#allocation38_spill] sm:$0xff] }
 0x3a4   : > { %v5476_v34 = vmax.f32 %v5444_v63, 0.0 }
 0x3a6   : > { %v5508_v62 = vpack.c.bf16 %v5476_v34, %v5476_v34  ;;  %v9509_v34 = vpop.f32.mrf.mxu0 }
 0x3a7   : > { %v5341_v44 = vpop.f32.mrf.mxu1 }
 0x3a8   : > { %v5604_v46 = vunpack.c.l.b16 %v5508_v62  ;;  %v5409_v37 = vadd.f32 %v5341_v44, %v4983_v56 }
 0x3aa   : > { %6993 = vmatmul.msk.bf16.gmra.mxu1 %vm512_vm0, %v9891_v18  ;;  %v5632_v14 = vpack.c.b16 %v5604_v46, %v5603_v45  ;;  %v5445_v19 = vadd.f32 %v9452_v57, %v5409_v37  ;;  %v3989_v46 = vadd.f32 %v9893_v58, %v9198_v21 }
 0x3ac   : > { %v5771_v48 = vsel %vm512_vm0, %v5632_v14, %v5732_v29  ;;  %v5477_v4 = vmax.f32 %v5445_v19, 0.0  ;;  %v5734_v14 = vpop.permute.xlu2 %5733  ;;  %v7246_v19 = vld [vmem:[%s7779_s15 + $0x58] sm:$0xff] }
 0x3ad   : > { %5946 = vmatmul.bf16.gmra.mxu2 %v5771_v48  ;;  %6035 = vmatmul.bf16.gmra.mxu3 %v5771_v48 }
 0x3ae   : > { %v5509_v62 = vpack.c.bf16 %v5477_v4, %v5477_v4  ;;  %v9520_v48 = vpop.f32.mrf.mxu0  ;;  %5747 = vrot.lane.b32.xlu2 %v7246_v19, %s7609_s14 }
 0x3af   : > { %v5343_v50 = vpop.f32.mrf.mxu1 }
 0x3b0   : > { %v5410_v63 = vadd.f32 %v5343_v50, %v4984_v31  ;;  %v5605_v37 = vunpack.c.l.b16 %v5509_v62  ;;  %v9895_v31 = vld [vmem:[#allocation28_spill] sm:$0xff] }
 0x3b1   : > { %v4304_v50 = vadd.f32 %v9895_v31, %v3989_v46 }
 0x3b2   : > { %v5446_v56 = vadd.f32 %v9452_v57, %v5410_v63 }
 0x3b3   : > { %v4986_v21 = vadd.f32 %v9485_v20, %v4304_v50  ;;  %v3991_v20 = vadd.f32 %v9219_v52, %v9233_v17 }
 0x3b4   : > { %v5478_v44 = vmax.f32 %v5446_v56, 0.0  ;;  %v7248_v56 = vld [vmem:[%s7779_s15 + $0x68] sm:$0xff] }
 0x3b5   : > { %5751 = vrot.lane.b32.xlu1 %v7248_v56, %s7609_s14 }
 0x3b6   : > { %v5510_v53 = vpack.c.bf16 %v5478_v44, %v5478_v44 }
 0x3b7   : > { %v5346_v45 = vpop.f32.mrf.mxu1 }
 0x3b8   : > { %v5606_v29 = vunpack.c.l.b16 %v5510_v53  ;;  %v5411_v18 = vadd.f32 %v5346_v45, %v4985_v8  ;;  %v4935_v53 = vpop.f32.mrf.mxu0  ;;  %v4987_v45 = vadd.f32 %v9492_v2, %v9224_v59  ;;  %v5181_v59 = vrot.slane %v9389_v10, 5 }
 0x3b9   : > { %v4306_v2 = vadd.f32 %v9229_v39, %v3991_v20 }
 0x3ba   : > { %v5633_v3 = vpack.c.b16 %v5606_v29, %v5605_v37  ;;  %6994 = vmatmul.msk.bf16.gmra.mxu1 %vm512_vm0, %v9894_v15  ;;  %v5447_v12 = vadd.f32 %v9452_v57, %v5411_v18  ;;  %v5178_v37 = vrot.slane %v9372_v33, 5  ;;  %v5736_v15 = vpop.permute.xlu2 %5735 }
 0x3bb   : > { %v4988_v52 = vadd.f32 %v9498_v24, %v4306_v2  ;;  %v4991_v2 = vadd.f32 %v4935_v53, %v9281_v9 }
 0x3bc   : > { %v5775_v51 = vsel %vm512_vm0, %v5633_v3, %v5734_v14  ;;  %v5479_v63 = vmax.f32 %v5447_v12, 0.0  ;;  %v5022_v3 = vld [vmem:[#allocation2 + $0xcc] sm:$0xe]  ;;  %v5180_v50 = vrot.slane %v5178_v37, 4 }
 0x3bd   : > { %5951 = vmatmul.bf16.gmra.mxu2 %v5775_v51  ;;  %6040 = vmatmul.bf16.gmra.mxu3 %v5775_v51  ;;  %v6964_v31 = vrot.slane %v5022_v3, 9 }
 0x3be   : > { %v5511_v44 = vpack.c.bf16 %v5479_v63, %v5479_v63 }
 0x3bf   : > { %v5348_v4 = vpop.f32.mrf.mxu1 }
 0x3c0   : > { %v5412_v49 = vadd.f32 %v5348_v4, %v4986_v21  ;;  %v5607_v29 = vunpack.c.l.b16 %v5511_v44  ;;  %v4937_v17 = vpop.f32.mrf.mxu0  ;;  %v5179_v21 = vsel %vm7827_vm9, %v6964_v31, %v5178_v37  ;;  %v4989_v44 = vadd.f32 %v9509_v34, %v9253_v54 }
 0x3c1   : > { %v5222_v63 = vunpack.c.l.b16 %v5179_v21 }
 0x3c2   : > { %v5448_v62 = vadd.f32 %v9452_v57, %v5412_v49 }
 0x3c4   : > { %v5480_v8 = vmax.f32 %v5448_v62, 0.0 }
 0x3c6   : > { %v5512_v58 = vpack.c.bf16 %v5480_v8, %v5480_v8 }
 0x3c7   : > { %v5351_v46 = vpop.f32.mrf.mxu1 }
 0x3c8   : > { %v5608_v18 = vunpack.c.l.b16 %v5512_v58  ;;  %v5413_v14 = vadd.f32 %v5351_v46, %v4987_v45  ;;  %v3993_v58 = vadd.f32 %v9248_v35, %v9262_v13  ;;  %v4940_v20 = vpop.f32.mrf.mxu0 }
 0x3ca   : > { %v5634_v19 = vpack.c.b16 %v5608_v18, %v5607_v29  ;;  %6995 = vmatmul.msk.bf16.gmra.mxu1 %vm512_vm0, %v9415_v1  ;;  %v5449_v33 = vadd.f32 %v9452_v57, %v5413_v14  ;;  %v5182_v1 = vsel %vm7827_vm9, %v5180_v50, %v5181_v59  ;;  %v5738_v29 = vpop.permute.xlu0 %5737  ;;  %v4308_v14 = vadd.f32 %v9258_v60, %v3993_v58 }
 0x3cb   : > { %v5223_v49 = vunpack.c.l.b16 %v5182_v1  ;;  %v5740_v1 = vpop.permute.xlu1 %5739 }
 0x3cc   : > { %v5779_v12 = vsel %vm512_vm0, %v5634_v19, %v5736_v15  ;;  %v5481_v4 = vmax.f32 %v5449_v33, 0.0  ;;  %v4990_v34 = vadd.f32 %v9520_v48, %v4308_v14  ;;  %v7250_v19 = vld [vmem:[%s7779_s15 + $0x78] sm:$0xff] }
 0x3cd   : > { %5956 = vmatmul.bf16.gmra.mxu2 %v5779_v12  ;;  %6045 = vmatmul.bf16.gmra.mxu3 %v5779_v12  ;;  %v5239_v8 = vpack.c.b16 %v5223_v49, %v5222_v63 }
 0x3ce   : > { %v5513_v56 = vpack.c.bf16 %v5481_v4, %v5481_v4  ;;  %5755 = vrot.lane.b32.xlu0 %v7250_v19, %s7609_s14 }
 0x3cf   : > { %v5353_v51 = vpop.f32.mrf.mxu1 }
 0x3d0   : > { %v5414_v10 = vadd.f32 %v5353_v51, %v4988_v52  ;;  %v5609_v46 = vunpack.c.l.b16 %v5513_v56  ;;  %v4942_v50 = vpop.f32.mrf.mxu0  ;;  %v3995_v52 = vadd.f32 %v9273_v38, %v9290_v23 }
 0x3d2   : > { %v5450_v39 = vadd.f32 %v9452_v57, %v5414_v10  ;;  %v7249_v10 = vld [vmem:[%s7779_s15 + $0x70] sm:$0xff] }
 0x3d3   : > { %5753 = vrot.lane.b32.xlu2 %v7249_v10, %s7609_s14  ;;  %v9896_v10 = vld [vmem:[#allocation32_spill] sm:$0xff] }
 0x3d4   : > { %v5482_v62 = vmax.f32 %v5450_v39, 0.0  ;;  %v4310_v39 = vadd.f32 %v9286_v11, %v3995_v52 }
 0x3d6   : > { %v5514_v24 = vpack.c.bf16 %v5482_v62, %v5482_v62  ;;  %v4992_v53 = vadd.f32 %v4937_v17, %v4310_v39  ;;  %v9897_v39 = vld [vmem:[#allocation30_spill] sm:$0xff] }
 0x3d7   : > { %v5356_v45 = vpop.f32.mrf.mxu1 }
 0x3d8   : > { %v5610_v40 = vunpack.c.l.b16 %v5514_v24  ;;  %v5415_v37 = vadd.f32 %v5356_v45, %v4989_v44  ;;  %v4945_v9 = vpop.f32.mrf.mxu0  ;;  %v5742_v14 = vpop.permute.xlu2 %5741 }
 0x3da   : > { %v5635_v18 = vpack.c.b16 %v5610_v40, %v5609_v46  ;;  %6996 = vmatmul.msk.bf16.gmra.mxu1 %vm512_vm0, %v5239_v8  ;;  %v5451_v3 = vadd.f32 %v9452_v57, %v5415_v37  ;;  %v4993_v8 = vadd.f32 %v4940_v20, %v9309_v22  ;;  %v3997_v46 = vadd.f32 %v9301_v7, %v9318_v6  ;;  %v9571_v40 = vpop.f32.mrf.mxu2  ;;  %v9573_v37 = vpop.f32.mrf.mxu3 }
 0x3dc   : > { %v5783_v54 = vsel %vm512_vm0, %v5635_v18, %v5738_v29  ;;  %v5483_v13 = vmax.f32 %v5451_v3, 0.0  ;;  %v4312_v22 = vadd.f32 %v9314_v5, %v3997_v46 }
 0x3dd   : > { %5961 = vmatmul.bf16.gmra.mxu2 %v5783_v54  ;;  %6050 = vmatmul.bf16.gmra.mxu3 %v5783_v54  ;;  %v5837_v54 = vld [vmem:[%s9768_s6] sm:$0x3] }
 0x3de   : > { %v5515_v59 = vpack.c.bf16 %v5483_v13, %v5483_v13  ;;  %v9581_v6 = vperm.slane %v5837_v54, 0 }
 0x3df   : > { %v5358_v35 = vpop.f32.mrf.mxu1 }
 0x3e0   : > { %v5416_v15 = vadd.f32 %v5358_v35, %v4990_v34  ;;  %v5611_v48 = vunpack.c.l.b16 %v5515_v59  ;;  %v4947_v45 = vpop.f32.mrf.mxu0  ;;  %v9583_v34 = vperm.slane %v5837_v54, 1  ;;  %v4994_v35 = vadd.f32 %v4942_v50, %v4312_v22 }
 0x3e1   : > { %v4995_v50 = vadd.f32 %v4945_v9, %v9337_v47 }
 0x3e2   : > { %v5452_v31 = vadd.f32 %v9452_v57, %v5416_v15 }
 0x3e4   : > { %v5484_v60 = vmax.f32 %v5452_v31, 0.0 }
 0x3e6   : > { %v5516_v33 = vpack.c.bf16 %v5484_v60, %v5484_v60 }
 0x3e7   : > { %v5361_v12 = vpop.f32.mrf.mxu1  ;;  %v5744_v47 = vpop.permute.xlu0 %5743 }
 0x3e8   : > { %v5612_v51 = vunpack.c.l.b16 %v5516_v33  ;;  %v5417_v21 = vadd.f32 %v5361_v12, %v4991_v2  ;;  %v4950_v60 = vpop.f32.mrf.mxu0 }
 0x3ea   : > { %v5636_v4 = vpack.c.b16 %v5612_v51, %v5611_v48  ;;  %v5453_v63 = vadd.f32 %v9452_v57, %v5417_v21 }
 0x3ec   : > { %v5787_v49 = vsel %vm512_vm0, %v5636_v4, %v5740_v1  ;;  %v5485_v38 = vmax.f32 %v5453_v63, 0.0  ;;  %v3999_v63 = vadd.f32 %v9897_v39, %v9896_v10 }
 0x3ed   : > { %5966 = vmatmul.bf16.gmra.mxu2 %v5787_v49  ;;  %6055 = vmatmul.bf16.gmra.mxu3 %v5787_v49 }
 0x3ee   : > { %v5517_v44 = vpack.c.bf16 %v5485_v38, %v5485_v38 }
 0x3ef   : > { %v5363_v56 = vpop.f32.mrf.mxu1 }
 0x3f0   : > { %v5418_v23 = vadd.f32 %v5363_v56, %v4992_v53  ;;  %v5613_v17 = vunpack.c.l.b16 %v5517_v44 }
 0x3f2   : > { %v5454_v62 = vadd.f32 %v9452_v57, %v5418_v23 }
 0x3f4   : > { %v5486_v24 = vmax.f32 %v5454_v62, 0.0 }
 0x3f6   : > { %v5518_v11 = vpack.c.bf16 %v5486_v24, %v5486_v24  ;;  %v4952_v24 = vpop.f32.mrf.mxu0 }
 0x3f7   : > { %v5366_v58 = vpop.f32.mrf.mxu1 }
 0x3f8   : > { %v5614_v29 = vunpack.c.l.b16 %v5518_v11  ;;  %v5419_v18 = vadd.f32 %v5366_v58, %v4993_v8  ;;  %v9898_v58 = vld [vmem:[#allocation17_spill] sm:$0xff] }
 0x3f9   : > { %v4314_v46 = vadd.f32 %v9898_v58, %v3999_v63 }
 0x3fa   : > { %v5637_v3 = vpack.c.b16 %v5614_v29, %v5613_v17  ;;  %v5455_v20 = vadd.f32 %v9452_v57, %v5419_v18 }
 0x3fc   : > { %v5791_v7 = vsel %vm512_vm0, %v5637_v3, %v5742_v14  ;;  %v5487_v15 = vmax.f32 %v5455_v20, 0.0  ;;  %v4996_v14 = vadd.f32 %v4947_v45, %v4314_v46  ;;  %v9899_v45 = vld [vmem:[#allocation39_spill] sm:$0xff] }
 0x3fd   : > { %5971 = vmatmul.bf16.gmra.mxu2 %v5791_v7  ;;  %6060 = vmatmul.bf16.gmra.mxu3 %v5791_v7 }
 0x3fe   : > { %v5519_v48 = vpack.c.bf16 %v5487_v15, %v5487_v15 }
 0x3ff   : > { %v5368_v13 = vpop.f32.mrf.mxu1 }
 0x400   : > { %v5420_v19 = vadd.f32 %v5368_v13, %v4994_v35  ;;  %v5932_v31 = vpop.f32.mrf.mxu2  ;;  %v6021_v59 = vpop.f32.mrf.mxu3  ;;  %v5615_v49 = vunpack.c.l.b16 %v5519_v48 }
 0x401   : > { %v5933_v2 = vadd.f32 %v5932_v31, %v9581_v6  ;;  %v6022_v5 = vadd.f32 %v6021_v59, %v9583_v34 }
 0x402   : > { %v5456_v33 = vadd.f32 %v9452_v57, %v5420_v19 }
 0x403   : > { %v6101_v12 = vmax.f32 %v5933_v2, 0.0  ;;  %v6102_v52 = vmax.f32 %v6022_v5, 0.0  ;;  %v4955_v5 = vpop.f32.mrf.mxu0 }
 0x404   : > { %v5488_v51 = vmax.f32 %v5456_v33, 0.0 }
 0x405   : > { %v6165_v21 = vpack.c.bf16 %v6102_v52, %v6101_v12  ;;  %v4997_v12 = vadd.f32 %v4950_v60, %v9899_v45 }
 0x406   : > { %v5520_v1 = vpack.c.bf16 %v5488_v51, %v5488_v51  ;;  %v9900_v51 = vld [vmem:[#allocation42_spill] sm:$0xff] }
 0x407   : > { %6197 = vst [vmem:[%s9590_s21] sm:$0xff] %v6165_v21  ;;  %v5371_v4 = vpop.f32.mrf.mxu1  ;;  %v9901_v21 = vld [vmem:[#allocation36_spill] sm:$0xff] }
 0x408   : > { %v5616_v53 = vunpack.c.l.b16 %v5520_v1  ;;  %v5421_v56 = vadd.f32 %v5371_v4, %v4995_v50  ;;  %v5934_v38 = vpop.f32.mrf.mxu2  ;;  %v6023_v23 = vpop.f32.mrf.mxu3  ;;  %v4001_v50 = vadd.f32 %v9901_v21, %v9900_v51 }
 0x409   : > { %v5935_v62 = vadd.f32 %v5934_v38, %v9581_v6  ;;  %v6024_v44 = vadd.f32 %v6023_v23, %v9583_v34 }
 0x40a   : > { %v5638_v9 = vpack.c.b16 %v5616_v53, %v5615_v49  ;;  %v5457_v17 = vadd.f32 %v9452_v57, %v5421_v56  ;;  %v5746_v56 = vpop.permute.xlu1 %5745 }
 0x40b   : > { %v6103_v8 = vmax.f32 %v5935_v62, 0.0  ;;  %v6104_v11 = vmax.f32 %v6024_v44, 0.0  ;;  %v9902_v62 = vld [vmem:[#allocation41_spill] sm:$0xff]  ;;  %v4957_v58 = vpop.f32.mrf.mxu0 }
 0x40c   : > { %v5795_v29 = vsel %vm512_vm0, %v5638_v9, %v5744_v47  ;;  %v5489_v54 = vmax.f32 %v5457_v17, 0.0  ;;  %v4316_v44 = vadd.f32 %v9902_v62, %v4001_v50  ;;  %v5748_v50 = vpop.permute.xlu2 %5747 }
 0x40d   : > { %v6166_v18 = vpack.c.bf16 %v6104_v11, %v6103_v8  ;;  %5976 = vmatmul.bf16.gmra.mxu2 %v5795_v29  ;;  %6065 = vmatmul.bf16.gmra.mxu3 %v5795_v29 }
 0x40e   : > { %v5521_v59 = vpack.c.bf16 %v5489_v54, %v5489_v54  ;;  %v4998_v11 = vadd.f32 %v4952_v24, %v4316_v44  ;;  %v4999_v24 = vadd.f32 %v4955_v5, %v9387_v0 }
 0x40f   : > { %6198 = vst [vmem:[%s9590_s21 + $0x8] sm:$0xff] %v6166_v18  ;;  %v5373_v3 = vpop.f32.mrf.mxu1 }
 0x410   : > { %v5422_v22 = vadd.f32 %v5373_v3, %v4996_v14  ;;  %v5937_v20 = vpop.f32.mrf.mxu2  ;;  %v6026_v7 = vpop.f32.mrf.mxu3  ;;  %v5617_v1 = vunpack.c.l.b16 %v5521_v59  ;;  %v4003_v59 = vadd.f32 %v9383_v30, %v9396_v36 }
 0x411   : > { %v5938_v35 = vadd.f32 %v5937_v20, %v9581_v6  ;;  %v6027_v13 = vadd.f32 %v6026_v7, %v9583_v34 }
 0x412   : > { %v5458_v15 = vadd.f32 %v9452_v57, %v5422_v22 }
 0x413   : > { %v6105_v19 = vmax.f32 %v5938_v35, 0.0  ;;  %v6106_v31 = vmax.f32 %v6027_v13, 0.0 }
 0x414   : > { %v5490_v2 = vmax.f32 %v5458_v15, 0.0 }
 0x415   : > { %v6167_v33 = vpack.c.bf16 %v6106_v31, %v6105_v19 }
 0x416   : > { %v5522_v52 = vpack.c.bf16 %v5490_v2, %v5490_v2 }
 0x417   : > { %6199 = vst [vmem:[%s9590_s21 + $0x10] sm:$0xff] %v6167_v33  ;;  %v5376_v48 = vpop.f32.mrf.mxu1 }
 0x418   : > { %v5618_v4 = vunpack.c.l.b16 %v5522_v52  ;;  %v5423_v10 = vadd.f32 %v5376_v48, %v4997_v12  ;;  %v5939_v39 = vpop.f32.mrf.mxu2  ;;  %v6028_v63 = vpop.f32.mrf.mxu3 }
 0x419   : > { %v5940_v49 = vadd.f32 %v5939_v39, %v9581_v6  ;;  %v6029_v53 = vadd.f32 %v6028_v63, %v9583_v34  ;;  %v4960_v48 = vpop.f32.mrf.mxu0 }
 0x41a   : > { %v5639_v38 = vpack.c.b16 %v5618_v4, %v5617_v1  ;;  %v5459_v47 = vadd.f32 %v9452_v57, %v5423_v10  ;;  %v4318_v4 = vadd.f32 %v9392_v55, %v4003_v59 }
 0x41b   : > { %v6107_v23 = vmax.f32 %v5940_v49, 0.0  ;;  %v6108_v60 = vmax.f32 %v6029_v53, 0.0 }
 0x41c   : > { %v5799_v9 = vsel %vm512_vm0, %v5639_v38, %v5746_v56  ;;  %v5491_v17 = vmax.f32 %v5459_v47, 0.0  ;;  %v5000_v39 = vadd.f32 %v4957_v58, %v4318_v4  ;;  %v5001_v58 = vadd.f32 %v4960_v48, %v9413_v32 }
 0x41d   : > { %v6168_v8 = vpack.c.bf16 %v6108_v60, %v6107_v23  ;;  %5981 = vmatmul.bf16.gmra.mxu2 %v5799_v9  ;;  %6070 = vmatmul.bf16.gmra.mxu3 %v5799_v9 }
 0x41e   : > { %v5523_v35 = vpack.c.bf16 %v5491_v17, %v5491_v17 }
 0x41f   : > { %6200 = vst [vmem:[%s9590_s21 + $0x18] sm:$0xff] %v6168_v8  ;;  %v5378_v46 = vpop.f32.mrf.mxu1 }
 0x420   : > { %v5424_v29 = vadd.f32 %v5378_v46, %v4998_v11  ;;  %v5942_v18 = vpop.f32.mrf.mxu2  ;;  %v6031_v14 = vpop.f32.mrf.mxu3  ;;  %v5619_v2 = vunpack.c.l.b16 %v5523_v35 }
 0x421   : > { %v5943_v3 = vadd.f32 %v5942_v18, %v9581_v6  ;;  %v6032_v54 = vadd.f32 %v6031_v14, %v9583_v34  ;;  %v4962_v62 = vpop.f32.mrf.mxu0  ;;  %v5750_v35 = vpop.permute.xlu0 %5749 }
 0x422   : > { %v5460_v22 = vadd.f32 %v9452_v57, %v5424_v29  ;;  %v4005_v29 = vadd.f32 %v9411_v28, %v9421_v16 }
 0x423   : > { %v6109_v20 = vmax.f32 %v5943_v3, 0.0  ;;  %v6110_v7 = vmax.f32 %v6032_v54, 0.0 }
 0x424   : > { %v5492_v13 = vmax.f32 %v5460_v22, 0.0 }
 0x425   : > { %v6169_v15 = vpack.c.bf16 %v6110_v7, %v6109_v20 }
 0x426   : > { %v5524_v19 = vpack.c.bf16 %v5492_v13, %v5492_v13 }
 0x427   : > { %6201 = vst [vmem:[%s9590_s21 + $0x20] sm:$0xff] %v6169_v15  ;;  %v5381_v31 = vpop.f32.mrf.mxu1 }
 0x428   : > { %v5620_v33 = vunpack.c.l.b16 %v5524_v19  ;;  %v5425_v45 = vadd.f32 %v5381_v31, %v4999_v24  ;;  %v5944_v12 = vpop.f32.mrf.mxu2  ;;  %v6033_v52 = vpop.f32.mrf.mxu3  ;;  %v4320_v24 = vadd.f32 %v9417_v43, %v4005_v29 }
 0x429   : > { %v5945_v51 = vadd.f32 %v5944_v12, %v9581_v6  ;;  %v6034_v21 = vadd.f32 %v6033_v52, %v9583_v34  ;;  %v4965_v16 = vpop.f32.mrf.mxu0 }
 0x42a   : > { %v5640_v1 = vpack.c.b16 %v5620_v33, %v5619_v2  ;;  %v5461_v10 = vadd.f32 %v9452_v57, %v5425_v45  ;;  %v5002_v59 = vadd.f32 %v4962_v62, %v4320_v24  ;;  %v5003_v4 = vadd.f32 %v4965_v16, %v9428_v27 }
 0x42b   : > { %v6111_v0 = vmax.f32 %v5945_v51, 0.0  ;;  %v6112_v5 = vmax.f32 %v6034_v21, 0.0  ;;  %v4009_v24 = vadd.f32 %v9571_v40, %v9447_v61 }
 0x42c   : > { %v5803_v30 = vsel %vm512_vm0, %v5640_v1, %v5748_v50  ;;  %v5493_v49 = vmax.f32 %v5461_v10, 0.0 }
 0x42d   : > { %v6170_v36 = vpack.c.bf16 %v6112_v5, %v6111_v0  ;;  %5986 = vmatmul.bf16.gmra.mxu2 %v5803_v30  ;;  %6075 = vmatmul.bf16.gmra.mxu3 %v5803_v30 }
 0x42e   : > { %v5525_v9 = vpack.c.bf16 %v5493_v49, %v5493_v49 }
 0x42f   : > { %6202 = vst [vmem:[%s9590_s21 + $0x28] sm:$0xff] %v6170_v36  ;;  %v5383_v63 = vpop.f32.mrf.mxu1 }
 0x430   : > { %v5426_v53 = vadd.f32 %v5383_v63, %v5000_v39  ;;  %v5947_v56 = vpop.f32.mrf.mxu2  ;;  %v6036_v38 = vpop.f32.mrf.mxu3  ;;  %v5621_v18 = vunpack.c.l.b16 %v5525_v9  ;;  %v4007_v39 = vadd.f32 %v9430_v41, %v9433_v26 }
 0x431   : > { %v5948_v23 = vadd.f32 %v5947_v56, %v9581_v6  ;;  %v6037_v60 = vadd.f32 %v6036_v38, %v9583_v34  ;;  %v4967_v30 = vpop.f32.mrf.mxu0 }
 0x432   : > { %v5462_v55 = vadd.f32 %v9452_v57, %v5426_v53 }
 0x433   : > { %v6113_v44 = vmax.f32 %v5948_v23, 0.0  ;;  %v6114_v47 = vmax.f32 %v6037_v60, 0.0 }
 0x434   : > { %v5494_v8 = vmax.f32 %v5462_v55, 0.0  ;;  %v5752_v55 = vpop.permute.xlu1 %5751 }
 0x435   : > { %v6171_v11 = vpack.c.bf16 %v6114_v47, %v6113_v44  ;;  %v4322_v47 = vadd.f32 %v9436_v25, %v4007_v39 }
 0x436   : > { %v5526_v46 = vpack.c.bf16 %v5494_v8, %v5494_v8 }
 0x437   : > { %6203 = vst [vmem:[%s9590_s21 + $0x30] sm:$0xff] %v6171_v11  ;;  %v5386_v17 = vpop.f32.mrf.mxu1  ;;  %v5004_v8 = vadd.f32 %v4967_v30, %v4322_v47 }
 0x438   : > { %v5622_v14 = vunpack.c.l.b16 %v5526_v46  ;;  %v5427_v3 = vadd.f32 %v5386_v17, %v5001_v58  ;;  %v5949_v54 = vpop.f32.mrf.mxu2  ;;  %v6038_v22 = vpop.f32.mrf.mxu3 }
 0x439   : > { %v5950_v20 = vadd.f32 %v5949_v54, %v9581_v6  ;;  %v6039_v7 = vadd.f32 %v6038_v22, %v9583_v34 }
 0x43a   : > { %v5641_v13 = vpack.c.b16 %v5622_v14, %v5621_v18  ;;  %v5463_v19 = vadd.f32 %v9452_v57, %v5427_v3  ;;  %v4970_v18 = vpop.f32.mrf.mxu0 }
 0x43b   : > { %v6115_v15 = vmax.f32 %v5950_v20, 0.0  ;;  %v6116_v32 = vmax.f32 %v6039_v7, 0.0 }
 0x43c   : > { %v5807_v28 = vsel %vm512_vm0, %v5641_v13, %v5750_v35  ;;  %v5495_v33 = vmax.f32 %v5463_v19, 0.0  ;;  %v5005_v13 = vadd.f32 %v4970_v18, %v9444_v42 }
 0x43d   : > { %v6172_v31 = vpack.c.bf16 %v6116_v32, %v6115_v15  ;;  %5991 = vmatmul.bf16.gmra.mxu2 %v5807_v28  ;;  %6080 = vmatmul.bf16.gmra.mxu3 %v5807_v28 }
 0x43e   : > { %v5527_v1 = vpack.c.bf16 %v5495_v33, %v5495_v33 }
 0x43f   : > { %6204 = vst [vmem:[%s9590_s21 + $0x38] sm:$0xff] %v6172_v31  ;;  %v5388_v2 = vpop.f32.mrf.mxu1 }
 0x440   : > { %v5428_v45 = vadd.f32 %v5388_v2, %v5002_v59  ;;  %v5952_v12 = vpop.f32.mrf.mxu2  ;;  %v6041_v52 = vpop.f32.mrf.mxu3  ;;  %v5623_v63 = vunpack.c.l.b16 %v5527_v1 }
 0x441   : > { %v5953_v48 = vadd.f32 %v5952_v12, %v9581_v6  ;;  %v6042_v43 = vadd.f32 %v6041_v52, %v9583_v34 }
 0x442   : > { %v5464_v51 = vadd.f32 %v9452_v57, %v5428_v45  ;;  %v5754_v45 = vpop.permute.xlu2 %5753  ;;  %v4972_v52 = vpop.f32.mrf.mxu0 }
 0x443   : > { %v6117_v21 = vmax.f32 %v5953_v48, 0.0  ;;  %v6118_v50 = vmax.f32 %v6042_v43, 0.0  ;;  %v4324_v43 = vadd.f32 %v9573_v37, %v4009_v24 }
 0x444   : > { %v5496_v0 = vmax.f32 %v5464_v51, 0.0 }
 0x445   : > { %v6173_v5 = vpack.c.bf16 %v6118_v50, %v6117_v21  ;;  %v5006_v21 = vadd.f32 %v4972_v52, %v4324_v43 }
 0x446   : > { %v5528_v10 = vpack.c.bf16 %v5496_v0, %v5496_v0 }
 0x447   : > { %6205 = vst [vmem:[%s9590_s21 + $0x40] sm:$0xff] %v6173_v5  ;;  %v5391_v36 = vpop.f32.mrf.mxu1 }
 0x448   : > { %v5624_v49 = vunpack.c.l.b16 %v5528_v10  ;;  %v5429_v53 = vadd.f32 %v5391_v36, %v5003_v4  ;;  %v5954_v56 = vpop.f32.mrf.mxu2  ;;  %v6043_v38 = vpop.f32.mrf.mxu3 }
 0x449   : > { %v5955_v23 = vadd.f32 %v5954_v56, %v9581_v6  ;;  %v6044_v60 = vadd.f32 %v6043_v38, %v9583_v34 }
 0x44a   : > { %v5642_v62 = vpack.c.b16 %v5624_v49, %v5623_v63  ;;  %v5465_v9 = vadd.f32 %v9452_v57, %v5429_v53 }
 0x44b   : > { %v6119_v27 = vmax.f32 %v5955_v23, 0.0  ;;  %v6120_v44 = vmax.f32 %v6044_v60, 0.0 }
 0x44c   : > { %v5811_v41 = vsel %vm512_vm0, %v5642_v62, %v5752_v55  ;;  %v5497_v58 = vmax.f32 %v5465_v9, 0.0 }
 0x44d   : > { %v6174_v26 = vpack.c.bf16 %v6120_v44, %v6119_v27  ;;  %5996 = vmatmul.bf16.gmra.mxu2 %v5811_v41  ;;  %6085 = vmatmul.bf16.gmra.mxu3 %v5811_v41  ;;  %v5756_v44 = vpop.permute.xlu0 %5755 }
 0x44e   : > { %v5529_v20 = vpack.c.bf16 %v5497_v58, %v5497_v58 }
 0x44f   : > { %6206 = vst [vmem:[%s9590_s21 + $0x48] sm:$0xff] %v6174_v26  ;;  %v5393_v11 = vpop.f32.mrf.mxu1 }
 0x450   : > { %v5430_v46 = vadd.f32 %v5393_v11, %v5004_v8  ;;  %v5957_v17 = vpop.f32.mrf.mxu2  ;;  %v6046_v29 = vpop.f32.mrf.mxu3  ;;  %v5625_v19 = vunpack.c.l.b16 %v5529_v20 }
 0x451   : > { %v5958_v14 = vadd.f32 %v5957_v17, %v9581_v6  ;;  %v6047_v25 = vadd.f32 %v6046_v29, %v9583_v34 }
 0x452   : > { %v5466_v3 = vadd.f32 %v9452_v57, %v5430_v46 }
 0x453   : > { %v6121_v54 = vmax.f32 %v5958_v14, 0.0  ;;  %v6122_v22 = vmax.f32 %v6047_v25, 0.0 }
 0x454   : > { %v5498_v7 = vmax.f32 %v5466_v3, 0.0 }
 0x455   : > { %v6175_v35 = vpack.c.bf16 %v6122_v22, %v6121_v54 }
 0x456   : > { %v5530_v15 = vpack.c.bf16 %v5498_v7, %v5498_v7 }
 0x457   : > { %6207 = vst [vmem:[%s9590_s21 + $0x50] sm:$0xff] %v6175_v35  ;;  %v5396_v32 = vpop.f32.mrf.mxu1 }
 0x458   : > { %v5626_v28 = vunpack.c.l.b16 %v5530_v15  ;;  %v5431_v16 = vadd.f32 %v5396_v32, %v5005_v13  ;;  %v5959_v31 = vpop.f32.mrf.mxu2  ;;  %v6048_v59 = vpop.f32.mrf.mxu3 }
 0x459   : > { %v5960_v2 = vadd.f32 %v5959_v31, %v9581_v6  ;;  %v6049_v33 = vadd.f32 %v6048_v59, %v9583_v34 }
 0x45a   : > { %v5643_v12 = vpack.c.b16 %v5626_v28, %v5625_v19  ;;  %v5467_v51 = vadd.f32 %v9452_v57, %v5431_v16 }
 0x45b   : > { %v6123_v42 = vmax.f32 %v5960_v2, 0.0  ;;  %v6124_v48 = vmax.f32 %v6049_v33, 0.0 }
 0x45c   : > { %v5815_v61 = vsel %vm512_vm0, %v5643_v12, %v5754_v45  ;;  %v5499_v1 = vmax.f32 %v5467_v51, 0.0 }
 0x45d   : > { %v6176_v40 = vpack.c.bf16 %v6124_v48, %v6123_v42  ;;  %6001 = vmatmul.bf16.gmra.mxu2 %v5815_v61  ;;  %6090 = vmatmul.bf16.gmra.mxu3 %v5815_v61 }
 0x45e   : > { %v5531_v63 = vpack.c.bf16 %v5499_v1, %v5499_v1 }
 0x45f   : > { %6208 = vst [vmem:[%s9590_s21 + $0x58] sm:$0xff] %v6176_v40  ;;  %v5398_v50 = vpop.f32.mrf.mxu1 }
 0x460   : > { %v5432_v0 = vadd.f32 %v5398_v50, %v5006_v21  ;;  %v5962_v5 = vpop.f32.mrf.mxu2  ;;  %v6051_v4 = vpop.f32.mrf.mxu3  ;;  %v5627_v38 = vunpack.c.l.b16 %v5531_v63 }
 0x461   : > { %v5963_v10 = vadd.f32 %v5962_v5, %v9581_v6  ;;  %v6052_v30 = vadd.f32 %v6051_v4, %v9583_v34 }
 0x462   : > { %v5468_v37 = vadd.f32 %v9452_v57, %v5432_v0 }
 0x463   : > { %v6125_v36 = vmax.f32 %v5963_v10, 0.0  ;;  %v6126_v39 = vmax.f32 %v6052_v30, 0.0 }
 0x464   : > { %v5500_v49 = vmax.f32 %v5468_v37, 0.0 }
 0x465   : > { %v6177_v53 = vpack.c.bf16 %v6126_v39, %v6125_v36 }
 0x466   : > { %v5532_v56 = vpack.c.bf16 %v5500_v49, %v5500_v49 }
 0x467   : > { %6209 = vst [vmem:[%s9590_s21 + $0x60] sm:$0xff] %v6177_v53 }
 0x468   : > { %v5628_v23 = vunpack.c.l.b16 %v5532_v56  ;;  %v5964_v60 = vpop.f32.mrf.mxu2  ;;  %v6053_v55 = vpop.f32.mrf.mxu3 }
 0x469   : > { %v5965_v62 = vadd.f32 %v5964_v60, %v9581_v6  ;;  %v6054_v27 = vadd.f32 %v6053_v55, %v9583_v34 }
 0x46a   : > { %v5644_v47 = vpack.c.b16 %v5628_v23, %v5627_v38 }
 0x46b   : > { %v6127_v57 = vmax.f32 %v5965_v62, 0.0  ;;  %v6128_v9 = vmax.f32 %v6054_v27, 0.0 }
 0x46c   : > { %v5819_v41 = vsel %vm512_vm0, %v5644_v47, %v5756_v44 }
 0x46d   : > { %v6178_v26 = vpack.c.bf16 %v6128_v9, %v6127_v57  ;;  %6006 = vmatmul.bf16.gmra.mxu2 %v5819_v41  ;;  %6095 = vmatmul.bf16.gmra.mxu3 %v5819_v41 }
 0x46f   : > { %6210 = vst [vmem:[%s9590_s21 + $0x68] sm:$0xff] %v6178_v26 }
 0x470   : > { %v5967_v8 = vpop.f32.mrf.mxu2  ;;  %v6056_v11 = vpop.f32.mrf.mxu3 }
 0x471   : > { %v5968_v58 = vadd.f32 %v5967_v8, %v9581_v6  ;;  %v6057_v46 = vadd.f32 %v6056_v11, %v9583_v34 }
 0x473   : > { %v6129_v17 = vmax.f32 %v5968_v58, 0.0  ;;  %v6130_v29 = vmax.f32 %v6057_v46, 0.0 }
 0x475   : > { %v6179_v18 = vpack.c.bf16 %v6130_v29, %v6129_v17 }
 0x477   : > { %6211 = vst [vmem:[%s9590_s21 + $0x70] sm:$0xff] %v6179_v18 }
 0x478   : > { %v5969_v14 = vpop.f32.mrf.mxu2  ;;  %v6058_v25 = vpop.f32.mrf.mxu3 }
 0x479   : > { %v5970_v3 = vadd.f32 %v5969_v14, %v9581_v6  ;;  %v6059_v54 = vadd.f32 %v6058_v25, %v9583_v34 }
 0x47b   : > { %v6131_v22 = vmax.f32 %v5970_v3, 0.0  ;;  %v6132_v20 = vmax.f32 %v6059_v54, 0.0 }
 0x47d   : > { %v6180_v7 = vpack.c.bf16 %v6132_v20, %v6131_v22 }
 0x47f   : > { %6212 = vst [vmem:[%s9590_s21 + $0x78] sm:$0xff] %v6180_v7 }
 0x480   : > { %v5972_v35 = vpop.f32.mrf.mxu2  ;;  %v6061_v13 = vpop.f32.mrf.mxu3 }
 0x481   : > { %v5973_v15 = vadd.f32 %v5972_v35, %v9581_v6  ;;  %v6062_v32 = vadd.f32 %v6061_v13, %v9583_v34 }
 0x483   : > { %v6133_v24 = vmax.f32 %v5973_v15, 0.0  ;;  %v6134_v19 = vmax.f32 %v6062_v32, 0.0 }
 0x485   : > { %v6181_v28 = vpack.c.bf16 %v6134_v19, %v6133_v24 }
 0x487   : > { %6213 = vst [vmem:[%s9590_s21 + $0x80] sm:$0xff] %v6181_v28 }
 0x488   : > { %v5974_v16 = vpop.f32.mrf.mxu2  ;;  %v6063_v31 = vpop.f32.mrf.mxu3 }
 0x489   : > { %v5975_v59 = vadd.f32 %v5974_v16, %v9581_v6  ;;  %v6064_v2 = vadd.f32 %v6063_v31, %v9583_v34 }
 0x48b   : > { %v6135_v33 = vmax.f32 %v5975_v59, 0.0  ;;  %v6136_v45 = vmax.f32 %v6064_v2, 0.0 }
 0x48d   : > { %v6182_v12 = vpack.c.bf16 %v6136_v45, %v6135_v33 }
 0x48f   : > { %6214 = vst [vmem:[%s9590_s21 + $0x88] sm:$0xff] %v6182_v12 }
 0x490   : > { %v5977_v52 = vpop.f32.mrf.mxu2  ;;  %v6066_v42 = vpop.f32.mrf.mxu3 }
 0x491   : > { %v5978_v48 = vadd.f32 %v5977_v52, %v9581_v6  ;;  %v6067_v43 = vadd.f32 %v6066_v42, %v9583_v34 }
 0x493   : > { %v6137_v51 = vmax.f32 %v5978_v48, 0.0  ;;  %v6138_v61 = vmax.f32 %v6067_v43, 0.0 }
 0x495   : > { %v6183_v40 = vpack.c.bf16 %v6138_v61, %v6137_v51 }
 0x497   : > { %6215 = vst [vmem:[%s9590_s21 + $0x90] sm:$0xff] %v6183_v40 }
 0x498   : > { %v5979_v21 = vpop.f32.mrf.mxu2  ;;  %v6068_v50 = vpop.f32.mrf.mxu3 }
 0x499   : > { %v5980_v1 = vadd.f32 %v5979_v21, %v9581_v6  ;;  %v6069_v0 = vadd.f32 %v6068_v50, %v9583_v34 }
 0x49b   : > { %v6139_v5 = vmax.f32 %v5980_v1, 0.0  ;;  %v6140_v4 = vmax.f32 %v6069_v0, 0.0 }
 0x49d   : > { %v6184_v10 = vpack.c.bf16 %v6140_v4, %v6139_v5 }
 0x49f   : > { %6216 = vst [vmem:[%s9590_s21 + $0x98] sm:$0xff] %v6184_v10 }
 0x4a0   : > { %v5982_v30 = vpop.f32.mrf.mxu2  ;;  %v6071_v37 = vpop.f32.mrf.mxu3 }
 0x4a1   : > { %v5983_v36 = vadd.f32 %v5982_v30, %v9581_v6  ;;  %v6072_v39 = vadd.f32 %v6071_v37, %v9583_v34 }
 0x4a3   : > { %v6141_v63 = vmax.f32 %v5983_v36, 0.0  ;;  %v6142_v49 = vmax.f32 %v6072_v39, 0.0 }
 0x4a5   : > { %v6185_v53 = vpack.c.bf16 %v6142_v49, %v6141_v63 }
 0x4a7   : > { %6217 = vst [vmem:[%s9590_s21 + $0xa0] sm:$0xff] %v6185_v53 }
 0x4a8   : > { %v5984_v56 = vpop.f32.mrf.mxu2  ;;  %v6073_v38 = vpop.f32.mrf.mxu3 }
 0x4a9   : > { %v5985_v23 = vadd.f32 %v5984_v56, %v9581_v6  ;;  %v6074_v60 = vadd.f32 %v6073_v38, %v9583_v34 }
 0x4ab   : > { %v6143_v55 = vmax.f32 %v5985_v23, 0.0  ;;  %v6144_v62 = vmax.f32 %v6074_v60, 0.0 }
 0x4ad   : > { %v6186_v27 = vpack.c.bf16 %v6144_v62, %v6143_v55 }
 0x4af   : > { %6218 = vst [vmem:[%s9590_s21 + $0xa8] sm:$0xff] %v6186_v27 }
 0x4b0   : > { %v5987_v44 = vpop.f32.mrf.mxu2  ;;  %v6076_v47 = vpop.f32.mrf.mxu3 }
 0x4b1   : > { %v5988_v57 = vadd.f32 %v5987_v44, %v9581_v6  ;;  %v6077_v9 = vadd.f32 %v6076_v47, %v9583_v34 }
 0x4b3   : > { %v6145_v41 = vmax.f32 %v5988_v57, 0.0  ;;  %v6146_v26 = vmax.f32 %v6077_v9, 0.0 }
 0x4b5   : > { %v6187_v8 = vpack.c.bf16 %v6146_v26, %v6145_v41 }
 0x4b7   : > { %6219 = vst [vmem:[%s9590_s21 + $0xb0] sm:$0xff] %v6187_v8 }
 0x4b8   : > { %v5989_v11 = vpop.f32.mrf.mxu2  ;;  %v6078_v58 = vpop.f32.mrf.mxu3 }
 0x4b9   : > { %v5990_v46 = vadd.f32 %v5989_v11, %v9581_v6  ;;  %v6079_v17 = vadd.f32 %v6078_v58, %v9583_v34 }
 0x4bb   : > { %v6147_v29 = vmax.f32 %v5990_v46, 0.0  ;;  %v6148_v18 = vmax.f32 %v6079_v17, 0.0 }
 0x4bd   : > { %v6188_v14 = vpack.c.bf16 %v6148_v18, %v6147_v29 }
 0x4bf   : > { %6220 = vst [vmem:[%s9590_s21 + $0xb8] sm:$0xff] %v6188_v14 }
 0x4c0   : > { %v5992_v25 = vpop.f32.mrf.mxu2  ;;  %v6081_v3 = vpop.f32.mrf.mxu3 }
 0x4c1   : > { %v5993_v54 = vadd.f32 %v5992_v25, %v9581_v6  ;;  %v6082_v22 = vadd.f32 %v6081_v3, %v9583_v34 }
 0x4c3   : > { %v6149_v20 = vmax.f32 %v5993_v54, 0.0  ;;  %v6150_v7 = vmax.f32 %v6082_v22, 0.0 }
 0x4c5   : > { %v6189_v35 = vpack.c.bf16 %v6150_v7, %v6149_v20 }
 0x4c7   : > { %6221 = vst [vmem:[%s9590_s21 + $0xc0] sm:$0xff] %v6189_v35 }
 0x4c8   : > { %v5994_v13 = vpop.f32.mrf.mxu2  ;;  %v6083_v15 = vpop.f32.mrf.mxu3 }
 0x4c9   : > { %v5995_v32 = vadd.f32 %v5994_v13, %v9581_v6  ;;  %v6084_v24 = vadd.f32 %v6083_v15, %v9583_v34 }
 0x4cb   : > { %v6151_v19 = vmax.f32 %v5995_v32, 0.0  ;;  %v6152_v28 = vmax.f32 %v6084_v24, 0.0 }
 0x4cd   : > { %v6190_v16 = vpack.c.bf16 %v6152_v28, %v6151_v19 }
 0x4cf   : > { %6222 = vst [vmem:[%s9590_s21 + $0xc8] sm:$0xff] %v6190_v16 }
 0x4d0   : > { %v5997_v31 = vpop.f32.mrf.mxu2  ;;  %v6086_v59 = vpop.f32.mrf.mxu3 }
 0x4d1   : > { %v5998_v2 = vadd.f32 %v5997_v31, %v9581_v6  ;;  %v6087_v33 = vadd.f32 %v6086_v59, %v9583_v34 }
 0x4d3   : > { %v6153_v45 = vmax.f32 %v5998_v2, 0.0  ;;  %v6154_v12 = vmax.f32 %v6087_v33, 0.0 }
 0x4d5   : > { %v6191_v52 = vpack.c.bf16 %v6154_v12, %v6153_v45 }
 0x4d7   : > { %6223 = vst [vmem:[%s9590_s21 + $0xd0] sm:$0xff] %v6191_v52 }
 0x4d8   : > { %v5999_v42 = vpop.f32.mrf.mxu2  ;;  %v6088_v48 = vpop.f32.mrf.mxu3 }
 0x4d9   : > { %v6000_v43 = vadd.f32 %v5999_v42, %v9581_v6  ;;  %v6089_v51 = vadd.f32 %v6088_v48, %v9583_v34 }
 0x4db   : > { %v6155_v61 = vmax.f32 %v6000_v43, 0.0  ;;  %v6156_v40 = vmax.f32 %v6089_v51, 0.0 }
 0x4dd   : > { %v6192_v21 = vpack.c.bf16 %v6156_v40, %v6155_v61 }
 0x4df   : > { %6224 = vst [vmem:[%s9590_s21 + $0xd8] sm:$0xff] %v6192_v21 }
 0x4e0   : > { %v6002_v50 = vpop.f32.mrf.mxu2  ;;  %v6091_v1 = vpop.f32.mrf.mxu3 }
 0x4e1   : > { %v6003_v0 = vadd.f32 %v6002_v50, %v9581_v6  ;;  %v6092_v5 = vadd.f32 %v6091_v1, %v9583_v34 }
 0x4e3   : > { %v6157_v4 = vmax.f32 %v6003_v0, 0.0  ;;  %v6158_v10 = vmax.f32 %v6092_v5, 0.0 }
 0x4e5   : > { %v6193_v30 = vpack.c.bf16 %v6158_v10, %v6157_v4 }
 0x4e7   : > { %6225 = vst [vmem:[%s9590_s21 + $0xe0] sm:$0xff] %v6193_v30 }
 0x4e8   : > { %v6004_v37 = vpop.f32.mrf.mxu2  ;;  %v6093_v36 = vpop.f32.mrf.mxu3 }
 0x4e9   : > { %v6005_v39 = vadd.f32 %v6004_v37, %v9581_v6  ;;  %v6094_v63 = vadd.f32 %v6093_v36, %v9583_v34 }
 0x4eb   : > { %v6159_v49 = vmax.f32 %v6005_v39, 0.0  ;;  %v6160_v53 = vmax.f32 %v6094_v63, 0.0 }
 0x4ed   : > { %v6194_v56 = vpack.c.bf16 %v6160_v53, %v6159_v49 }
 0x4ef   : > { %6226 = vst [vmem:[%s9590_s21 + $0xe8] sm:$0xff] %v6194_v56 }
 0x4f0   : > { %v6007_v38 = vpop.f32.mrf.mxu2  ;;  %v6096_v23 = vpop.f32.mrf.mxu3 }
 0x4f1   : > { %v6008_v60 = vadd.f32 %v6007_v38, %v9581_v6  ;;  %v6097_v55 = vadd.f32 %v6096_v23, %v9583_v34 }
 0x4f3   : > { %v6161_v62 = vmax.f32 %v6008_v60, 0.0  ;;  %v6162_v27 = vmax.f32 %v6097_v55, 0.0 }
 0x4f5   : > { %v6195_v44 = vpack.c.bf16 %v6162_v27, %v6161_v62 }
 0x4f7   : > { %6227 = vst [vmem:[%s9590_s21 + $0xf0] sm:$0xff] %v6195_v44 }
 0x4f8   : > { %v6009_v47 = vpop.f32.mrf.mxu2  ;;  %v6098_v57 = vpop.f32.mrf.mxu3 }
 0x4f9   : > { %v6010_v9 = vadd.f32 %v6009_v47, %v9581_v6  ;;  %v6099_v41 = vadd.f32 %v6098_v57, %v9583_v34 }
 0x4fb   : > { %v6163_v26 = vmax.f32 %v6010_v9, 0.0  ;;  %v6164_v8 = vmax.f32 %v6099_v41, 0.0 }
 0x4fd   : > { %v6196_v11 = vpack.c.bf16 %v6164_v8, %v6163_v26 }
 0x4ff   : > { %6228 = vst [vmem:[%s9590_s21 + $0xf8] sm:$0xff] %v6196_v11 }
 0x500   : > { %7551 = shalt.err (!%p7548_p10)
}
 0x501   : > { %s7610_s16 = smov 128   ;;  %s7611_s21 = smov 8  }
 0x502   : > { %7286 = dma.vmem_to_hbm [thread:$0]  (%p7745_p5), %s6243_s12, 4096, %s6245_s19, %s6230_s28, %s7610_s16, %s7610_s16, %s7611_s21  }
 0x503 PF: > { %s6259_s20 = sand.u32 1, %s7586_s24   ;;  %p9903_p12 = scmp.ge.s32.totalorder %s7598_s27, 2 }
 0x504   : > { %s6260_s1 = scalar_lea.sflag [#allocation5], %s6259_s20 }
 0x505   : > { %p7306_p13 = pnand %p9903_p12, %p7687_p6 }
 0x507   : > { %p7307_p0 = pneg %p7306_p13 }
 0x509   : > { %7581 = dma.done.wait (%p7307_p0), %s6260_s1, 4096  }
 0x50a   : > { %7583 = vsyncadd (%p7307_p0), %s6260_s1, 4294963200  ;;  %p22_p3 = scmp.ge.s32.totalorder %s7732_s23, 4   ;;  %s9904_s24 = smov %s7590_s25 }
 0x50b   : > { %s9905_s25 = smov %s7594_s26  ;;  %s9906_s26 = smov %s7741_s13 }
 0x50c   : > { %s9907_s27 = smov %s7732_s23  ;;  %24 = sbr.rel (!%p22_p3) target bundleno = 9 (0x9), region = 120 }
 0x511   :  { %6266 = vsyncpa [#allocation4], 1 }
 0x512   :  { %6268 = vsyncpa [#allocation4 + $0x1], 1 }
 0x513   :  { %6269 = vsyncpa [#allocation7], 1 }
 0x514   :  { %6270 = vsyncpa [#allocation10], 1 }
 0x515   :  { %6271 = vsyncpa [#allocation5], 1 }
 0x516   :  { %6273 = vsyncpa [#allocation5 + $0x1], 1 }

</bundles_post_ra>
